<compile_context>
chip_gen: v5e
topology: v5e:2x2
jax: 0.10.0
libtpu: 0.0.40
codegen_flags: <defaults>
</compile_context>

<pallas_src>
import math

import jax
import jax.numpy as jnp
from jax.experimental import pallas as pl
from jax.experimental.pallas import tpu as pltpu

# ----------------------------- model hyper-params (small, synthetic) ---------
HIDDEN = 32          # bert_config.hidden_size
HEADS = 4
HEAD_DIM = HIDDEN // HEADS
INTER = 64           # intermediate_size
LAYERS = 2
VOCAB = 100
MAX_POS = 16
TYPE_VOCAB = 2
LABELS = 3           # config.label_count
LABELS_PAD = 128     # lane-dense padded logits width
DOMAINS = 2          # domain_count
B, S = 2, 8
LN_EPS = 1e-12
INIT_RANGE = 0.02    # bert_config.initializer_range


# ----------------------------- fused Pallas kernel ---------------------------
def _fused_da_kernel(emb_ref, mask_ref, eg_ref, eb_ref,
                     wqkv_ref, bqkv_ref, wo_ref, bo_ref, ag_ref, ab_ref,
                     wf1_ref, bf1_ref, wf2_ref, bf2_ref, fg_ref, fb_ref,
                     pw_ref, pb_ref, cw1_ref, cb1_ref, cw2_ref, cb2_ref,
                     out_ref):
    """Whole per-domain forward: emb-LN -> LAYERS x (attn + FFN) -> pooler ->
    {private, shared} cls heads.  Grid axis 0 = domain ("parallel")."""

    def layernorm(x, g, b):
        mu = jnp.mean(x, axis=-1, keepdims=True)
        var = jnp.mean((x - mu) ** 2, axis=-1, keepdims=True)
        return (x - mu) * jax.lax.rsqrt(var + LN_EPS) * g + b

    scale = 1.0 / math.sqrt(HEAD_DIM)

    # embeddings LayerNorm
    h = layernorm(emb_ref[0], eg_ref[0], eb_ref[0])                 # (B*S, H)

    # HF-style additive mask bias, built on the fly from the raw (B, S) mask
    bias = (1.0 - mask_ref[...]) * -10000.0                         # (B, S)

    for l in range(LAYERS):
        # fused QKV projection: one MXU pass over h
        qkv = (jnp.dot(h, wqkv_ref[0, l], preferred_element_type=jnp.float32)
               + bqkv_ref[0, l])                                    # (B*S, 3H)

        # per-(batch, head) scaled-dot-product attention; the output projection
        # is folded into the head loop (sum over heads of ctx_h @ Wo[rows_h])
        attn_rows = []
        for b in range(B):
            r0 = b * S
            bias_b = bias[b:b + 1, :]                               # (1, S)
            acc = None
            for hh in range(HEADS):
                c0 = hh * HEAD_DIM
                qh = qkv[r0:r0 + S, c0:c0 + HEAD_DIM]               # (S, Dh)
                kh = qkv[r0:r0 + S, HIDDEN + c0:HIDDEN + c0 + HEAD_DIM]
                vh = qkv[r0:r0 + S, 2 * HIDDEN + c0:2 * HIDDEN + c0 + HEAD_DIM]
                s = jax.lax.dot_general(
                    qh, kh, (((1,), (1,)), ((), ())),
                    preferred_element_type=jnp.float32) * scale + bias_b
                m = jnp.max(s, axis=-1, keepdims=True)
                e = jnp.exp(s - m)
                p = e * pl.reciprocal(jnp.sum(e, axis=-1, keepdims=True),
                                      approx=True)
                ctx_h = jnp.dot(p, vh, preferred_element_type=jnp.float32)
                part = jnp.dot(ctx_h, wo_ref[0, l][c0:c0 + HEAD_DIM, :],
                               preferred_element_type=jnp.float32)  # (S, H)
                acc = part if acc is None else acc + part
            attn_rows.append(acc)                                   # (S, H)
        attn_out = jnp.concatenate(attn_rows, axis=0) + bo_ref[0, l]  # (B*S, H)

        h = layernorm(attn_out + h, ag_ref[0, l], ab_ref[0, l])

        # feed-forward
        # TODO(synk): HF BERT uses exact erf-GELU; tanh approximation used here.
        ff = jax.nn.gelu(
            jnp.dot(h, wf1_ref[0, l], preferred_element_type=jnp.float32)
            + bf1_ref[0, l], approximate=True)
        ff = (jnp.dot(ff, wf2_ref[0, l], preferred_element_type=jnp.float32)
              + bf2_ref[0, l])
        h = layernorm(ff + h, fg_ref[0, l], fb_ref[0, l])

    # pooler: tanh(W h[:, 0] + b); pick the [CLS] rows with a tiny select matmul
    ri = jax.lax.broadcasted_iota(jnp.int32, (B, B * S), 0)
    ci = jax.lax.broadcasted_iota(jnp.int32, (B, B * S), 1)
    sel = (ci == ri * S).astype(jnp.float32)                        # (B, B*S)
    cls_tok = jnp.dot(sel, h, preferred_element_type=jnp.float32)   # (B, H)
    pooled = jnp.tanh(
        jnp.dot(cls_tok, pw_ref[0], preferred_element_type=jnp.float32)
        + pb_ref[0])                                                # (B, H)

    # classifier heads: hd=0 private, hd=1 shared; logits lane-padded to 128
    for hd in range(2):
        hid = jnp.tanh(
            jnp.dot(pooled, cw1_ref[0, hd], preferred_element_type=jnp.float32)
            + cb1_ref[0, hd])
        lg = (jnp.dot(hid, cw2_ref[0, hd], preferred_element_type=jnp.float32)
              + cb2_ref[0, hd])                                     # (B, 128)
        out_ref[0, hd] = lg.astype(out_ref.dtype)


def _dom_spec(shape):
    """Per-domain block: size-1 leading (domain) axis, full trailing dims."""
    nd = len(shape)
    blk = (1,) + tuple(shape[1:])
    return pl.BlockSpec(blk, lambda d, _nd=nd: (d,) + (0,) * (_nd - 1))


def fused_da_forward(emb, mask, p):
    """One pallas_call over grid=(DOMAINS,) producing padded logits
    (DOMAINS, 2, B, LABELS_PAD)."""
    in_specs = [
        _dom_spec(emb.shape),
        pl.BlockSpec(mask.shape, lambda d: (0, 0)),
        _dom_spec(p["emb_ln_g"].shape), _dom_spec(p["emb_ln_b"].shape),
        _dom_spec(p["wqkv"].shape), _dom_spec(p["bqkv"].shape),
        _dom_spec(p["wo"].shape), _dom_spec(p["bo"].shape),
        _dom_spec(p["attn_ln_g"].shape), _dom_spec(p["attn_ln_b"].shape),
        _dom_spec(p["w_ff1"].shape), _dom_spec(p["b_ff1"].shape),
        _dom_spec(p["w_ff2"].shape), _dom_spec(p["b_ff2"].shape),
        _dom_spec(p["ffn_ln_g"].shape), _dom_spec(p["ffn_ln_b"].shape),
        _dom_spec(p["pooler_w"].shape), _dom_spec(p["pooler_b"].shape),
        _dom_spec(p["cls_w1"].shape), _dom_spec(p["cls_b1"].shape),
        _dom_spec(p["cls_w2"].shape), _dom_spec(p["cls_b2"].shape),
    ]
    return pl.pallas_call(
        _fused_da_kernel,
        grid=(DOMAINS,),
        in_specs=in_specs,
        out_specs=pl.BlockSpec((1, 2, B, LABELS_PAD), lambda d: (d, 0, 0, 0)),
        out_shape=jax.ShapeDtypeStruct((DOMAINS, 2, B, LABELS_PAD), jnp.float32),
        compiler_params=pltpu.CompilerParams(
            dimension_semantics=("parallel",)),
    )(emb, mask, p["emb_ln_g"], p["emb_ln_b"], p["wqkv"], p["bqkv"],
      p["wo"], p["bo"], p["attn_ln_g"], p["attn_ln_b"],
      p["w_ff1"], p["b_ff1"], p["w_ff2"], p["b_ff2"],
      p["ffn_ln_g"], p["ffn_ln_b"], p["pooler_w"], p["pooler_b"],
      p["cls_w1"], p["cls_b1"], p["cls_w2"], p["cls_b2"])


# ----------------------------- parameter init (deterministic) ----------------
def _normal(key, shape):
    return (INIT_RANGE * jax.random.normal(key, shape)).astype(jnp.float32)


def init_model_params(key):
    """Per-domain BERT + heads, stacked along a leading DOMAINS axis.
    Matches _init_weights: Linear/Embedding ~ N(0, initializer_range),
    biases zero, LayerNorm gamma=1 beta=0."""
    ks = jax.random.split(key, 10)
    p = {
        "word_emb": _normal(ks[0], (DOMAINS, VOCAB, HIDDEN)),
        "pos_emb": _normal(ks[1], (DOMAINS, MAX_POS, HIDDEN)),
        "type_emb": _normal(ks[2], (DOMAINS, TYPE_VOCAB, HIDDEN)),
        "emb_ln_g": jnp.ones((DOMAINS, 1, HIDDEN), jnp.float32),
        "emb_ln_b": jnp.zeros((DOMAINS, 1, HIDDEN), jnp.float32),
        "wqkv": _normal(ks[3], (DOMAINS, LAYERS, HIDDEN, 3 * HIDDEN)),
        "bqkv": jnp.zeros((DOMAINS, LAYERS, 1, 3 * HIDDEN), jnp.float32),
        "wo": _normal(ks[4], (DOMAINS, LAYERS, HIDDEN, HIDDEN)),
        "bo": jnp.zeros((DOMAINS, LAYERS, 1, HIDDEN), jnp.float32),
        "attn_ln_g": jnp.ones((DOMAINS, LAYERS, 1, HIDDEN), jnp.float32),
        "attn_ln_b": jnp.zeros((DOMAINS, LAYERS, 1, HIDDEN), jnp.float32),
        "w_ff1": _normal(ks[5], (DOMAINS, LAYERS, HIDDEN, INTER)),
        "b_ff1": jnp.zeros((DOMAINS, LAYERS, 1, INTER), jnp.float32),
        "w_ff2": _normal(ks[6], (DOMAINS, LAYERS, INTER, HIDDEN)),
        "b_ff2": jnp.zeros((DOMAINS, LAYERS, 1, HIDDEN), jnp.float32),
        "ffn_ln_g": jnp.ones((DOMAINS, LAYERS, 1, HIDDEN), jnp.float32),
        "ffn_ln_b": jnp.zeros((DOMAINS, LAYERS, 1, HIDDEN), jnp.float32),
        "pooler_w": _normal(ks[7], (DOMAINS, HIDDEN, HIDDEN)),
        "pooler_b": jnp.zeros((DOMAINS, 1, HIDDEN), jnp.float32),
        # axis 1: 0 = private cls head, 1 = shared cls head
        "cls_w1": _normal(ks[8], (DOMAINS, 2, HIDDEN, HIDDEN)),
        "cls_b1": jnp.zeros((DOMAINS, 2, 1, HIDDEN), jnp.float32),
        "cls_b2": jnp.zeros((DOMAINS, 2, 1, LABELS_PAD), jnp.float32),
    }
    w2 = _normal(ks[9], (DOMAINS, 2, HIDDEN, LABELS))
    p["cls_w2"] = jnp.pad(
        w2, ((0, 0), (0, 0), (0, 0), (0, LABELS_PAD - LABELS)))
    return p


# ----------------------------- EBertClassifierDACoordinated.forward ----------
def da_coordinated_forward(params, input_batch, apply_softmax=False):
    """'task_list' branch: one logits tensor per private head + per shared head.
    apply_softmax is accepted but unused, matching the PyTorch forward."""
    del apply_softmax
    x, mask, ttype = input_batch["x"], input_batch["mask"], input_batch["type"]
    Bb, Ss = x.shape

    # per-domain embedding gathers (data-dependent lookups stay in JAX glue)
    flat_ids = x.reshape(-1)
    flat_pos = jnp.tile(jnp.arange(Ss, dtype=jnp.int32), Bb)
    flat_type = ttype.reshape(-1)
    emb = (params["word_emb"][:, flat_ids, :]
           + params["pos_emb"][:, flat_pos, :]
           + params["type_emb"][:, flat_type, :])            # (D, B*S, H)

    logits_pad = fused_da_forward(emb, mask.astype(jnp.float32), params)

    logits = []
    # private heads: cls[d](pool(bert[d](x)))
    for d in range(DOMAINS):
        logits.append(logits_pad[d, 0, :, :LABELS])
    # shared heads: __encoder(self.bert, d) == bert[d] (all encoders distinct)
    for d in range(DOMAINS):
        logits.append(logits_pad[d, 1, :, :LABELS])
    return {"logits": logits}


# ----------------------------- main -------------------------------------------
if __name__ == "__main__":
    key = jax.random.PRNGKey(0)
    pkey, ikey = jax.random.split(key)

    params = init_model_params(pkey)

    input_ids = jax.random.randint(ikey, (B, S), 0, VOCAB, dtype=jnp.int32)
    attention_mask = jnp.ones((B, S), dtype=jnp.float32)
    token_type_ids = jnp.zeros((B, S), dtype=jnp.int32)

    fwd = jax.jit(
        lambda p, x, m, t: da_coordinated_forward(
            p, {"x": x, "mask": m, "type": t, "task_list": True},
            apply_softmax=False)
    )
    out = fwd(params, input_ids, attention_mask, token_type_ids)
    out = jax.block_until_ready(out)

    assert len(out["logits"]) == 2 * DOMAINS
    for lg in out["logits"]:
        assert lg.shape == (B, LABELS)
        assert bool(jnp.all(jnp.isfinite(lg)))
    print("KERNEL_OK")
</pallas_src>

<mosaic_0001>
module attributes {stable_mosaic.version = 11 : i64} {
  func.func @_fused_da_kernel(%arg0: i32, %arg1: memref<1x16x32xf32, #tpu.memory_space<vmem>>, %arg2: memref<2x8xf32, #tpu.memory_space<vmem>>, %arg3: memref<1x1x32xf32, #tpu.memory_space<vmem>>, %arg4: memref<1x1x32xf32, #tpu.memory_space<vmem>>, %arg5: memref<1x2x32x96xf32, #tpu.memory_space<vmem>>, %arg6: memref<1x2x1x96xf32, #tpu.memory_space<vmem>>, %arg7: memref<1x2x32x32xf32, #tpu.memory_space<vmem>>, %arg8: memref<1x2x1x32xf32, #tpu.memory_space<vmem>>, %arg9: memref<1x2x1x32xf32, #tpu.memory_space<vmem>>, %arg10: memref<1x2x1x32xf32, #tpu.memory_space<vmem>>, %arg11: memref<1x2x32x64xf32, #tpu.memory_space<vmem>>, %arg12: memref<1x2x1x64xf32, #tpu.memory_space<vmem>>, %arg13: memref<1x2x64x32xf32, #tpu.memory_space<vmem>>, %arg14: memref<1x2x1x32xf32, #tpu.memory_space<vmem>>, %arg15: memref<1x2x1x32xf32, #tpu.memory_space<vmem>>, %arg16: memref<1x2x1x32xf32, #tpu.memory_space<vmem>>, %arg17: memref<1x32x32xf32, #tpu.memory_space<vmem>>, %arg18: memref<1x1x32xf32, #tpu.memory_space<vmem>>, %arg19: memref<1x2x32x32xf32, #tpu.memory_space<vmem>>, %arg20: memref<1x2x1x32xf32, #tpu.memory_space<vmem>>, %arg21: memref<1x2x32x128xf32, #tpu.memory_space<vmem>>, %arg22: memref<1x2x1x128xf32, #tpu.memory_space<vmem>>, %arg23: memref<1x2x2x128xf32, #tpu.memory_space<vmem>>) attributes {dimension_semantics = [#tpu.dimension_semantics<parallel>], iteration_bounds = array<i64: 2>, scalar_prefetch = 0 : i64, scratch_operands = 0 : i64, tpu.core_type = #tpu.core_type<tc>, window_params = [{transform_indices = @transform_0, window_bounds = array<i64: 1, 16, 32>}, {pipeline_mode = #tpu.pipeline_mode<synchronous>, transform_indices = @transform_1, window_bounds = array<i64: 2, 8>}, {transform_indices = @transform_2, window_bounds = array<i64: 1, 1, 32>}, {transform_indices = @transform_3, window_bounds = array<i64: 1, 1, 32>}, {transform_indices = @transform_4, window_bounds = array<i64: 1, 2, 32, 96>}, {transform_indices = @transform_5, window_bounds = array<i64: 1, 2, 1, 96>}, {transform_indices = @transform_6, window_bounds = array<i64: 1, 2, 32, 32>}, {transform_indices = @transform_7, window_bounds = array<i64: 1, 2, 1, 32>}, {transform_indices = @transform_8, window_bounds = array<i64: 1, 2, 1, 32>}, {transform_indices = @transform_9, window_bounds = array<i64: 1, 2, 1, 32>}, {transform_indices = @transform_10, window_bounds = array<i64: 1, 2, 32, 64>}, {transform_indices = @transform_11, window_bounds = array<i64: 1, 2, 1, 64>}, {transform_indices = @transform_12, window_bounds = array<i64: 1, 2, 64, 32>}, {transform_indices = @transform_13, window_bounds = array<i64: 1, 2, 1, 32>}, {transform_indices = @transform_14, window_bounds = array<i64: 1, 2, 1, 32>}, {transform_indices = @transform_15, window_bounds = array<i64: 1, 2, 1, 32>}, {transform_indices = @transform_16, window_bounds = array<i64: 1, 32, 32>}, {transform_indices = @transform_17, window_bounds = array<i64: 1, 1, 32>}, {transform_indices = @transform_18, window_bounds = array<i64: 1, 2, 32, 32>}, {transform_indices = @transform_19, window_bounds = array<i64: 1, 2, 1, 32>}, {transform_indices = @transform_20, window_bounds = array<i64: 1, 2, 32, 128>}, {transform_indices = @transform_21, window_bounds = array<i64: 1, 2, 1, 128>}, {transform_indices = @transform_22, window_bounds = array<i64: 1, 2, 2, 128>}]} {
    %c0 = arith.constant 0 : index
    %c0_0 = arith.constant 0 : index
    %c0_1 = arith.constant 0 : index
    %0 = vector.load %arg1[%c0, %c0_0, %c0_1] : memref<1x16x32xf32, #tpu.memory_space<vmem>>, vector<1x16x32xf32>
    %1 = vector.shape_cast %0 : vector<1x16x32xf32> to vector<16x32xf32>
    %c0_2 = arith.constant 0 : index
    %c0_3 = arith.constant 0 : index
    %c0_4 = arith.constant 0 : index
    %2 = vector.load %arg3[%c0_2, %c0_3, %c0_4] : memref<1x1x32xf32, #tpu.memory_space<vmem>>, vector<1x1x32xf32>
    %3 = vector.shape_cast %2 : vector<1x1x32xf32> to vector<1x32xf32>
    %c0_5 = arith.constant 0 : index
    %c0_6 = arith.constant 0 : index
    %c0_7 = arith.constant 0 : index
    %4 = vector.load %arg4[%c0_5, %c0_6, %c0_7] : memref<1x1x32xf32, #tpu.memory_space<vmem>>, vector<1x1x32xf32>
    %5 = vector.shape_cast %4 : vector<1x1x32xf32> to vector<1x32xf32>
    %cst = arith.constant dense<0.000000e+00> : vector<16xf32>
    %6 = vector.multi_reduction <add>, %1, %cst [1] : vector<16x32xf32> to vector<16xf32>
    %7 = vector.shape_cast %6 : vector<16xf32> to vector<16x1xf32>
    %cst_8 = arith.constant 3.200000e+01 : f32
    %8 = vector.broadcast %cst_8 : f32 to vector<16x1xf32>
    %9 = arith.divf %7, %8 : vector<16x1xf32>
    %10 = vector.broadcast %9 : vector<16x1xf32> to vector<16x32xf32>
    %11 = arith.subf %1, %10 : vector<16x32xf32>
    %12 = arith.mulf %11, %11 : vector<16x32xf32>
    %cst_9 = arith.constant dense<0.000000e+00> : vector<16xf32>
    %13 = vector.multi_reduction <add>, %12, %cst_9 [1] : vector<16x32xf32> to vector<16xf32>
    %14 = vector.shape_cast %13 : vector<16xf32> to vector<16x1xf32>
    %cst_10 = arith.constant 3.200000e+01 : f32
    %15 = vector.broadcast %cst_10 : f32 to vector<16x1xf32>
    %16 = arith.divf %14, %15 : vector<16x1xf32>
    %17 = vector.broadcast %9 : vector<16x1xf32> to vector<16x32xf32>
    %18 = arith.subf %1, %17 : vector<16x32xf32>
    %cst_11 = arith.constant 9.99999996E-13 : f32
    %19 = vector.broadcast %cst_11 : f32 to vector<16x1xf32>
    %20 = arith.addf %16, %19 : vector<16x1xf32>
    %21 = math.rsqrt %20 : vector<16x1xf32>
    %22 = vector.broadcast %21 : vector<16x1xf32> to vector<16x32xf32>
    %23 = arith.mulf %18, %22 : vector<16x32xf32>
    %24 = vector.broadcast %3 : vector<1x32xf32> to vector<16x32xf32>
    %25 = arith.mulf %23, %24 : vector<16x32xf32>
    %26 = vector.broadcast %5 : vector<1x32xf32> to vector<16x32xf32>
    %27 = arith.addf %25, %26 : vector<16x32xf32>
    %c0_12 = arith.constant 0 : index
    %c0_13 = arith.constant 0 : index
    %28 = vector.load %arg2[%c0_12, %c0_13] : memref<2x8xf32, #tpu.memory_space<vmem>>, vector<2x8xf32>
    %cst_14 = arith.constant 1.000000e+00 : f32
    %29 = vector.broadcast %cst_14 : f32 to vector<2x8xf32>
    %30 = arith.subf %29, %28 : vector<2x8xf32>
    %cst_15 = arith.constant -1.000000e+04 : f32
    %31 = vector.broadcast %cst_15 : f32 to vector<2x8xf32>
    %32 = arith.mulf %30, %31 : vector<2x8xf32>
    %c0_16 = arith.constant 0 : index
    %c0_17 = arith.constant 0 : index
    %c0_18 = arith.constant 0 : index
    %c0_19 = arith.constant 0 : index
    %33 = vector.load %arg5[%c0_16, %c0_17, %c0_18, %c0_19] : memref<1x2x32x96xf32, #tpu.memory_space<vmem>>, vector<1x1x32x96xf32>
    %34 = vector.shape_cast %33 : vector<1x1x32x96xf32> to vector<32x96xf32>
    %cst_20 = arith.constant dense<0.000000e+00> : vector<16x96xf32>
    %35 = tpu.matmul %27, %34, %cst_20 {dimension_numbers = #tpu.dot_dimension_numbers<[1], [0], [0], [1], [0, 0, 1, 1], [], []>} : vector<16x32xf32>, vector<32x96xf32>, vector<16x96xf32> -> vector<16x96xf32>
    %c0_21 = arith.constant 0 : index
    %c0_22 = arith.constant 0 : index
    %c0_23 = arith.constant 0 : index
    %c0_24 = arith.constant 0 : index
    %36 = vector.load %arg6[%c0_21, %c0_22, %c0_23, %c0_24] : memref<1x2x1x96xf32, #tpu.memory_space<vmem>>, vector<1x1x1x96xf32>
    %37 = vector.shape_cast %36 : vector<1x1x1x96xf32> to vector<1x96xf32>
    %38 = vector.broadcast %37 : vector<1x96xf32> to vector<16x96xf32>
    %39 = arith.addf %35, %38 : vector<16x96xf32>
    %40 = vector.extract_strided_slice %32 {offsets = [0, 0], sizes = [1, 8], strides = [1, 1]} : vector<2x8xf32> to vector<1x8xf32>
    %41 = vector.extract_strided_slice %39 {offsets = [0, 0], sizes = [8, 8], strides = [1, 1]} : vector<16x96xf32> to vector<8x8xf32>
    %42 = vector.extract_strided_slice %39 {offsets = [0, 32], sizes = [8, 8], strides = [1, 1]} : vector<16x96xf32> to vector<8x8xf32>
    %43 = vector.extract_strided_slice %39 {offsets = [0, 64], sizes = [8, 8], strides = [1, 1]} : vector<16x96xf32> to vector<8x8xf32>
    %cst_25 = arith.constant dense<0.000000e+00> : vector<8x8xf32>
    %44 = tpu.matmul %41, %42, %cst_25 {dimension_numbers = #tpu.dot_dimension_numbers<[1], [1], [0], [0], [0, 0, 1, 0], [], []>} : vector<8x8xf32>, vector<8x8xf32>, vector<8x8xf32> -> vector<8x8xf32>
    %cst_26 = arith.constant 0.353553385 : f32
    %45 = vector.broadcast %cst_26 : f32 to vector<8x8xf32>
    %46 = arith.mulf %44, %45 : vector<8x8xf32>
    %47 = vector.broadcast %40 : vector<1x8xf32> to vector<8x8xf32>
    %48 = arith.addf %46, %47 : vector<8x8xf32>
    %cst_27 = arith.constant dense<0xFF800000> : vector<8xf32>
    %49 = vector.multi_reduction <maximumf>, %48, %cst_27 [1] : vector<8x8xf32> to vector<8xf32>
    %50 = vector.shape_cast %49 : vector<8xf32> to vector<8x1xf32>
    %51 = vector.broadcast %50 : vector<8x1xf32> to vector<8x8xf32>
    %52 = arith.subf %48, %51 : vector<8x8xf32>
    %53 = math.exp %52 : vector<8x8xf32>
    %cst_28 = arith.constant dense<0.000000e+00> : vector<8xf32>
    %54 = vector.multi_reduction <add>, %53, %cst_28 [1] : vector<8x8xf32> to vector<8xf32>
    %55 = vector.shape_cast %54 : vector<8xf32> to vector<8x1xf32>
    %56 = tpu.reciprocal %55 {approx = true} : vector<8x1xf32> -> vector<8x1xf32>
    %57 = vector.broadcast %56 : vector<8x1xf32> to vector<8x8xf32>
    %58 = arith.mulf %53, %57 : vector<8x8xf32>
    %cst_29 = arith.constant dense<0.000000e+00> : vector<8x8xf32>
    %59 = tpu.matmul %58, %43, %cst_29 {dimension_numbers = #tpu.dot_dimension_numbers<[1], [0], [0], [1], [0, 0, 1, 1], [], []>} : vector<8x8xf32>, vector<8x8xf32>, vector<8x8xf32> -> vector<8x8xf32>
    %c0_30 = arith.constant 0 : index
    %c0_31 = arith.constant 0 : index
    %c0_32 = arith.constant 0 : index
    %c0_33 = arith.constant 0 : index
    %60 = vector.load %arg7[%c0_30, %c0_31, %c0_32, %c0_33] : memref<1x2x32x32xf32, #tpu.memory_space<vmem>>, vector<1x1x32x32xf32>
    %61 = vector.shape_cast %60 : vector<1x1x32x32xf32> to vector<32x32xf32>
    %62 = vector.extract_strided_slice %61 {offsets = [0, 0], sizes = [8, 32], strides = [1, 1]} : vector<32x32xf32> to vector<8x32xf32>
    %cst_34 = arith.constant dense<0.000000e+00> : vector<8x32xf32>
    %63 = tpu.matmul %59, %62, %cst_34 {dimension_numbers = #tpu.dot_dimension_numbers<[1], [0], [0], [1], [0, 0, 1, 1], [], []>} : vector<8x8xf32>, vector<8x32xf32>, vector<8x32xf32> -> vector<8x32xf32>
    %64 = vector.extract_strided_slice %39 {offsets = [0, 8], sizes = [8, 8], strides = [1, 1]} : vector<16x96xf32> to vector<8x8xf32>
    %65 = vector.extract_strided_slice %39 {offsets = [0, 40], sizes = [8, 8], strides = [1, 1]} : vector<16x96xf32> to vector<8x8xf32>
    %66 = vector.extract_strided_slice %39 {offsets = [0, 72], sizes = [8, 8], strides = [1, 1]} : vector<16x96xf32> to vector<8x8xf32>
    %cst_35 = arith.constant dense<0.000000e+00> : vector<8x8xf32>
    %67 = tpu.matmul %64, %65, %cst_35 {dimension_numbers = #tpu.dot_dimension_numbers<[1], [1], [0], [0], [0, 0, 1, 0], [], []>} : vector<8x8xf32>, vector<8x8xf32>, vector<8x8xf32> -> vector<8x8xf32>
    %cst_36 = arith.constant 0.353553385 : f32
    %68 = vector.broadcast %cst_36 : f32 to vector<8x8xf32>
    %69 = arith.mulf %67, %68 : vector<8x8xf32>
    %70 = vector.broadcast %40 : vector<1x8xf32> to vector<8x8xf32>
    %71 = arith.addf %69, %70 : vector<8x8xf32>
    %cst_37 = arith.constant dense<0xFF800000> : vector<8xf32>
    %72 = vector.multi_reduction <maximumf>, %71, %cst_37 [1] : vector<8x8xf32> to vector<8xf32>
    %73 = vector.shape_cast %72 : vector<8xf32> to vector<8x1xf32>
    %74 = vector.broadcast %73 : vector<8x1xf32> to vector<8x8xf32>
    %75 = arith.subf %71, %74 : vector<8x8xf32>
    %76 = math.exp %75 : vector<8x8xf32>
    %cst_38 = arith.constant dense<0.000000e+00> : vector<8xf32>
    %77 = vector.multi_reduction <add>, %76, %cst_38 [1] : vector<8x8xf32> to vector<8xf32>
    %78 = vector.shape_cast %77 : vector<8xf32> to vector<8x1xf32>
    %79 = tpu.reciprocal %78 {approx = true} : vector<8x1xf32> -> vector<8x1xf32>
    %80 = vector.broadcast %79 : vector<8x1xf32> to vector<8x8xf32>
    %81 = arith.mulf %76, %80 : vector<8x8xf32>
    %cst_39 = arith.constant dense<0.000000e+00> : vector<8x8xf32>
    %82 = tpu.matmul %81, %66, %cst_39 {dimension_numbers = #tpu.dot_dimension_numbers<[1], [0], [0], [1], [0, 0, 1, 1], [], []>} : vector<8x8xf32>, vector<8x8xf32>, vector<8x8xf32> -> vector<8x8xf32>
    %c0_40 = arith.constant 0 : index
    %c0_41 = arith.constant 0 : index
    %c0_42 = arith.constant 0 : index
    %c0_43 = arith.constant 0 : index
    %83 = vector.load %arg7[%c0_40, %c0_41, %c0_42, %c0_43] : memref<1x2x32x32xf32, #tpu.memory_space<vmem>>, vector<1x1x32x32xf32>
    %84 = vector.shape_cast %83 : vector<1x1x32x32xf32> to vector<32x32xf32>
    %85 = vector.extract_strided_slice %84 {offsets = [8, 0], sizes = [8, 32], strides = [1, 1]} : vector<32x32xf32> to vector<8x32xf32>
    %cst_44 = arith.constant dense<0.000000e+00> : vector<8x32xf32>
    %86 = tpu.matmul %82, %85, %cst_44 {dimension_numbers = #tpu.dot_dimension_numbers<[1], [0], [0], [1], [0, 0, 1, 1], [], []>} : vector<8x8xf32>, vector<8x32xf32>, vector<8x32xf32> -> vector<8x32xf32>
    %87 = arith.addf %63, %86 : vector<8x32xf32>
    %88 = vector.extract_strided_slice %39 {offsets = [0, 16], sizes = [8, 8], strides = [1, 1]} : vector<16x96xf32> to vector<8x8xf32>
    %89 = vector.extract_strided_slice %39 {offsets = [0, 48], sizes = [8, 8], strides = [1, 1]} : vector<16x96xf32> to vector<8x8xf32>
    %90 = vector.extract_strided_slice %39 {offsets = [0, 80], sizes = [8, 8], strides = [1, 1]} : vector<16x96xf32> to vector<8x8xf32>
    %cst_45 = arith.constant dense<0.000000e+00> : vector<8x8xf32>
    %91 = tpu.matmul %88, %89, %cst_45 {dimension_numbers = #tpu.dot_dimension_numbers<[1], [1], [0], [0], [0, 0, 1, 0], [], []>} : vector<8x8xf32>, vector<8x8xf32>, vector<8x8xf32> -> vector<8x8xf32>
    %cst_46 = arith.constant 0.353553385 : f32
    %92 = vector.broadcast %cst_46 : f32 to vector<8x8xf32>
    %93 = arith.mulf %91, %92 : vector<8x8xf32>
    %94 = vector.broadcast %40 : vector<1x8xf32> to vector<8x8xf32>
    %95 = arith.addf %93, %94 : vector<8x8xf32>
    %cst_47 = arith.constant dense<0xFF800000> : vector<8xf32>
    %96 = vector.multi_reduction <maximumf>, %95, %cst_47 [1] : vector<8x8xf32> to vector<8xf32>
    %97 = vector.shape_cast %96 : vector<8xf32> to vector<8x1xf32>
    %98 = vector.broadcast %97 : vector<8x1xf32> to vector<8x8xf32>
    %99 = arith.subf %95, %98 : vector<8x8xf32>
    %100 = math.exp %99 : vector<8x8xf32>
    %cst_48 = arith.constant dense<0.000000e+00> : vector<8xf32>
    %101 = vector.multi_reduction <add>, %100, %cst_48 [1] : vector<8x8xf32> to vector<8xf32>
    %102 = vector.shape_cast %101 : vector<8xf32> to vector<8x1xf32>
    %103 = tpu.reciprocal %102 {approx = true} : vector<8x1xf32> -> vector<8x1xf32>
    %104 = vector.broadcast %103 : vector<8x1xf32> to vector<8x8xf32>
    %105 = arith.mulf %100, %104 : vector<8x8xf32>
    %cst_49 = arith.constant dense<0.000000e+00> : vector<8x8xf32>
    %106 = tpu.matmul %105, %90, %cst_49 {dimension_numbers = #tpu.dot_dimension_numbers<[1], [0], [0], [1], [0, 0, 1, 1], [], []>} : vector<8x8xf32>, vector<8x8xf32>, vector<8x8xf32> -> vector<8x8xf32>
    %c0_50 = arith.constant 0 : index
    %c0_51 = arith.constant 0 : index
    %c0_52 = arith.constant 0 : index
    %c0_53 = arith.constant 0 : index
    %107 = vector.load %arg7[%c0_50, %c0_51, %c0_52, %c0_53] : memref<1x2x32x32xf32, #tpu.memory_space<vmem>>, vector<1x1x32x32xf32>
    %108 = vector.shape_cast %107 : vector<1x1x32x32xf32> to vector<32x32xf32>
    %109 = vector.extract_strided_slice %108 {offsets = [16, 0], sizes = [8, 32], strides = [1, 1]} : vector<32x32xf32> to vector<8x32xf32>
    %cst_54 = arith.constant dense<0.000000e+00> : vector<8x32xf32>
    %110 = tpu.matmul %106, %109, %cst_54 {dimension_numbers = #tpu.dot_dimension_numbers<[1], [0], [0], [1], [0, 0, 1, 1], [], []>} : vector<8x8xf32>, vector<8x32xf32>, vector<8x32xf32> -> vector<8x32xf32>
    %111 = arith.addf %87, %110 : vector<8x32xf32>
    %112 = vector.extract_strided_slice %39 {offsets = [0, 24], sizes = [8, 8], strides = [1, 1]} : vector<16x96xf32> to vector<8x8xf32>
    %113 = vector.extract_strided_slice %39 {offsets = [0, 56], sizes = [8, 8], strides = [1, 1]} : vector<16x96xf32> to vector<8x8xf32>
    %114 = vector.extract_strided_slice %39 {offsets = [0, 88], sizes = [8, 8], strides = [1, 1]} : vector<16x96xf32> to vector<8x8xf32>
    %cst_55 = arith.constant dense<0.000000e+00> : vector<8x8xf32>
    %115 = tpu.matmul %112, %113, %cst_55 {dimension_numbers = #tpu.dot_dimension_numbers<[1], [1], [0], [0], [0, 0, 1, 0], [], []>} : vector<8x8xf32>, vector<8x8xf32>, vector<8x8xf32> -> vector<8x8xf32>
    %cst_56 = arith.constant 0.353553385 : f32
    %116 = vector.broadcast %cst_56 : f32 to vector<8x8xf32>
    %117 = arith.mulf %115, %116 : vector<8x8xf32>
    %118 = vector.broadcast %40 : vector<1x8xf32> to vector<8x8xf32>
    %119 = arith.addf %117, %118 : vector<8x8xf32>
    %cst_57 = arith.constant dense<0xFF800000> : vector<8xf32>
    %120 = vector.multi_reduction <maximumf>, %119, %cst_57 [1] : vector<8x8xf32> to vector<8xf32>
    %121 = vector.shape_cast %120 : vector<8xf32> to vector<8x1xf32>
    %122 = vector.broadcast %121 : vector<8x1xf32> to vector<8x8xf32>
    %123 = arith.subf %119, %122 : vector<8x8xf32>
    %124 = math.exp %123 : vector<8x8xf32>
    %cst_58 = arith.constant dense<0.000000e+00> : vector<8xf32>
    %125 = vector.multi_reduction <add>, %124, %cst_58 [1] : vector<8x8xf32> to vector<8xf32>
    %126 = vector.shape_cast %125 : vector<8xf32> to vector<8x1xf32>
    %127 = tpu.reciprocal %126 {approx = true} : vector<8x1xf32> -> vector<8x1xf32>
    %128 = vector.broadcast %127 : vector<8x1xf32> to vector<8x8xf32>
    %129 = arith.mulf %124, %128 : vector<8x8xf32>
    %cst_59 = arith.constant dense<0.000000e+00> : vector<8x8xf32>
    %130 = tpu.matmul %129, %114, %cst_59 {dimension_numbers = #tpu.dot_dimension_numbers<[1], [0], [0], [1], [0, 0, 1, 1], [], []>} : vector<8x8xf32>, vector<8x8xf32>, vector<8x8xf32> -> vector<8x8xf32>
    %c0_60 = arith.constant 0 : index
    %c0_61 = arith.constant 0 : index
    %c0_62 = arith.constant 0 : index
    %c0_63 = arith.constant 0 : index
    %131 = vector.load %arg7[%c0_60, %c0_61, %c0_62, %c0_63] : memref<1x2x32x32xf32, #tpu.memory_space<vmem>>, vector<1x1x32x32xf32>
    %132 = vector.shape_cast %131 : vector<1x1x32x32xf32> to vector<32x32xf32>
    %133 = vector.extract_strided_slice %132 {offsets = [24, 0], sizes = [8, 32], strides = [1, 1]} : vector<32x32xf32> to vector<8x32xf32>
    %cst_64 = arith.constant dense<0.000000e+00> : vector<8x32xf32>
    %134 = tpu.matmul %130, %133, %cst_64 {dimension_numbers = #tpu.dot_dimension_numbers<[1], [0], [0], [1], [0, 0, 1, 1], [], []>} : vector<8x8xf32>, vector<8x32xf32>, vector<8x32xf32> -> vector<8x32xf32>
    %135 = arith.addf %111, %134 : vector<8x32xf32>
    %136 = vector.extract_strided_slice %32 {offsets = [1, 0], sizes = [1, 8], strides = [1, 1]} : vector<2x8xf32> to vector<1x8xf32>
    %137 = vector.extract_strided_slice %39 {offsets = [8, 0], sizes = [8, 8], strides = [1, 1]} : vector<16x96xf32> to vector<8x8xf32>
    %138 = vector.extract_strided_slice %39 {offsets = [8, 32], sizes = [8, 8], strides = [1, 1]} : vector<16x96xf32> to vector<8x8xf32>
    %139 = vector.extract_strided_slice %39 {offsets = [8, 64], sizes = [8, 8], strides = [1, 1]} : vector<16x96xf32> to vector<8x8xf32>
    %cst_65 = arith.constant dense<0.000000e+00> : vector<8x8xf32>
    %140 = tpu.matmul %137, %138, %cst_65 {dimension_numbers = #tpu.dot_dimension_numbers<[1], [1], [0], [0], [0, 0, 1, 0], [], []>} : vector<8x8xf32>, vector<8x8xf32>, vector<8x8xf32> -> vector<8x8xf32>
    %cst_66 = arith.constant 0.353553385 : f32
    %141 = vector.broadcast %cst_66 : f32 to vector<8x8xf32>
    %142 = arith.mulf %140, %141 : vector<8x8xf32>
    %143 = vector.broadcast %136 : vector<1x8xf32> to vector<8x8xf32>
    %144 = arith.addf %142, %143 : vector<8x8xf32>
    %cst_67 = arith.constant dense<0xFF800000> : vector<8xf32>
    %145 = vector.multi_reduction <maximumf>, %144, %cst_67 [1] : vector<8x8xf32> to vector<8xf32>
    %146 = vector.shape_cast %145 : vector<8xf32> to vector<8x1xf32>
    %147 = vector.broadcast %146 : vector<8x1xf32> to vector<8x8xf32>
    %148 = arith.subf %144, %147 : vector<8x8xf32>
    %149 = math.exp %148 : vector<8x8xf32>
    %cst_68 = arith.constant dense<0.000000e+00> : vector<8xf32>
    %150 = vector.multi_reduction <add>, %149, %cst_68 [1] : vector<8x8xf32> to vector<8xf32>
    %151 = vector.shape_cast %150 : vector<8xf32> to vector<8x1xf32>
    %152 = tpu.reciprocal %151 {approx = true} : vector<8x1xf32> -> vector<8x1xf32>
    %153 = vector.broadcast %152 : vector<8x1xf32> to vector<8x8xf32>
    %154 = arith.mulf %149, %153 : vector<8x8xf32>
    %cst_69 = arith.constant dense<0.000000e+00> : vector<8x8xf32>
    %155 = tpu.matmul %154, %139, %cst_69 {dimension_numbers = #tpu.dot_dimension_numbers<[1], [0], [0], [1], [0, 0, 1, 1], [], []>} : vector<8x8xf32>, vector<8x8xf32>, vector<8x8xf32> -> vector<8x8xf32>
    %c0_70 = arith.constant 0 : index
    %c0_71 = arith.constant 0 : index
    %c0_72 = arith.constant 0 : index
    %c0_73 = arith.constant 0 : index
    %156 = vector.load %arg7[%c0_70, %c0_71, %c0_72, %c0_73] : memref<1x2x32x32xf32, #tpu.memory_space<vmem>>, vector<1x1x32x32xf32>
    %157 = vector.shape_cast %156 : vector<1x1x32x32xf32> to vector<32x32xf32>
    %158 = vector.extract_strided_slice %157 {offsets = [0, 0], sizes = [8, 32], strides = [1, 1]} : vector<32x32xf32> to vector<8x32xf32>
    %cst_74 = arith.constant dense<0.000000e+00> : vector<8x32xf32>
    %159 = tpu.matmul %155, %158, %cst_74 {dimension_numbers = #tpu.dot_dimension_numbers<[1], [0], [0], [1], [0, 0, 1, 1], [], []>} : vector<8x8xf32>, vector<8x32xf32>, vector<8x32xf32> -> vector<8x32xf32>
    %160 = vector.extract_strided_slice %39 {offsets = [8, 8], sizes = [8, 8], strides = [1, 1]} : vector<16x96xf32> to vector<8x8xf32>
    %161 = vector.extract_strided_slice %39 {offsets = [8, 40], sizes = [8, 8], strides = [1, 1]} : vector<16x96xf32> to vector<8x8xf32>
    %162 = vector.extract_strided_slice %39 {offsets = [8, 72], sizes = [8, 8], strides = [1, 1]} : vector<16x96xf32> to vector<8x8xf32>
    %cst_75 = arith.constant dense<0.000000e+00> : vector<8x8xf32>
    %163 = tpu.matmul %160, %161, %cst_75 {dimension_numbers = #tpu.dot_dimension_numbers<[1], [1], [0], [0], [0, 0, 1, 0], [], []>} : vector<8x8xf32>, vector<8x8xf32>, vector<8x8xf32> -> vector<8x8xf32>
    %cst_76 = arith.constant 0.353553385 : f32
    %164 = vector.broadcast %cst_76 : f32 to vector<8x8xf32>
    %165 = arith.mulf %163, %164 : vector<8x8xf32>
    %166 = vector.broadcast %136 : vector<1x8xf32> to vector<8x8xf32>
    %167 = arith.addf %165, %166 : vector<8x8xf32>
    %cst_77 = arith.constant dense<0xFF800000> : vector<8xf32>
    %168 = vector.multi_reduction <maximumf>, %167, %cst_77 [1] : vector<8x8xf32> to vector<8xf32>
    %169 = vector.shape_cast %168 : vector<8xf32> to vector<8x1xf32>
    %170 = vector.broadcast %169 : vector<8x1xf32> to vector<8x8xf32>
    %171 = arith.subf %167, %170 : vector<8x8xf32>
    %172 = math.exp %171 : vector<8x8xf32>
    %cst_78 = arith.constant dense<0.000000e+00> : vector<8xf32>
    %173 = vector.multi_reduction <add>, %172, %cst_78 [1] : vector<8x8xf32> to vector<8xf32>
    %174 = vector.shape_cast %173 : vector<8xf32> to vector<8x1xf32>
    %175 = tpu.reciprocal %174 {approx = true} : vector<8x1xf32> -> vector<8x1xf32>
    %176 = vector.broadcast %175 : vector<8x1xf32> to vector<8x8xf32>
    %177 = arith.mulf %172, %176 : vector<8x8xf32>
    %cst_79 = arith.constant dense<0.000000e+00> : vector<8x8xf32>
    %178 = tpu.matmul %177, %162, %cst_79 {dimension_numbers = #tpu.dot_dimension_numbers<[1], [0], [0], [1], [0, 0, 1, 1], [], []>} : vector<8x8xf32>, vector<8x8xf32>, vector<8x8xf32> -> vector<8x8xf32>
    %c0_80 = arith.constant 0 : index
    %c0_81 = arith.constant 0 : index
    %c0_82 = arith.constant 0 : index
    %c0_83 = arith.constant 0 : index
    %179 = vector.load %arg7[%c0_80, %c0_81, %c0_82, %c0_83] : memref<1x2x32x32xf32, #tpu.memory_space<vmem>>, vector<1x1x32x32xf32>
    %180 = vector.shape_cast %179 : vector<1x1x32x32xf32> to vector<32x32xf32>
    %181 = vector.extract_strided_slice %180 {offsets = [8, 0], sizes = [8, 32], strides = [1, 1]} : vector<32x32xf32> to vector<8x32xf32>
    %cst_84 = arith.constant dense<0.000000e+00> : vector<8x32xf32>
    %182 = tpu.matmul %178, %181, %cst_84 {dimension_numbers = #tpu.dot_dimension_numbers<[1], [0], [0], [1], [0, 0, 1, 1], [], []>} : vector<8x8xf32>, vector<8x32xf32>, vector<8x32xf32> -> vector<8x32xf32>
    %183 = arith.addf %159, %182 : vector<8x32xf32>
    %184 = vector.extract_strided_slice %39 {offsets = [8, 16], sizes = [8, 8], strides = [1, 1]} : vector<16x96xf32> to vector<8x8xf32>
    %185 = vector.extract_strided_slice %39 {offsets = [8, 48], sizes = [8, 8], strides = [1, 1]} : vector<16x96xf32> to vector<8x8xf32>
    %186 = vector.extract_strided_slice %39 {offsets = [8, 80], sizes = [8, 8], strides = [1, 1]} : vector<16x96xf32> to vector<8x8xf32>
    %cst_85 = arith.constant dense<0.000000e+00> : vector<8x8xf32>
    %187 = tpu.matmul %184, %185, %cst_85 {dimension_numbers = #tpu.dot_dimension_numbers<[1], [1], [0], [0], [0, 0, 1, 0], [], []>} : vector<8x8xf32>, vector<8x8xf32>, vector<8x8xf32> -> vector<8x8xf32>
    %cst_86 = arith.constant 0.353553385 : f32
    %188 = vector.broadcast %cst_86 : f32 to vector<8x8xf32>
    %189 = arith.mulf %187, %188 : vector<8x8xf32>
    %190 = vector.broadcast %136 : vector<1x8xf32> to vector<8x8xf32>
    %191 = arith.addf %189, %190 : vector<8x8xf32>
    %cst_87 = arith.constant dense<0xFF800000> : vector<8xf32>
    %192 = vector.multi_reduction <maximumf>, %191, %cst_87 [1] : vector<8x8xf32> to vector<8xf32>
    %193 = vector.shape_cast %192 : vector<8xf32> to vector<8x1xf32>
    %194 = vector.broadcast %193 : vector<8x1xf32> to vector<8x8xf32>
    %195 = arith.subf %191, %194 : vector<8x8xf32>
    %196 = math.exp %195 : vector<8x8xf32>
    %cst_88 = arith.constant dense<0.000000e+00> : vector<8xf32>
    %197 = vector.multi_reduction <add>, %196, %cst_88 [1] : vector<8x8xf32> to vector<8xf32>
    %198 = vector.shape_cast %197 : vector<8xf32> to vector<8x1xf32>
    %199 = tpu.reciprocal %198 {approx = true} : vector<8x1xf32> -> vector<8x1xf32>
    %200 = vector.broadcast %199 : vector<8x1xf32> to vector<8x8xf32>
    %201 = arith.mulf %196, %200 : vector<8x8xf32>
    %cst_89 = arith.constant dense<0.000000e+00> : vector<8x8xf32>
    %202 = tpu.matmul %201, %186, %cst_89 {dimension_numbers = #tpu.dot_dimension_numbers<[1], [0], [0], [1], [0, 0, 1, 1], [], []>} : vector<8x8xf32>, vector<8x8xf32>, vector<8x8xf32> -> vector<8x8xf32>
    %c0_90 = arith.constant 0 : index
    %c0_91 = arith.constant 0 : index
    %c0_92 = arith.constant 0 : index
    %c0_93 = arith.constant 0 : index
    %203 = vector.load %arg7[%c0_90, %c0_91, %c0_92, %c0_93] : memref<1x2x32x32xf32, #tpu.memory_space<vmem>>, vector<1x1x32x32xf32>
    %204 = vector.shape_cast %203 : vector<1x1x32x32xf32> to vector<32x32xf32>
    %205 = vector.extract_strided_slice %204 {offsets = [16, 0], sizes = [8, 32], strides = [1, 1]} : vector<32x32xf32> to vector<8x32xf32>
    %cst_94 = arith.constant dense<0.000000e+00> : vector<8x32xf32>
    %206 = tpu.matmul %202, %205, %cst_94 {dimension_numbers = #tpu.dot_dimension_numbers<[1], [0], [0], [1], [0, 0, 1, 1], [], []>} : vector<8x8xf32>, vector<8x32xf32>, vector<8x32xf32> -> vector<8x32xf32>
    %207 = arith.addf %183, %206 : vector<8x32xf32>
    %208 = vector.extract_strided_slice %39 {offsets = [8, 24], sizes = [8, 8], strides = [1, 1]} : vector<16x96xf32> to vector<8x8xf32>
    %209 = vector.extract_strided_slice %39 {offsets = [8, 56], sizes = [8, 8], strides = [1, 1]} : vector<16x96xf32> to vector<8x8xf32>
    %210 = vector.extract_strided_slice %39 {offsets = [8, 88], sizes = [8, 8], strides = [1, 1]} : vector<16x96xf32> to vector<8x8xf32>
    %cst_95 = arith.constant dense<0.000000e+00> : vector<8x8xf32>
    %211 = tpu.matmul %208, %209, %cst_95 {dimension_numbers = #tpu.dot_dimension_numbers<[1], [1], [0], [0], [0, 0, 1, 0], [], []>} : vector<8x8xf32>, vector<8x8xf32>, vector<8x8xf32> -> vector<8x8xf32>
    %cst_96 = arith.constant 0.353553385 : f32
    %212 = vector.broadcast %cst_96 : f32 to vector<8x8xf32>
    %213 = arith.mulf %211, %212 : vector<8x8xf32>
    %214 = vector.broadcast %136 : vector<1x8xf32> to vector<8x8xf32>
    %215 = arith.addf %213, %214 : vector<8x8xf32>
    %cst_97 = arith.constant dense<0xFF800000> : vector<8xf32>
    %216 = vector.multi_reduction <maximumf>, %215, %cst_97 [1] : vector<8x8xf32> to vector<8xf32>
    %217 = vector.shape_cast %216 : vector<8xf32> to vector<8x1xf32>
    %218 = vector.broadcast %217 : vector<8x1xf32> to vector<8x8xf32>
    %219 = arith.subf %215, %218 : vector<8x8xf32>
    %220 = math.exp %219 : vector<8x8xf32>
    %cst_98 = arith.constant dense<0.000000e+00> : vector<8xf32>
    %221 = vector.multi_reduction <add>, %220, %cst_98 [1] : vector<8x8xf32> to vector<8xf32>
    %222 = vector.shape_cast %221 : vector<8xf32> to vector<8x1xf32>
    %223 = tpu.reciprocal %222 {approx = true} : vector<8x1xf32> -> vector<8x1xf32>
    %224 = vector.broadcast %223 : vector<8x1xf32> to vector<8x8xf32>
    %225 = arith.mulf %220, %224 : vector<8x8xf32>
    %cst_99 = arith.constant dense<0.000000e+00> : vector<8x8xf32>
    %226 = tpu.matmul %225, %210, %cst_99 {dimension_numbers = #tpu.dot_dimension_numbers<[1], [0], [0], [1], [0, 0, 1, 1], [], []>} : vector<8x8xf32>, vector<8x8xf32>, vector<8x8xf32> -> vector<8x8xf32>
    %c0_100 = arith.constant 0 : index
    %c0_101 = arith.constant 0 : index
    %c0_102 = arith.constant 0 : index
    %c0_103 = arith.constant 0 : index
    %227 = vector.load %arg7[%c0_100, %c0_101, %c0_102, %c0_103] : memref<1x2x32x32xf32, #tpu.memory_space<vmem>>, vector<1x1x32x32xf32>
    %228 = vector.shape_cast %227 : vector<1x1x32x32xf32> to vector<32x32xf32>
    %229 = vector.extract_strided_slice %228 {offsets = [24, 0], sizes = [8, 32], strides = [1, 1]} : vector<32x32xf32> to vector<8x32xf32>
    %cst_104 = arith.constant dense<0.000000e+00> : vector<8x32xf32>
    %230 = tpu.matmul %226, %229, %cst_104 {dimension_numbers = #tpu.dot_dimension_numbers<[1], [0], [0], [1], [0, 0, 1, 1], [], []>} : vector<8x8xf32>, vector<8x32xf32>, vector<8x32xf32> -> vector<8x32xf32>
    %231 = arith.addf %207, %230 : vector<8x32xf32>
    %232 = tpu.concatenate %135, %231 in 0 : vector<8x32xf32>, vector<8x32xf32> -> vector<16x32xf32>
    %c0_105 = arith.constant 0 : index
    %c0_106 = arith.constant 0 : index
    %c0_107 = arith.constant 0 : index
    %c0_108 = arith.constant 0 : index
    %233 = vector.load %arg8[%c0_105, %c0_106, %c0_107, %c0_108] : memref<1x2x1x32xf32, #tpu.memory_space<vmem>>, vector<1x1x1x32xf32>
    %234 = vector.shape_cast %233 : vector<1x1x1x32xf32> to vector<1x32xf32>
    %235 = vector.broadcast %234 : vector<1x32xf32> to vector<16x32xf32>
    %236 = arith.addf %232, %235 : vector<16x32xf32>
    %237 = arith.addf %236, %27 : vector<16x32xf32>
    %c0_109 = arith.constant 0 : index
    %c0_110 = arith.constant 0 : index
    %c0_111 = arith.constant 0 : index
    %c0_112 = arith.constant 0 : index
    %238 = vector.load %arg9[%c0_109, %c0_110, %c0_111, %c0_112] : memref<1x2x1x32xf32, #tpu.memory_space<vmem>>, vector<1x1x1x32xf32>
    %239 = vector.shape_cast %238 : vector<1x1x1x32xf32> to vector<1x32xf32>
    %c0_113 = arith.constant 0 : index
    %c0_114 = arith.constant 0 : index
    %c0_115 = arith.constant 0 : index
    %c0_116 = arith.constant 0 : index
    %240 = vector.load %arg10[%c0_113, %c0_114, %c0_115, %c0_116] : memref<1x2x1x32xf32, #tpu.memory_space<vmem>>, vector<1x1x1x32xf32>
    %241 = vector.shape_cast %240 : vector<1x1x1x32xf32> to vector<1x32xf32>
    %cst_117 = arith.constant dense<0.000000e+00> : vector<16xf32>
    %242 = vector.multi_reduction <add>, %237, %cst_117 [1] : vector<16x32xf32> to vector<16xf32>
    %243 = vector.shape_cast %242 : vector<16xf32> to vector<16x1xf32>
    %cst_118 = arith.constant 3.200000e+01 : f32
    %244 = vector.broadcast %cst_118 : f32 to vector<16x1xf32>
    %245 = arith.divf %243, %244 : vector<16x1xf32>
    %246 = vector.broadcast %245 : vector<16x1xf32> to vector<16x32xf32>
    %247 = arith.subf %237, %246 : vector<16x32xf32>
    %248 = arith.mulf %247, %247 : vector<16x32xf32>
    %cst_119 = arith.constant dense<0.000000e+00> : vector<16xf32>
    %249 = vector.multi_reduction <add>, %248, %cst_119 [1] : vector<16x32xf32> to vector<16xf32>
    %250 = vector.shape_cast %249 : vector<16xf32> to vector<16x1xf32>
    %cst_120 = arith.constant 3.200000e+01 : f32
    %251 = vector.broadcast %cst_120 : f32 to vector<16x1xf32>
    %252 = arith.divf %250, %251 : vector<16x1xf32>
    %253 = vector.broadcast %245 : vector<16x1xf32> to vector<16x32xf32>
    %254 = arith.subf %237, %253 : vector<16x32xf32>
    %cst_121 = arith.constant 9.99999996E-13 : f32
    %255 = vector.broadcast %cst_121 : f32 to vector<16x1xf32>
    %256 = arith.addf %252, %255 : vector<16x1xf32>
    %257 = math.rsqrt %256 : vector<16x1xf32>
    %258 = vector.broadcast %257 : vector<16x1xf32> to vector<16x32xf32>
    %259 = arith.mulf %254, %258 : vector<16x32xf32>
    %260 = vector.broadcast %239 : vector<1x32xf32> to vector<16x32xf32>
    %261 = arith.mulf %259, %260 : vector<16x32xf32>
    %262 = vector.broadcast %241 : vector<1x32xf32> to vector<16x32xf32>
    %263 = arith.addf %261, %262 : vector<16x32xf32>
    %c0_122 = arith.constant 0 : index
    %c0_123 = arith.constant 0 : index
    %c0_124 = arith.constant 0 : index
    %c0_125 = arith.constant 0 : index
    %264 = vector.load %arg11[%c0_122, %c0_123, %c0_124, %c0_125] : memref<1x2x32x64xf32, #tpu.memory_space<vmem>>, vector<1x1x32x64xf32>
    %265 = vector.shape_cast %264 : vector<1x1x32x64xf32> to vector<32x64xf32>
    %cst_126 = arith.constant dense<0.000000e+00> : vector<16x64xf32>
    %266 = tpu.matmul %263, %265, %cst_126 {dimension_numbers = #tpu.dot_dimension_numbers<[1], [0], [0], [1], [0, 0, 1, 1], [], []>} : vector<16x32xf32>, vector<32x64xf32>, vector<16x64xf32> -> vector<16x64xf32>
    %c0_127 = arith.constant 0 : index
    %c0_128 = arith.constant 0 : index
    %c0_129 = arith.constant 0 : index
    %c0_130 = arith.constant 0 : index
    %267 = vector.load %arg12[%c0_127, %c0_128, %c0_129, %c0_130] : memref<1x2x1x64xf32, #tpu.memory_space<vmem>>, vector<1x1x1x64xf32>
    %268 = vector.shape_cast %267 : vector<1x1x1x64xf32> to vector<1x64xf32>
    %269 = vector.broadcast %268 : vector<1x64xf32> to vector<16x64xf32>
    %270 = arith.addf %266, %269 : vector<16x64xf32>
    %271 = arith.mulf %270, %270 : vector<16x64xf32>
    %272 = arith.mulf %270, %271 : vector<16x64xf32>
    %cst_131 = arith.constant 4.471500e-02 : f32
    %273 = vector.broadcast %cst_131 : f32 to vector<16x64xf32>
    %274 = arith.mulf %273, %272 : vector<16x64xf32>
    %275 = arith.addf %270, %274 : vector<16x64xf32>
    %cst_132 = arith.constant 0.797884583 : f32
    %276 = vector.broadcast %cst_132 : f32 to vector<16x64xf32>
    %277 = arith.mulf %276, %275 : vector<16x64xf32>
    %278 = math.tanh %277 : vector<16x64xf32>
    %cst_133 = arith.constant 1.000000e+00 : f32
    %279 = vector.broadcast %cst_133 : f32 to vector<16x64xf32>
    %280 = arith.addf %279, %278 : vector<16x64xf32>
    %cst_134 = arith.constant 5.000000e-01 : f32
    %281 = vector.broadcast %cst_134 : f32 to vector<16x64xf32>
    %282 = arith.mulf %281, %280 : vector<16x64xf32>
    %283 = arith.mulf %270, %282 : vector<16x64xf32>
    %c0_135 = arith.constant 0 : index
    %c0_136 = arith.constant 0 : index
    %c0_137 = arith.constant 0 : index
    %c0_138 = arith.constant 0 : index
    %284 = vector.load %arg13[%c0_135, %c0_136, %c0_137, %c0_138] : memref<1x2x64x32xf32, #tpu.memory_space<vmem>>, vector<1x1x64x32xf32>
    %285 = vector.shape_cast %284 : vector<1x1x64x32xf32> to vector<64x32xf32>
    %cst_139 = arith.constant dense<0.000000e+00> : vector<16x32xf32>
    %286 = tpu.matmul %283, %285, %cst_139 {dimension_numbers = #tpu.dot_dimension_numbers<[1], [0], [0], [1], [0, 0, 1, 1], [], []>} : vector<16x64xf32>, vector<64x32xf32>, vector<16x32xf32> -> vector<16x32xf32>
    %c0_140 = arith.constant 0 : index
    %c0_141 = arith.constant 0 : index
    %c0_142 = arith.constant 0 : index
    %c0_143 = arith.constant 0 : index
    %287 = vector.load %arg14[%c0_140, %c0_141, %c0_142, %c0_143] : memref<1x2x1x32xf32, #tpu.memory_space<vmem>>, vector<1x1x1x32xf32>
    %288 = vector.shape_cast %287 : vector<1x1x1x32xf32> to vector<1x32xf32>
    %289 = vector.broadcast %288 : vector<1x32xf32> to vector<16x32xf32>
    %290 = arith.addf %286, %289 : vector<16x32xf32>
    %291 = arith.addf %290, %263 : vector<16x32xf32>
    %c0_144 = arith.constant 0 : index
    %c0_145 = arith.constant 0 : index
    %c0_146 = arith.constant 0 : index
    %c0_147 = arith.constant 0 : index
    %292 = vector.load %arg15[%c0_144, %c0_145, %c0_146, %c0_147] : memref<1x2x1x32xf32, #tpu.memory_space<vmem>>, vector<1x1x1x32xf32>
    %293 = vector.shape_cast %292 : vector<1x1x1x32xf32> to vector<1x32xf32>
    %c0_148 = arith.constant 0 : index
    %c0_149 = arith.constant 0 : index
    %c0_150 = arith.constant 0 : index
    %c0_151 = arith.constant 0 : index
    %294 = vector.load %arg16[%c0_148, %c0_149, %c0_150, %c0_151] : memref<1x2x1x32xf32, #tpu.memory_space<vmem>>, vector<1x1x1x32xf32>
    %295 = vector.shape_cast %294 : vector<1x1x1x32xf32> to vector<1x32xf32>
    %cst_152 = arith.constant dense<0.000000e+00> : vector<16xf32>
    %296 = vector.multi_reduction <add>, %291, %cst_152 [1] : vector<16x32xf32> to vector<16xf32>
    %297 = vector.shape_cast %296 : vector<16xf32> to vector<16x1xf32>
    %cst_153 = arith.constant 3.200000e+01 : f32
    %298 = vector.broadcast %cst_153 : f32 to vector<16x1xf32>
    %299 = arith.divf %297, %298 : vector<16x1xf32>
    %300 = vector.broadcast %299 : vector<16x1xf32> to vector<16x32xf32>
    %301 = arith.subf %291, %300 : vector<16x32xf32>
    %302 = arith.mulf %301, %301 : vector<16x32xf32>
    %cst_154 = arith.constant dense<0.000000e+00> : vector<16xf32>
    %303 = vector.multi_reduction <add>, %302, %cst_154 [1] : vector<16x32xf32> to vector<16xf32>
    %304 = vector.shape_cast %303 : vector<16xf32> to vector<16x1xf32>
    %cst_155 = arith.constant 3.200000e+01 : f32
    %305 = vector.broadcast %cst_155 : f32 to vector<16x1xf32>
    %306 = arith.divf %304, %305 : vector<16x1xf32>
    %307 = vector.broadcast %299 : vector<16x1xf32> to vector<16x32xf32>
    %308 = arith.subf %291, %307 : vector<16x32xf32>
    %cst_156 = arith.constant 9.99999996E-13 : f32
    %309 = vector.broadcast %cst_156 : f32 to vector<16x1xf32>
    %310 = arith.addf %306, %309 : vector<16x1xf32>
    %311 = math.rsqrt %310 : vector<16x1xf32>
    %312 = vector.broadcast %311 : vector<16x1xf32> to vector<16x32xf32>
    %313 = arith.mulf %308, %312 : vector<16x32xf32>
    %314 = vector.broadcast %293 : vector<1x32xf32> to vector<16x32xf32>
    %315 = arith.mulf %313, %314 : vector<16x32xf32>
    %316 = vector.broadcast %295 : vector<1x32xf32> to vector<16x32xf32>
    %317 = arith.addf %315, %316 : vector<16x32xf32>
    %c0_157 = arith.constant 0 : index
    %c1 = arith.constant 1 : index
    %c0_158 = arith.constant 0 : index
    %c0_159 = arith.constant 0 : index
    %318 = vector.load %arg5[%c0_157, %c1, %c0_158, %c0_159] : memref<1x2x32x96xf32, #tpu.memory_space<vmem>>, vector<1x1x32x96xf32>
    %319 = vector.shape_cast %318 : vector<1x1x32x96xf32> to vector<32x96xf32>
    %cst_160 = arith.constant dense<0.000000e+00> : vector<16x96xf32>
    %320 = tpu.matmul %317, %319, %cst_160 {dimension_numbers = #tpu.dot_dimension_numbers<[1], [0], [0], [1], [0, 0, 1, 1], [], []>} : vector<16x32xf32>, vector<32x96xf32>, vector<16x96xf32> -> vector<16x96xf32>
    %c0_161 = arith.constant 0 : index
    %c1_162 = arith.constant 1 : index
    %c0_163 = arith.constant 0 : index
    %c0_164 = arith.constant 0 : index
    %321 = vector.load %arg6[%c0_161, %c1_162, %c0_163, %c0_164] : memref<1x2x1x96xf32, #tpu.memory_space<vmem>>, vector<1x1x1x96xf32>
    %322 = vector.shape_cast %321 : vector<1x1x1x96xf32> to vector<1x96xf32>
    %323 = vector.broadcast %322 : vector<1x96xf32> to vector<16x96xf32>
    %324 = arith.addf %320, %323 : vector<16x96xf32>
    %325 = vector.extract_strided_slice %32 {offsets = [0, 0], sizes = [1, 8], strides = [1, 1]} : vector<2x8xf32> to vector<1x8xf32>
    %326 = vector.extract_strided_slice %324 {offsets = [0, 0], sizes = [8, 8], strides = [1, 1]} : vector<16x96xf32> to vector<8x8xf32>
    %327 = vector.extract_strided_slice %324 {offsets = [0, 32], sizes = [8, 8], strides = [1, 1]} : vector<16x96xf32> to vector<8x8xf32>
    %328 = vector.extract_strided_slice %324 {offsets = [0, 64], sizes = [8, 8], strides = [1, 1]} : vector<16x96xf32> to vector<8x8xf32>
    %cst_165 = arith.constant dense<0.000000e+00> : vector<8x8xf32>
    %329 = tpu.matmul %326, %327, %cst_165 {dimension_numbers = #tpu.dot_dimension_numbers<[1], [1], [0], [0], [0, 0, 1, 0], [], []>} : vector<8x8xf32>, vector<8x8xf32>, vector<8x8xf32> -> vector<8x8xf32>
    %cst_166 = arith.constant 0.353553385 : f32
    %330 = vector.broadcast %cst_166 : f32 to vector<8x8xf32>
    %331 = arith.mulf %329, %330 : vector<8x8xf32>
    %332 = vector.broadcast %325 : vector<1x8xf32> to vector<8x8xf32>
    %333 = arith.addf %331, %332 : vector<8x8xf32>
    %cst_167 = arith.constant dense<0xFF800000> : vector<8xf32>
    %334 = vector.multi_reduction <maximumf>, %333, %cst_167 [1] : vector<8x8xf32> to vector<8xf32>
    %335 = vector.shape_cast %334 : vector<8xf32> to vector<8x1xf32>
    %336 = vector.broadcast %335 : vector<8x1xf32> to vector<8x8xf32>
    %337 = arith.subf %333, %336 : vector<8x8xf32>
    %338 = math.exp %337 : vector<8x8xf32>
    %cst_168 = arith.constant dense<0.000000e+00> : vector<8xf32>
    %339 = vector.multi_reduction <add>, %338, %cst_168 [1] : vector<8x8xf32> to vector<8xf32>
    %340 = vector.shape_cast %339 : vector<8xf32> to vector<8x1xf32>
    %341 = tpu.reciprocal %340 {approx = true} : vector<8x1xf32> -> vector<8x1xf32>
    %342 = vector.broadcast %341 : vector<8x1xf32> to vector<8x8xf32>
    %343 = arith.mulf %338, %342 : vector<8x8xf32>
    %cst_169 = arith.constant dense<0.000000e+00> : vector<8x8xf32>
    %344 = tpu.matmul %343, %328, %cst_169 {dimension_numbers = #tpu.dot_dimension_numbers<[1], [0], [0], [1], [0, 0, 1, 1], [], []>} : vector<8x8xf32>, vector<8x8xf32>, vector<8x8xf32> -> vector<8x8xf32>
    %c0_170 = arith.constant 0 : index
    %c1_171 = arith.constant 1 : index
    %c0_172 = arith.constant 0 : index
    %c0_173 = arith.constant 0 : index
    %345 = vector.load %arg7[%c0_170, %c1_171, %c0_172, %c0_173] : memref<1x2x32x32xf32, #tpu.memory_space<vmem>>, vector<1x1x32x32xf32>
    %346 = vector.shape_cast %345 : vector<1x1x32x32xf32> to vector<32x32xf32>
    %347 = vector.extract_strided_slice %346 {offsets = [0, 0], sizes = [8, 32], strides = [1, 1]} : vector<32x32xf32> to vector<8x32xf32>
    %cst_174 = arith.constant dense<0.000000e+00> : vector<8x32xf32>
    %348 = tpu.matmul %344, %347, %cst_174 {dimension_numbers = #tpu.dot_dimension_numbers<[1], [0], [0], [1], [0, 0, 1, 1], [], []>} : vector<8x8xf32>, vector<8x32xf32>, vector<8x32xf32> -> vector<8x32xf32>
    %349 = vector.extract_strided_slice %324 {offsets = [0, 8], sizes = [8, 8], strides = [1, 1]} : vector<16x96xf32> to vector<8x8xf32>
    %350 = vector.extract_strided_slice %324 {offsets = [0, 40], sizes = [8, 8], strides = [1, 1]} : vector<16x96xf32> to vector<8x8xf32>
    %351 = vector.extract_strided_slice %324 {offsets = [0, 72], sizes = [8, 8], strides = [1, 1]} : vector<16x96xf32> to vector<8x8xf32>
    %cst_175 = arith.constant dense<0.000000e+00> : vector<8x8xf32>
    %352 = tpu.matmul %349, %350, %cst_175 {dimension_numbers = #tpu.dot_dimension_numbers<[1], [1], [0], [0], [0, 0, 1, 0], [], []>} : vector<8x8xf32>, vector<8x8xf32>, vector<8x8xf32> -> vector<8x8xf32>
    %cst_176 = arith.constant 0.353553385 : f32
    %353 = vector.broadcast %cst_176 : f32 to vector<8x8xf32>
    %354 = arith.mulf %352, %353 : vector<8x8xf32>
    %355 = vector.broadcast %325 : vector<1x8xf32> to vector<8x8xf32>
    %356 = arith.addf %354, %355 : vector<8x8xf32>
    %cst_177 = arith.constant dense<0xFF800000> : vector<8xf32>
    %357 = vector.multi_reduction <maximumf>, %356, %cst_177 [1] : vector<8x8xf32> to vector<8xf32>
    %358 = vector.shape_cast %357 : vector<8xf32> to vector<8x1xf32>
    %359 = vector.broadcast %358 : vector<8x1xf32> to vector<8x8xf32>
    %360 = arith.subf %356, %359 : vector<8x8xf32>
    %361 = math.exp %360 : vector<8x8xf32>
    %cst_178 = arith.constant dense<0.000000e+00> : vector<8xf32>
    %362 = vector.multi_reduction <add>, %361, %cst_178 [1] : vector<8x8xf32> to vector<8xf32>
    %363 = vector.shape_cast %362 : vector<8xf32> to vector<8x1xf32>
    %364 = tpu.reciprocal %363 {approx = true} : vector<8x1xf32> -> vector<8x1xf32>
    %365 = vector.broadcast %364 : vector<8x1xf32> to vector<8x8xf32>
    %366 = arith.mulf %361, %365 : vector<8x8xf32>
    %cst_179 = arith.constant dense<0.000000e+00> : vector<8x8xf32>
    %367 = tpu.matmul %366, %351, %cst_179 {dimension_numbers = #tpu.dot_dimension_numbers<[1], [0], [0], [1], [0, 0, 1, 1], [], []>} : vector<8x8xf32>, vector<8x8xf32>, vector<8x8xf32> -> vector<8x8xf32>
    %c0_180 = arith.constant 0 : index
    %c1_181 = arith.constant 1 : index
    %c0_182 = arith.constant 0 : index
    %c0_183 = arith.constant 0 : index
    %368 = vector.load %arg7[%c0_180, %c1_181, %c0_182, %c0_183] : memref<1x2x32x32xf32, #tpu.memory_space<vmem>>, vector<1x1x32x32xf32>
    %369 = vector.shape_cast %368 : vector<1x1x32x32xf32> to vector<32x32xf32>
    %370 = vector.extract_strided_slice %369 {offsets = [8, 0], sizes = [8, 32], strides = [1, 1]} : vector<32x32xf32> to vector<8x32xf32>
    %cst_184 = arith.constant dense<0.000000e+00> : vector<8x32xf32>
    %371 = tpu.matmul %367, %370, %cst_184 {dimension_numbers = #tpu.dot_dimension_numbers<[1], [0], [0], [1], [0, 0, 1, 1], [], []>} : vector<8x8xf32>, vector<8x32xf32>, vector<8x32xf32> -> vector<8x32xf32>
    %372 = arith.addf %348, %371 : vector<8x32xf32>
    %373 = vector.extract_strided_slice %324 {offsets = [0, 16], sizes = [8, 8], strides = [1, 1]} : vector<16x96xf32> to vector<8x8xf32>
    %374 = vector.extract_strided_slice %324 {offsets = [0, 48], sizes = [8, 8], strides = [1, 1]} : vector<16x96xf32> to vector<8x8xf32>
    %375 = vector.extract_strided_slice %324 {offsets = [0, 80], sizes = [8, 8], strides = [1, 1]} : vector<16x96xf32> to vector<8x8xf32>
    %cst_185 = arith.constant dense<0.000000e+00> : vector<8x8xf32>
    %376 = tpu.matmul %373, %374, %cst_185 {dimension_numbers = #tpu.dot_dimension_numbers<[1], [1], [0], [0], [0, 0, 1, 0], [], []>} : vector<8x8xf32>, vector<8x8xf32>, vector<8x8xf32> -> vector<8x8xf32>
    %cst_186 = arith.constant 0.353553385 : f32
    %377 = vector.broadcast %cst_186 : f32 to vector<8x8xf32>
    %378 = arith.mulf %376, %377 : vector<8x8xf32>
    %379 = vector.broadcast %325 : vector<1x8xf32> to vector<8x8xf32>
    %380 = arith.addf %378, %379 : vector<8x8xf32>
    %cst_187 = arith.constant dense<0xFF800000> : vector<8xf32>
    %381 = vector.multi_reduction <maximumf>, %380, %cst_187 [1] : vector<8x8xf32> to vector<8xf32>
    %382 = vector.shape_cast %381 : vector<8xf32> to vector<8x1xf32>
    %383 = vector.broadcast %382 : vector<8x1xf32> to vector<8x8xf32>
    %384 = arith.subf %380, %383 : vector<8x8xf32>
    %385 = math.exp %384 : vector<8x8xf32>
    %cst_188 = arith.constant dense<0.000000e+00> : vector<8xf32>
    %386 = vector.multi_reduction <add>, %385, %cst_188 [1] : vector<8x8xf32> to vector<8xf32>
    %387 = vector.shape_cast %386 : vector<8xf32> to vector<8x1xf32>
    %388 = tpu.reciprocal %387 {approx = true} : vector<8x1xf32> -> vector<8x1xf32>
    %389 = vector.broadcast %388 : vector<8x1xf32> to vector<8x8xf32>
    %390 = arith.mulf %385, %389 : vector<8x8xf32>
    %cst_189 = arith.constant dense<0.000000e+00> : vector<8x8xf32>
    %391 = tpu.matmul %390, %375, %cst_189 {dimension_numbers = #tpu.dot_dimension_numbers<[1], [0], [0], [1], [0, 0, 1, 1], [], []>} : vector<8x8xf32>, vector<8x8xf32>, vector<8x8xf32> -> vector<8x8xf32>
    %c0_190 = arith.constant 0 : index
    %c1_191 = arith.constant 1 : index
    %c0_192 = arith.constant 0 : index
    %c0_193 = arith.constant 0 : index
    %392 = vector.load %arg7[%c0_190, %c1_191, %c0_192, %c0_193] : memref<1x2x32x32xf32, #tpu.memory_space<vmem>>, vector<1x1x32x32xf32>
    %393 = vector.shape_cast %392 : vector<1x1x32x32xf32> to vector<32x32xf32>
    %394 = vector.extract_strided_slice %393 {offsets = [16, 0], sizes = [8, 32], strides = [1, 1]} : vector<32x32xf32> to vector<8x32xf32>
    %cst_194 = arith.constant dense<0.000000e+00> : vector<8x32xf32>
    %395 = tpu.matmul %391, %394, %cst_194 {dimension_numbers = #tpu.dot_dimension_numbers<[1], [0], [0], [1], [0, 0, 1, 1], [], []>} : vector<8x8xf32>, vector<8x32xf32>, vector<8x32xf32> -> vector<8x32xf32>
    %396 = arith.addf %372, %395 : vector<8x32xf32>
    %397 = vector.extract_strided_slice %324 {offsets = [0, 24], sizes = [8, 8], strides = [1, 1]} : vector<16x96xf32> to vector<8x8xf32>
    %398 = vector.extract_strided_slice %324 {offsets = [0, 56], sizes = [8, 8], strides = [1, 1]} : vector<16x96xf32> to vector<8x8xf32>
    %399 = vector.extract_strided_slice %324 {offsets = [0, 88], sizes = [8, 8], strides = [1, 1]} : vector<16x96xf32> to vector<8x8xf32>
    %cst_195 = arith.constant dense<0.000000e+00> : vector<8x8xf32>
    %400 = tpu.matmul %397, %398, %cst_195 {dimension_numbers = #tpu.dot_dimension_numbers<[1], [1], [0], [0], [0, 0, 1, 0], [], []>} : vector<8x8xf32>, vector<8x8xf32>, vector<8x8xf32> -> vector<8x8xf32>
    %cst_196 = arith.constant 0.353553385 : f32
    %401 = vector.broadcast %cst_196 : f32 to vector<8x8xf32>
    %402 = arith.mulf %400, %401 : vector<8x8xf32>
    %403 = vector.broadcast %325 : vector<1x8xf32> to vector<8x8xf32>
    %404 = arith.addf %402, %403 : vector<8x8xf32>
    %cst_197 = arith.constant dense<0xFF800000> : vector<8xf32>
    %405 = vector.multi_reduction <maximumf>, %404, %cst_197 [1] : vector<8x8xf32> to vector<8xf32>
    %406 = vector.shape_cast %405 : vector<8xf32> to vector<8x1xf32>
    %407 = vector.broadcast %406 : vector<8x1xf32> to vector<8x8xf32>
    %408 = arith.subf %404, %407 : vector<8x8xf32>
    %409 = math.exp %408 : vector<8x8xf32>
    %cst_198 = arith.constant dense<0.000000e+00> : vector<8xf32>
    %410 = vector.multi_reduction <add>, %409, %cst_198 [1] : vector<8x8xf32> to vector<8xf32>
    %411 = vector.shape_cast %410 : vector<8xf32> to vector<8x1xf32>
    %412 = tpu.reciprocal %411 {approx = true} : vector<8x1xf32> -> vector<8x1xf32>
    %413 = vector.broadcast %412 : vector<8x1xf32> to vector<8x8xf32>
    %414 = arith.mulf %409, %413 : vector<8x8xf32>
    %cst_199 = arith.constant dense<0.000000e+00> : vector<8x8xf32>
    %415 = tpu.matmul %414, %399, %cst_199 {dimension_numbers = #tpu.dot_dimension_numbers<[1], [0], [0], [1], [0, 0, 1, 1], [], []>} : vector<8x8xf32>, vector<8x8xf32>, vector<8x8xf32> -> vector<8x8xf32>
    %c0_200 = arith.constant 0 : index
    %c1_201 = arith.constant 1 : index
    %c0_202 = arith.constant 0 : index
    %c0_203 = arith.constant 0 : index
    %416 = vector.load %arg7[%c0_200, %c1_201, %c0_202, %c0_203] : memref<1x2x32x32xf32, #tpu.memory_space<vmem>>, vector<1x1x32x32xf32>
    %417 = vector.shape_cast %416 : vector<1x1x32x32xf32> to vector<32x32xf32>
    %418 = vector.extract_strided_slice %417 {offsets = [24, 0], sizes = [8, 32], strides = [1, 1]} : vector<32x32xf32> to vector<8x32xf32>
    %cst_204 = arith.constant dense<0.000000e+00> : vector<8x32xf32>
    %419 = tpu.matmul %415, %418, %cst_204 {dimension_numbers = #tpu.dot_dimension_numbers<[1], [0], [0], [1], [0, 0, 1, 1], [], []>} : vector<8x8xf32>, vector<8x32xf32>, vector<8x32xf32> -> vector<8x32xf32>
    %420 = arith.addf %396, %419 : vector<8x32xf32>
    %421 = vector.extract_strided_slice %32 {offsets = [1, 0], sizes = [1, 8], strides = [1, 1]} : vector<2x8xf32> to vector<1x8xf32>
    %422 = vector.extract_strided_slice %324 {offsets = [8, 0], sizes = [8, 8], strides = [1, 1]} : vector<16x96xf32> to vector<8x8xf32>
    %423 = vector.extract_strided_slice %324 {offsets = [8, 32], sizes = [8, 8], strides = [1, 1]} : vector<16x96xf32> to vector<8x8xf32>
    %424 = vector.extract_strided_slice %324 {offsets = [8, 64], sizes = [8, 8], strides = [1, 1]} : vector<16x96xf32> to vector<8x8xf32>
    %cst_205 = arith.constant dense<0.000000e+00> : vector<8x8xf32>
    %425 = tpu.matmul %422, %423, %cst_205 {dimension_numbers = #tpu.dot_dimension_numbers<[1], [1], [0], [0], [0, 0, 1, 0], [], []>} : vector<8x8xf32>, vector<8x8xf32>, vector<8x8xf32> -> vector<8x8xf32>
    %cst_206 = arith.constant 0.353553385 : f32
    %426 = vector.broadcast %cst_206 : f32 to vector<8x8xf32>
    %427 = arith.mulf %425, %426 : vector<8x8xf32>
    %428 = vector.broadcast %421 : vector<1x8xf32> to vector<8x8xf32>
    %429 = arith.addf %427, %428 : vector<8x8xf32>
    %cst_207 = arith.constant dense<0xFF800000> : vector<8xf32>
    %430 = vector.multi_reduction <maximumf>, %429, %cst_207 [1] : vector<8x8xf32> to vector<8xf32>
    %431 = vector.shape_cast %430 : vector<8xf32> to vector<8x1xf32>
    %432 = vector.broadcast %431 : vector<8x1xf32> to vector<8x8xf32>
    %433 = arith.subf %429, %432 : vector<8x8xf32>
    %434 = math.exp %433 : vector<8x8xf32>
    %cst_208 = arith.constant dense<0.000000e+00> : vector<8xf32>
    %435 = vector.multi_reduction <add>, %434, %cst_208 [1] : vector<8x8xf32> to vector<8xf32>
    %436 = vector.shape_cast %435 : vector<8xf32> to vector<8x1xf32>
    %437 = tpu.reciprocal %436 {approx = true} : vector<8x1xf32> -> vector<8x1xf32>
    %438 = vector.broadcast %437 : vector<8x1xf32> to vector<8x8xf32>
    %439 = arith.mulf %434, %438 : vector<8x8xf32>
    %cst_209 = arith.constant dense<0.000000e+00> : vector<8x8xf32>
    %440 = tpu.matmul %439, %424, %cst_209 {dimension_numbers = #tpu.dot_dimension_numbers<[1], [0], [0], [1], [0, 0, 1, 1], [], []>} : vector<8x8xf32>, vector<8x8xf32>, vector<8x8xf32> -> vector<8x8xf32>
    %c0_210 = arith.constant 0 : index
    %c1_211 = arith.constant 1 : index
    %c0_212 = arith.constant 0 : index
    %c0_213 = arith.constant 0 : index
    %441 = vector.load %arg7[%c0_210, %c1_211, %c0_212, %c0_213] : memref<1x2x32x32xf32, #tpu.memory_space<vmem>>, vector<1x1x32x32xf32>
    %442 = vector.shape_cast %441 : vector<1x1x32x32xf32> to vector<32x32xf32>
    %443 = vector.extract_strided_slice %442 {offsets = [0, 0], sizes = [8, 32], strides = [1, 1]} : vector<32x32xf32> to vector<8x32xf32>
    %cst_214 = arith.constant dense<0.000000e+00> : vector<8x32xf32>
    %444 = tpu.matmul %440, %443, %cst_214 {dimension_numbers = #tpu.dot_dimension_numbers<[1], [0], [0], [1], [0, 0, 1, 1], [], []>} : vector<8x8xf32>, vector<8x32xf32>, vector<8x32xf32> -> vector<8x32xf32>
    %445 = vector.extract_strided_slice %324 {offsets = [8, 8], sizes = [8, 8], strides = [1, 1]} : vector<16x96xf32> to vector<8x8xf32>
    %446 = vector.extract_strided_slice %324 {offsets = [8, 40], sizes = [8, 8], strides = [1, 1]} : vector<16x96xf32> to vector<8x8xf32>
    %447 = vector.extract_strided_slice %324 {offsets = [8, 72], sizes = [8, 8], strides = [1, 1]} : vector<16x96xf32> to vector<8x8xf32>
    %cst_215 = arith.constant dense<0.000000e+00> : vector<8x8xf32>
    %448 = tpu.matmul %445, %446, %cst_215 {dimension_numbers = #tpu.dot_dimension_numbers<[1], [1], [0], [0], [0, 0, 1, 0], [], []>} : vector<8x8xf32>, vector<8x8xf32>, vector<8x8xf32> -> vector<8x8xf32>
    %cst_216 = arith.constant 0.353553385 : f32
    %449 = vector.broadcast %cst_216 : f32 to vector<8x8xf32>
    %450 = arith.mulf %448, %449 : vector<8x8xf32>
    %451 = vector.broadcast %421 : vector<1x8xf32> to vector<8x8xf32>
    %452 = arith.addf %450, %451 : vector<8x8xf32>
    %cst_217 = arith.constant dense<0xFF800000> : vector<8xf32>
    %453 = vector.multi_reduction <maximumf>, %452, %cst_217 [1] : vector<8x8xf32> to vector<8xf32>
    %454 = vector.shape_cast %453 : vector<8xf32> to vector<8x1xf32>
    %455 = vector.broadcast %454 : vector<8x1xf32> to vector<8x8xf32>
    %456 = arith.subf %452, %455 : vector<8x8xf32>
    %457 = math.exp %456 : vector<8x8xf32>
    %cst_218 = arith.constant dense<0.000000e+00> : vector<8xf32>
    %458 = vector.multi_reduction <add>, %457, %cst_218 [1] : vector<8x8xf32> to vector<8xf32>
    %459 = vector.shape_cast %458 : vector<8xf32> to vector<8x1xf32>
    %460 = tpu.reciprocal %459 {approx = true} : vector<8x1xf32> -> vector<8x1xf32>
    %461 = vector.broadcast %460 : vector<8x1xf32> to vector<8x8xf32>
    %462 = arith.mulf %457, %461 : vector<8x8xf32>
    %cst_219 = arith.constant dense<0.000000e+00> : vector<8x8xf32>
    %463 = tpu.matmul %462, %447, %cst_219 {dimension_numbers = #tpu.dot_dimension_numbers<[1], [0], [0], [1], [0, 0, 1, 1], [], []>} : vector<8x8xf32>, vector<8x8xf32>, vector<8x8xf32> -> vector<8x8xf32>
    %c0_220 = arith.constant 0 : index
    %c1_221 = arith.constant 1 : index
    %c0_222 = arith.constant 0 : index
    %c0_223 = arith.constant 0 : index
    %464 = vector.load %arg7[%c0_220, %c1_221, %c0_222, %c0_223] : memref<1x2x32x32xf32, #tpu.memory_space<vmem>>, vector<1x1x32x32xf32>
    %465 = vector.shape_cast %464 : vector<1x1x32x32xf32> to vector<32x32xf32>
    %466 = vector.extract_strided_slice %465 {offsets = [8, 0], sizes = [8, 32], strides = [1, 1]} : vector<32x32xf32> to vector<8x32xf32>
    %cst_224 = arith.constant dense<0.000000e+00> : vector<8x32xf32>
    %467 = tpu.matmul %463, %466, %cst_224 {dimension_numbers = #tpu.dot_dimension_numbers<[1], [0], [0], [1], [0, 0, 1, 1], [], []>} : vector<8x8xf32>, vector<8x32xf32>, vector<8x32xf32> -> vector<8x32xf32>
    %468 = arith.addf %444, %467 : vector<8x32xf32>
    %469 = vector.extract_strided_slice %324 {offsets = [8, 16], sizes = [8, 8], strides = [1, 1]} : vector<16x96xf32> to vector<8x8xf32>
    %470 = vector.extract_strided_slice %324 {offsets = [8, 48], sizes = [8, 8], strides = [1, 1]} : vector<16x96xf32> to vector<8x8xf32>
    %471 = vector.extract_strided_slice %324 {offsets = [8, 80], sizes = [8, 8], strides = [1, 1]} : vector<16x96xf32> to vector<8x8xf32>
    %cst_225 = arith.constant dense<0.000000e+00> : vector<8x8xf32>
    %472 = tpu.matmul %469, %470, %cst_225 {dimension_numbers = #tpu.dot_dimension_numbers<[1], [1], [0], [0], [0, 0, 1, 0], [], []>} : vector<8x8xf32>, vector<8x8xf32>, vector<8x8xf32> -> vector<8x8xf32>
    %cst_226 = arith.constant 0.353553385 : f32
    %473 = vector.broadcast %cst_226 : f32 to vector<8x8xf32>
    %474 = arith.mulf %472, %473 : vector<8x8xf32>
    %475 = vector.broadcast %421 : vector<1x8xf32> to vector<8x8xf32>
    %476 = arith.addf %474, %475 : vector<8x8xf32>
    %cst_227 = arith.constant dense<0xFF800000> : vector<8xf32>
    %477 = vector.multi_reduction <maximumf>, %476, %cst_227 [1] : vector<8x8xf32> to vector<8xf32>
    %478 = vector.shape_cast %477 : vector<8xf32> to vector<8x1xf32>
    %479 = vector.broadcast %478 : vector<8x1xf32> to vector<8x8xf32>
    %480 = arith.subf %476, %479 : vector<8x8xf32>
    %481 = math.exp %480 : vector<8x8xf32>
    %cst_228 = arith.constant dense<0.000000e+00> : vector<8xf32>
    %482 = vector.multi_reduction <add>, %481, %cst_228 [1] : vector<8x8xf32> to vector<8xf32>
    %483 = vector.shape_cast %482 : vector<8xf32> to vector<8x1xf32>
    %484 = tpu.reciprocal %483 {approx = true} : vector<8x1xf32> -> vector<8x1xf32>
    %485 = vector.broadcast %484 : vector<8x1xf32> to vector<8x8xf32>
    %486 = arith.mulf %481, %485 : vector<8x8xf32>
    %cst_229 = arith.constant dense<0.000000e+00> : vector<8x8xf32>
    %487 = tpu.matmul %486, %471, %cst_229 {dimension_numbers = #tpu.dot_dimension_numbers<[1], [0], [0], [1], [0, 0, 1, 1], [], []>} : vector<8x8xf32>, vector<8x8xf32>, vector<8x8xf32> -> vector<8x8xf32>
    %c0_230 = arith.constant 0 : index
    %c1_231 = arith.constant 1 : index
    %c0_232 = arith.constant 0 : index
    %c0_233 = arith.constant 0 : index
    %488 = vector.load %arg7[%c0_230, %c1_231, %c0_232, %c0_233] : memref<1x2x32x32xf32, #tpu.memory_space<vmem>>, vector<1x1x32x32xf32>
    %489 = vector.shape_cast %488 : vector<1x1x32x32xf32> to vector<32x32xf32>
    %490 = vector.extract_strided_slice %489 {offsets = [16, 0], sizes = [8, 32], strides = [1, 1]} : vector<32x32xf32> to vector<8x32xf32>
    %cst_234 = arith.constant dense<0.000000e+00> : vector<8x32xf32>
    %491 = tpu.matmul %487, %490, %cst_234 {dimension_numbers = #tpu.dot_dimension_numbers<[1], [0], [0], [1], [0, 0, 1, 1], [], []>} : vector<8x8xf32>, vector<8x32xf32>, vector<8x32xf32> -> vector<8x32xf32>
    %492 = arith.addf %468, %491 : vector<8x32xf32>
    %493 = vector.extract_strided_slice %324 {offsets = [8, 24], sizes = [8, 8], strides = [1, 1]} : vector<16x96xf32> to vector<8x8xf32>
    %494 = vector.extract_strided_slice %324 {offsets = [8, 56], sizes = [8, 8], strides = [1, 1]} : vector<16x96xf32> to vector<8x8xf32>
    %495 = vector.extract_strided_slice %324 {offsets = [8, 88], sizes = [8, 8], strides = [1, 1]} : vector<16x96xf32> to vector<8x8xf32>
    %cst_235 = arith.constant dense<0.000000e+00> : vector<8x8xf32>
    %496 = tpu.matmul %493, %494, %cst_235 {dimension_numbers = #tpu.dot_dimension_numbers<[1], [1], [0], [0], [0, 0, 1, 0], [], []>} : vector<8x8xf32>, vector<8x8xf32>, vector<8x8xf32> -> vector<8x8xf32>
    %cst_236 = arith.constant 0.353553385 : f32
    %497 = vector.broadcast %cst_236 : f32 to vector<8x8xf32>
    %498 = arith.mulf %496, %497 : vector<8x8xf32>
    %499 = vector.broadcast %421 : vector<1x8xf32> to vector<8x8xf32>
    %500 = arith.addf %498, %499 : vector<8x8xf32>
    %cst_237 = arith.constant dense<0xFF800000> : vector<8xf32>
    %501 = vector.multi_reduction <maximumf>, %500, %cst_237 [1] : vector<8x8xf32> to vector<8xf32>
    %502 = vector.shape_cast %501 : vector<8xf32> to vector<8x1xf32>
    %503 = vector.broadcast %502 : vector<8x1xf32> to vector<8x8xf32>
    %504 = arith.subf %500, %503 : vector<8x8xf32>
    %505 = math.exp %504 : vector<8x8xf32>
    %cst_238 = arith.constant dense<0.000000e+00> : vector<8xf32>
    %506 = vector.multi_reduction <add>, %505, %cst_238 [1] : vector<8x8xf32> to vector<8xf32>
    %507 = vector.shape_cast %506 : vector<8xf32> to vector<8x1xf32>
    %508 = tpu.reciprocal %507 {approx = true} : vector<8x1xf32> -> vector<8x1xf32>
    %509 = vector.broadcast %508 : vector<8x1xf32> to vector<8x8xf32>
    %510 = arith.mulf %505, %509 : vector<8x8xf32>
    %cst_239 = arith.constant dense<0.000000e+00> : vector<8x8xf32>
    %511 = tpu.matmul %510, %495, %cst_239 {dimension_numbers = #tpu.dot_dimension_numbers<[1], [0], [0], [1], [0, 0, 1, 1], [], []>} : vector<8x8xf32>, vector<8x8xf32>, vector<8x8xf32> -> vector<8x8xf32>
    %c0_240 = arith.constant 0 : index
    %c1_241 = arith.constant 1 : index
    %c0_242 = arith.constant 0 : index
    %c0_243 = arith.constant 0 : index
    %512 = vector.load %arg7[%c0_240, %c1_241, %c0_242, %c0_243] : memref<1x2x32x32xf32, #tpu.memory_space<vmem>>, vector<1x1x32x32xf32>
    %513 = vector.shape_cast %512 : vector<1x1x32x32xf32> to vector<32x32xf32>
    %514 = vector.extract_strided_slice %513 {offsets = [24, 0], sizes = [8, 32], strides = [1, 1]} : vector<32x32xf32> to vector<8x32xf32>
    %cst_244 = arith.constant dense<0.000000e+00> : vector<8x32xf32>
    %515 = tpu.matmul %511, %514, %cst_244 {dimension_numbers = #tpu.dot_dimension_numbers<[1], [0], [0], [1], [0, 0, 1, 1], [], []>} : vector<8x8xf32>, vector<8x32xf32>, vector<8x32xf32> -> vector<8x32xf32>
    %516 = arith.addf %492, %515 : vector<8x32xf32>
    %517 = tpu.concatenate %420, %516 in 0 : vector<8x32xf32>, vector<8x32xf32> -> vector<16x32xf32>
    %c0_245 = arith.constant 0 : index
    %c1_246 = arith.constant 1 : index
    %c0_247 = arith.constant 0 : index
    %c0_248 = arith.constant 0 : index
    %518 = vector.load %arg8[%c0_245, %c1_246, %c0_247, %c0_248] : memref<1x2x1x32xf32, #tpu.memory_space<vmem>>, vector<1x1x1x32xf32>
    %519 = vector.shape_cast %518 : vector<1x1x1x32xf32> to vector<1x32xf32>
    %520 = vector.broadcast %519 : vector<1x32xf32> to vector<16x32xf32>
    %521 = arith.addf %517, %520 : vector<16x32xf32>
    %522 = arith.addf %521, %317 : vector<16x32xf32>
    %c0_249 = arith.constant 0 : index
    %c1_250 = arith.constant 1 : index
    %c0_251 = arith.constant 0 : index
    %c0_252 = arith.constant 0 : index
    %523 = vector.load %arg9[%c0_249, %c1_250, %c0_251, %c0_252] : memref<1x2x1x32xf32, #tpu.memory_space<vmem>>, vector<1x1x1x32xf32>
    %524 = vector.shape_cast %523 : vector<1x1x1x32xf32> to vector<1x32xf32>
    %c0_253 = arith.constant 0 : index
    %c1_254 = arith.constant 1 : index
    %c0_255 = arith.constant 0 : index
    %c0_256 = arith.constant 0 : index
    %525 = vector.load %arg10[%c0_253, %c1_254, %c0_255, %c0_256] : memref<1x2x1x32xf32, #tpu.memory_space<vmem>>, vector<1x1x1x32xf32>
    %526 = vector.shape_cast %525 : vector<1x1x1x32xf32> to vector<1x32xf32>
    %cst_257 = arith.constant dense<0.000000e+00> : vector<16xf32>
    %527 = vector.multi_reduction <add>, %522, %cst_257 [1] : vector<16x32xf32> to vector<16xf32>
    %528 = vector.shape_cast %527 : vector<16xf32> to vector<16x1xf32>
    %cst_258 = arith.constant 3.200000e+01 : f32
    %529 = vector.broadcast %cst_258 : f32 to vector<16x1xf32>
    %530 = arith.divf %528, %529 : vector<16x1xf32>
    %531 = vector.broadcast %530 : vector<16x1xf32> to vector<16x32xf32>
    %532 = arith.subf %522, %531 : vector<16x32xf32>
    %533 = arith.mulf %532, %532 : vector<16x32xf32>
    %cst_259 = arith.constant dense<0.000000e+00> : vector<16xf32>
    %534 = vector.multi_reduction <add>, %533, %cst_259 [1] : vector<16x32xf32> to vector<16xf32>
    %535 = vector.shape_cast %534 : vector<16xf32> to vector<16x1xf32>
    %cst_260 = arith.constant 3.200000e+01 : f32
    %536 = vector.broadcast %cst_260 : f32 to vector<16x1xf32>
    %537 = arith.divf %535, %536 : vector<16x1xf32>
    %538 = vector.broadcast %530 : vector<16x1xf32> to vector<16x32xf32>
    %539 = arith.subf %522, %538 : vector<16x32xf32>
    %cst_261 = arith.constant 9.99999996E-13 : f32
    %540 = vector.broadcast %cst_261 : f32 to vector<16x1xf32>
    %541 = arith.addf %537, %540 : vector<16x1xf32>
    %542 = math.rsqrt %541 : vector<16x1xf32>
    %543 = vector.broadcast %542 : vector<16x1xf32> to vector<16x32xf32>
    %544 = arith.mulf %539, %543 : vector<16x32xf32>
    %545 = vector.broadcast %524 : vector<1x32xf32> to vector<16x32xf32>
    %546 = arith.mulf %544, %545 : vector<16x32xf32>
    %547 = vector.broadcast %526 : vector<1x32xf32> to vector<16x32xf32>
    %548 = arith.addf %546, %547 : vector<16x32xf32>
    %c0_262 = arith.constant 0 : index
    %c1_263 = arith.constant 1 : index
    %c0_264 = arith.constant 0 : index
    %c0_265 = arith.constant 0 : index
    %549 = vector.load %arg11[%c0_262, %c1_263, %c0_264, %c0_265] : memref<1x2x32x64xf32, #tpu.memory_space<vmem>>, vector<1x1x32x64xf32>
    %550 = vector.shape_cast %549 : vector<1x1x32x64xf32> to vector<32x64xf32>
    %cst_266 = arith.constant dense<0.000000e+00> : vector<16x64xf32>
    %551 = tpu.matmul %548, %550, %cst_266 {dimension_numbers = #tpu.dot_dimension_numbers<[1], [0], [0], [1], [0, 0, 1, 1], [], []>} : vector<16x32xf32>, vector<32x64xf32>, vector<16x64xf32> -> vector<16x64xf32>
    %c0_267 = arith.constant 0 : index
    %c1_268 = arith.constant 1 : index
    %c0_269 = arith.constant 0 : index
    %c0_270 = arith.constant 0 : index
    %552 = vector.load %arg12[%c0_267, %c1_268, %c0_269, %c0_270] : memref<1x2x1x64xf32, #tpu.memory_space<vmem>>, vector<1x1x1x64xf32>
    %553 = vector.shape_cast %552 : vector<1x1x1x64xf32> to vector<1x64xf32>
    %554 = vector.broadcast %553 : vector<1x64xf32> to vector<16x64xf32>
    %555 = arith.addf %551, %554 : vector<16x64xf32>
    %556 = arith.mulf %555, %555 : vector<16x64xf32>
    %557 = arith.mulf %555, %556 : vector<16x64xf32>
    %cst_271 = arith.constant 4.471500e-02 : f32
    %558 = vector.broadcast %cst_271 : f32 to vector<16x64xf32>
    %559 = arith.mulf %558, %557 : vector<16x64xf32>
    %560 = arith.addf %555, %559 : vector<16x64xf32>
    %cst_272 = arith.constant 0.797884583 : f32
    %561 = vector.broadcast %cst_272 : f32 to vector<16x64xf32>
    %562 = arith.mulf %561, %560 : vector<16x64xf32>
    %563 = math.tanh %562 : vector<16x64xf32>
    %cst_273 = arith.constant 1.000000e+00 : f32
    %564 = vector.broadcast %cst_273 : f32 to vector<16x64xf32>
    %565 = arith.addf %564, %563 : vector<16x64xf32>
    %cst_274 = arith.constant 5.000000e-01 : f32
    %566 = vector.broadcast %cst_274 : f32 to vector<16x64xf32>
    %567 = arith.mulf %566, %565 : vector<16x64xf32>
    %568 = arith.mulf %555, %567 : vector<16x64xf32>
    %c0_275 = arith.constant 0 : index
    %c1_276 = arith.constant 1 : index
    %c0_277 = arith.constant 0 : index
    %c0_278 = arith.constant 0 : index
    %569 = vector.load %arg13[%c0_275, %c1_276, %c0_277, %c0_278] : memref<1x2x64x32xf32, #tpu.memory_space<vmem>>, vector<1x1x64x32xf32>
    %570 = vector.shape_cast %569 : vector<1x1x64x32xf32> to vector<64x32xf32>
    %cst_279 = arith.constant dense<0.000000e+00> : vector<16x32xf32>
    %571 = tpu.matmul %568, %570, %cst_279 {dimension_numbers = #tpu.dot_dimension_numbers<[1], [0], [0], [1], [0, 0, 1, 1], [], []>} : vector<16x64xf32>, vector<64x32xf32>, vector<16x32xf32> -> vector<16x32xf32>
    %c0_280 = arith.constant 0 : index
    %c1_281 = arith.constant 1 : index
    %c0_282 = arith.constant 0 : index
    %c0_283 = arith.constant 0 : index
    %572 = vector.load %arg14[%c0_280, %c1_281, %c0_282, %c0_283] : memref<1x2x1x32xf32, #tpu.memory_space<vmem>>, vector<1x1x1x32xf32>
    %573 = vector.shape_cast %572 : vector<1x1x1x32xf32> to vector<1x32xf32>
    %574 = vector.broadcast %573 : vector<1x32xf32> to vector<16x32xf32>
    %575 = arith.addf %571, %574 : vector<16x32xf32>
    %576 = arith.addf %575, %548 : vector<16x32xf32>
    %c0_284 = arith.constant 0 : index
    %c1_285 = arith.constant 1 : index
    %c0_286 = arith.constant 0 : index
    %c0_287 = arith.constant 0 : index
    %577 = vector.load %arg15[%c0_284, %c1_285, %c0_286, %c0_287] : memref<1x2x1x32xf32, #tpu.memory_space<vmem>>, vector<1x1x1x32xf32>
    %578 = vector.shape_cast %577 : vector<1x1x1x32xf32> to vector<1x32xf32>
    %c0_288 = arith.constant 0 : index
    %c1_289 = arith.constant 1 : index
    %c0_290 = arith.constant 0 : index
    %c0_291 = arith.constant 0 : index
    %579 = vector.load %arg16[%c0_288, %c1_289, %c0_290, %c0_291] : memref<1x2x1x32xf32, #tpu.memory_space<vmem>>, vector<1x1x1x32xf32>
    %580 = vector.shape_cast %579 : vector<1x1x1x32xf32> to vector<1x32xf32>
    %cst_292 = arith.constant dense<0.000000e+00> : vector<16xf32>
    %581 = vector.multi_reduction <add>, %576, %cst_292 [1] : vector<16x32xf32> to vector<16xf32>
    %582 = vector.shape_cast %581 : vector<16xf32> to vector<16x1xf32>
    %cst_293 = arith.constant 3.200000e+01 : f32
    %583 = vector.broadcast %cst_293 : f32 to vector<16x1xf32>
    %584 = arith.divf %582, %583 : vector<16x1xf32>
    %585 = vector.broadcast %584 : vector<16x1xf32> to vector<16x32xf32>
    %586 = arith.subf %576, %585 : vector<16x32xf32>
    %587 = arith.mulf %586, %586 : vector<16x32xf32>
    %cst_294 = arith.constant dense<0.000000e+00> : vector<16xf32>
    %588 = vector.multi_reduction <add>, %587, %cst_294 [1] : vector<16x32xf32> to vector<16xf32>
    %589 = vector.shape_cast %588 : vector<16xf32> to vector<16x1xf32>
    %cst_295 = arith.constant 3.200000e+01 : f32
    %590 = vector.broadcast %cst_295 : f32 to vector<16x1xf32>
    %591 = arith.divf %589, %590 : vector<16x1xf32>
    %592 = vector.broadcast %584 : vector<16x1xf32> to vector<16x32xf32>
    %593 = arith.subf %576, %592 : vector<16x32xf32>
    %cst_296 = arith.constant 9.99999996E-13 : f32
    %594 = vector.broadcast %cst_296 : f32 to vector<16x1xf32>
    %595 = arith.addf %591, %594 : vector<16x1xf32>
    %596 = math.rsqrt %595 : vector<16x1xf32>
    %597 = vector.broadcast %596 : vector<16x1xf32> to vector<16x32xf32>
    %598 = arith.mulf %593, %597 : vector<16x32xf32>
    %599 = vector.broadcast %578 : vector<1x32xf32> to vector<16x32xf32>
    %600 = arith.mulf %598, %599 : vector<16x32xf32>
    %601 = vector.broadcast %580 : vector<1x32xf32> to vector<16x32xf32>
    %602 = arith.addf %600, %601 : vector<16x32xf32>
    %603 = tpu.iota {dimensions = array<i32: 0>} : vector<2x16xi32>
    %604 = tpu.iota {dimensions = array<i32: 1>} : vector<2x16xi32>
    %c8_i32 = arith.constant 8 : i32
    %605 = vector.broadcast %c8_i32 : i32 to vector<2x16xi32>
    %606 = arith.muli %603, %605 : vector<2x16xi32>
    %607 = arith.cmpi eq, %604, %606 : vector<2x16xi32>
    %608 = arith.extui %607 : vector<2x16xi1> to vector<2x16xi32>
    %609 = arith.sitofp %608 : vector<2x16xi32> to vector<2x16xf32>
    %cst_297 = arith.constant dense<0.000000e+00> : vector<2x32xf32>
    %610 = tpu.matmul %609, %602, %cst_297 {dimension_numbers = #tpu.dot_dimension_numbers<[1], [0], [0], [1], [0, 0, 1, 1], [], []>} : vector<2x16xf32>, vector<16x32xf32>, vector<2x32xf32> -> vector<2x32xf32>
    %c0_298 = arith.constant 0 : index
    %c0_299 = arith.constant 0 : index
    %c0_300 = arith.constant 0 : index
    %611 = vector.load %arg17[%c0_298, %c0_299, %c0_300] : memref<1x32x32xf32, #tpu.memory_space<vmem>>, vector<1x32x32xf32>
    %612 = vector.shape_cast %611 : vector<1x32x32xf32> to vector<32x32xf32>
    %cst_301 = arith.constant dense<0.000000e+00> : vector<2x32xf32>
    %613 = tpu.matmul %610, %612, %cst_301 {dimension_numbers = #tpu.dot_dimension_numbers<[1], [0], [0], [1], [0, 0, 1, 1], [], []>} : vector<2x32xf32>, vector<32x32xf32>, vector<2x32xf32> -> vector<2x32xf32>
    %c0_302 = arith.constant 0 : index
    %c0_303 = arith.constant 0 : index
    %c0_304 = arith.constant 0 : index
    %614 = vector.load %arg18[%c0_302, %c0_303, %c0_304] : memref<1x1x32xf32, #tpu.memory_space<vmem>>, vector<1x1x32xf32>
    %615 = vector.shape_cast %614 : vector<1x1x32xf32> to vector<1x32xf32>
    %616 = vector.broadcast %615 : vector<1x32xf32> to vector<2x32xf32>
    %617 = arith.addf %613, %616 : vector<2x32xf32>
    %618 = math.tanh %617 : vector<2x32xf32>
    %c0_305 = arith.constant 0 : index
    %c0_306 = arith.constant 0 : index
    %c0_307 = arith.constant 0 : index
    %c0_308 = arith.constant 0 : index
    %619 = vector.load %arg19[%c0_305, %c0_306, %c0_307, %c0_308] : memref<1x2x32x32xf32, #tpu.memory_space<vmem>>, vector<1x1x32x32xf32>
    %620 = vector.shape_cast %619 : vector<1x1x32x32xf32> to vector<32x32xf32>
    %cst_309 = arith.constant dense<0.000000e+00> : vector<2x32xf32>
    %621 = tpu.matmul %618, %620, %cst_309 {dimension_numbers = #tpu.dot_dimension_numbers<[1], [0], [0], [1], [0, 0, 1, 1], [], []>} : vector<2x32xf32>, vector<32x32xf32>, vector<2x32xf32> -> vector<2x32xf32>
    %c0_310 = arith.constant 0 : index
    %c0_311 = arith.constant 0 : index
    %c0_312 = arith.constant 0 : index
    %c0_313 = arith.constant 0 : index
    %622 = vector.load %arg20[%c0_310, %c0_311, %c0_312, %c0_313] : memref<1x2x1x32xf32, #tpu.memory_space<vmem>>, vector<1x1x1x32xf32>
    %623 = vector.shape_cast %622 : vector<1x1x1x32xf32> to vector<1x32xf32>
    %624 = vector.broadcast %623 : vector<1x32xf32> to vector<2x32xf32>
    %625 = arith.addf %621, %624 : vector<2x32xf32>
    %626 = math.tanh %625 : vector<2x32xf32>
    %c0_314 = arith.constant 0 : index
    %c0_315 = arith.constant 0 : index
    %c0_316 = arith.constant 0 : index
    %c0_317 = arith.constant 0 : index
    %627 = vector.load %arg21[%c0_314, %c0_315, %c0_316, %c0_317] : memref<1x2x32x128xf32, #tpu.memory_space<vmem>>, vector<1x1x32x128xf32>
    %628 = vector.shape_cast %627 : vector<1x1x32x128xf32> to vector<32x128xf32>
    %cst_318 = arith.constant dense<0.000000e+00> : vector<2x128xf32>
    %629 = tpu.matmul %626, %628, %cst_318 {dimension_numbers = #tpu.dot_dimension_numbers<[1], [0], [0], [1], [0, 0, 1, 1], [], []>} : vector<2x32xf32>, vector<32x128xf32>, vector<2x128xf32> -> vector<2x128xf32>
    %c0_319 = arith.constant 0 : index
    %c0_320 = arith.constant 0 : index
    %c0_321 = arith.constant 0 : index
    %c0_322 = arith.constant 0 : index
    %630 = vector.load %arg22[%c0_319, %c0_320, %c0_321, %c0_322] : memref<1x2x1x128xf32, #tpu.memory_space<vmem>>, vector<1x1x1x128xf32>
    %631 = vector.shape_cast %630 : vector<1x1x1x128xf32> to vector<1x128xf32>
    %632 = vector.broadcast %631 : vector<1x128xf32> to vector<2x128xf32>
    %633 = arith.addf %629, %632 : vector<2x128xf32>
    %c0_323 = arith.constant 0 : index
    %c0_324 = arith.constant 0 : index
    %c0_325 = arith.constant 0 : index
    %c0_326 = arith.constant 0 : index
    %634 = vector.load %arg23[%c0_323, %c0_324, %c0_325, %c0_326] : memref<1x2x2x128xf32, #tpu.memory_space<vmem>>, vector<1x1x2x128xf32>
    %635 = vector.shape_cast %634 : vector<1x1x2x128xf32> to vector<2x128xf32>
    %636 = vector.shape_cast %633 : vector<2x128xf32> to vector<1x1x2x128xf32>
    tpu.vector_store %arg23[%c0_323, %c0_324, %c0_325, %c0_326], %636 {strides = array<i32>} : memref<1x2x2x128xf32, #tpu.memory_space<vmem>>, vector<1x1x2x128xf32>,
    %c0_327 = arith.constant 0 : index
    %c1_328 = arith.constant 1 : index
    %c0_329 = arith.constant 0 : index
    %c0_330 = arith.constant 0 : index
    %637 = vector.load %arg19[%c0_327, %c1_328, %c0_329, %c0_330] : memref<1x2x32x32xf32, #tpu.memory_space<vmem>>, vector<1x1x32x32xf32>
    %638 = vector.shape_cast %637 : vector<1x1x32x32xf32> to vector<32x32xf32>
    %cst_331 = arith.constant dense<0.000000e+00> : vector<2x32xf32>
    %639 = tpu.matmul %618, %638, %cst_331 {dimension_numbers = #tpu.dot_dimension_numbers<[1], [0], [0], [1], [0, 0, 1, 1], [], []>} : vector<2x32xf32>, vector<32x32xf32>, vector<2x32xf32> -> vector<2x32xf32>
    %c0_332 = arith.constant 0 : index
    %c1_333 = arith.constant 1 : index
    %c0_334 = arith.constant 0 : index
    %c0_335 = arith.constant 0 : index
    %640 = vector.load %arg20[%c0_332, %c1_333, %c0_334, %c0_335] : memref<1x2x1x32xf32, #tpu.memory_space<vmem>>, vector<1x1x1x32xf32>
    %641 = vector.shape_cast %640 : vector<1x1x1x32xf32> to vector<1x32xf32>
    %642 = vector.broadcast %641 : vector<1x32xf32> to vector<2x32xf32>
    %643 = arith.addf %639, %642 : vector<2x32xf32>
    %644 = math.tanh %643 : vector<2x32xf32>
    %c0_336 = arith.constant 0 : index
    %c1_337 = arith.constant 1 : index
    %c0_338 = arith.constant 0 : index
    %c0_339 = arith.constant 0 : index
    %645 = vector.load %arg21[%c0_336, %c1_337, %c0_338, %c0_339] : memref<1x2x32x128xf32, #tpu.memory_space<vmem>>, vector<1x1x32x128xf32>
    %646 = vector.shape_cast %645 : vector<1x1x32x128xf32> to vector<32x128xf32>
    %cst_340 = arith.constant dense<0.000000e+00> : vector<2x128xf32>
    %647 = tpu.matmul %644, %646, %cst_340 {dimension_numbers = #tpu.dot_dimension_numbers<[1], [0], [0], [1], [0, 0, 1, 1], [], []>} : vector<2x32xf32>, vector<32x128xf32>, vector<2x128xf32> -> vector<2x128xf32>
    %c0_341 = arith.constant 0 : index
    %c1_342 = arith.constant 1 : index
    %c0_343 = arith.constant 0 : index
    %c0_344 = arith.constant 0 : index
    %648 = vector.load %arg22[%c0_341, %c1_342, %c0_343, %c0_344] : memref<1x2x1x128xf32, #tpu.memory_space<vmem>>, vector<1x1x1x128xf32>
    %649 = vector.shape_cast %648 : vector<1x1x1x128xf32> to vector<1x128xf32>
    %650 = vector.broadcast %649 : vector<1x128xf32> to vector<2x128xf32>
    %651 = arith.addf %647, %650 : vector<2x128xf32>
    %c0_345 = arith.constant 0 : index
    %c1_346 = arith.constant 1 : index
    %c0_347 = arith.constant 0 : index
    %c0_348 = arith.constant 0 : index
    %652 = vector.load %arg23[%c0_345, %c1_346, %c0_347, %c0_348] : memref<1x2x2x128xf32, #tpu.memory_space<vmem>>, vector<1x1x2x128xf32>
    %653 = vector.shape_cast %652 : vector<1x1x2x128xf32> to vector<2x128xf32>
    %654 = vector.shape_cast %651 : vector<2x128xf32> to vector<1x1x2x128xf32>
    tpu.vector_store %arg23[%c0_345, %c1_346, %c0_347, %c0_348], %654 {strides = array<i32>} : memref<1x2x2x128xf32, #tpu.memory_space<vmem>>, vector<1x1x2x128xf32>,
    return
  }
  func.func @transform_0(%arg0: i32) -> (i32, i32, i32) {
    %c0_i32 = arith.constant 0 : i32
    %c0_i32_0 = arith.constant 0 : i32
    %c0_i32_1 = arith.constant 0 : i32
    return %arg0, %c0_i32, %c0_i32_0 : i32, i32, i32
  }
  func.func @transform_1(%arg0: i32) -> (i32, i32) {
    %c0_i32 = arith.constant 0 : i32
    %c0_i32_0 = arith.constant 0 : i32
    %c0_i32_1 = arith.constant 0 : i32
    return %c0_i32, %c0_i32_0 : i32, i32
  }
  func.func @transform_2(%arg0: i32) -> (i32, i32, i32) {
    %c0_i32 = arith.constant 0 : i32
    %c0_i32_0 = arith.constant 0 : i32
    %c0_i32_1 = arith.constant 0 : i32
    return %arg0, %c0_i32, %c0_i32_0 : i32, i32, i32
  }
  func.func @transform_3(%arg0: i32) -> (i32, i32, i32) {
    %c0_i32 = arith.constant 0 : i32
    %c0_i32_0 = arith.constant 0 : i32
    %c0_i32_1 = arith.constant 0 : i32
    return %arg0, %c0_i32, %c0_i32_0 : i32, i32, i32
  }
  func.func @transform_4(%arg0: i32) -> (i32, i32, i32, i32) {
    %c0_i32 = arith.constant 0 : i32
    %c0_i32_0 = arith.constant 0 : i32
    %c0_i32_1 = arith.constant 0 : i32
    %c0_i32_2 = arith.constant 0 : i32
    return %arg0, %c0_i32, %c0_i32_0, %c0_i32_1 : i32, i32, i32, i32
  }
  func.func @transform_5(%arg0: i32) -> (i32, i32, i32, i32) {
    %c0_i32 = arith.constant 0 : i32
    %c0_i32_0 = arith.constant 0 : i32
    %c0_i32_1 = arith.constant 0 : i32
    %c0_i32_2 = arith.constant 0 : i32
    return %arg0, %c0_i32, %c0_i32_0, %c0_i32_1 : i32, i32, i32, i32
  }
  func.func @transform_6(%arg0: i32) -> (i32, i32, i32, i32) {
    %c0_i32 = arith.constant 0 : i32
    %c0_i32_0 = arith.constant 0 : i32
    %c0_i32_1 = arith.constant 0 : i32
    %c0_i32_2 = arith.constant 0 : i32
    return %arg0, %c0_i32, %c0_i32_0, %c0_i32_1 : i32, i32, i32, i32
  }
  func.func @transform_7(%arg0: i32) -> (i32, i32, i32, i32) {
    %c0_i32 = arith.constant 0 : i32
    %c0_i32_0 = arith.constant 0 : i32
    %c0_i32_1 = arith.constant 0 : i32
    %c0_i32_2 = arith.constant 0 : i32
    return %arg0, %c0_i32, %c0_i32_0, %c0_i32_1 : i32, i32, i32, i32
  }
  func.func @transform_8(%arg0: i32) -> (i32, i32, i32, i32) {
    %c0_i32 = arith.constant 0 : i32
    %c0_i32_0 = arith.constant 0 : i32
    %c0_i32_1 = arith.constant 0 : i32
    %c0_i32_2 = arith.constant 0 : i32
    return %arg0, %c0_i32, %c0_i32_0, %c0_i32_1 : i32, i32, i32, i32
  }
  func.func @transform_9(%arg0: i32) -> (i32, i32, i32, i32) {
    %c0_i32 = arith.constant 0 : i32
    %c0_i32_0 = arith.constant 0 : i32
    %c0_i32_1 = arith.constant 0 : i32
    %c0_i32_2 = arith.constant 0 : i32
    return %arg0, %c0_i32, %c0_i32_0, %c0_i32_1 : i32, i32, i32, i32
  }
  func.func @transform_10(%arg0: i32) -> (i32, i32, i32, i32) {
    %c0_i32 = arith.constant 0 : i32
    %c0_i32_0 = arith.constant 0 : i32
    %c0_i32_1 = arith.constant 0 : i32
    %c0_i32_2 = arith.constant 0 : i32
    return %arg0, %c0_i32, %c0_i32_0, %c0_i32_1 : i32, i32, i32, i32
  }
  func.func @transform_11(%arg0: i32) -> (i32, i32, i32, i32) {
    %c0_i32 = arith.constant 0 : i32
    %c0_i32_0 = arith.constant 0 : i32
    %c0_i32_1 = arith.constant 0 : i32
    %c0_i32_2 = arith.constant 0 : i32
    return %arg0, %c0_i32, %c0_i32_0, %c0_i32_1 : i32, i32, i32, i32
  }
  func.func @transform_12(%arg0: i32) -> (i32, i32, i32, i32) {
    %c0_i32 = arith.constant 0 : i32
    %c0_i32_0 = arith.constant 0 : i32
    %c0_i32_1 = arith.constant 0 : i32
    %c0_i32_2 = arith.constant 0 : i32
    return %arg0, %c0_i32, %c0_i32_0, %c0_i32_1 : i32, i32, i32, i32
  }
  func.func @transform_13(%arg0: i32) -> (i32, i32, i32, i32) {
    %c0_i32 = arith.constant 0 : i32
    %c0_i32_0 = arith.constant 0 : i32
    %c0_i32_1 = arith.constant 0 : i32
    %c0_i32_2 = arith.constant 0 : i32
    return %arg0, %c0_i32, %c0_i32_0, %c0_i32_1 : i32, i32, i32, i32
  }
  func.func @transform_14(%arg0: i32) -> (i32, i32, i32, i32) {
    %c0_i32 = arith.constant 0 : i32
    %c0_i32_0 = arith.constant 0 : i32
    %c0_i32_1 = arith.constant 0 : i32
    %c0_i32_2 = arith.constant 0 : i32
    return %arg0, %c0_i32, %c0_i32_0, %c0_i32_1 : i32, i32, i32, i32
  }
  func.func @transform_15(%arg0: i32) -> (i32, i32, i32, i32) {
    %c0_i32 = arith.constant 0 : i32
    %c0_i32_0 = arith.constant 0 : i32
    %c0_i32_1 = arith.constant 0 : i32
    %c0_i32_2 = arith.constant 0 : i32
    return %arg0, %c0_i32, %c0_i32_0, %c0_i32_1 : i32, i32, i32, i32
  }
  func.func @transform_16(%arg0: i32) -> (i32, i32, i32) {
    %c0_i32 = arith.constant 0 : i32
    %c0_i32_0 = arith.constant 0 : i32
    %c0_i32_1 = arith.constant 0 : i32
    return %arg0, %c0_i32, %c0_i32_0 : i32, i32, i32
  }
  func.func @transform_17(%arg0: i32) -> (i32, i32, i32) {
    %c0_i32 = arith.constant 0 : i32
    %c0_i32_0 = arith.constant 0 : i32
    %c0_i32_1 = arith.constant 0 : i32
    return %arg0, %c0_i32, %c0_i32_0 : i32, i32, i32
  }
  func.func @transform_18(%arg0: i32) -> (i32, i32, i32, i32) {
    %c0_i32 = arith.constant 0 : i32
    %c0_i32_0 = arith.constant 0 : i32
    %c0_i32_1 = arith.constant 0 : i32
    %c0_i32_2 = arith.constant 0 : i32
    return %arg0, %c0_i32, %c0_i32_0, %c0_i32_1 : i32, i32, i32, i32
  }
  func.func @transform_19(%arg0: i32) -> (i32, i32, i32, i32) {
    %c0_i32 = arith.constant 0 : i32
    %c0_i32_0 = arith.constant 0 : i32
    %c0_i32_1 = arith.constant 0 : i32
    %c0_i32_2 = arith.constant 0 : i32
    return %arg0, %c0_i32, %c0_i32_0, %c0_i32_1 : i32, i32, i32, i32
  }
  func.func @transform_20(%arg0: i32) -> (i32, i32, i32, i32) {
    %c0_i32 = arith.constant 0 : i32
    %c0_i32_0 = arith.constant 0 : i32
    %c0_i32_1 = arith.constant 0 : i32
    %c0_i32_2 = arith.constant 0 : i32
    return %arg0, %c0_i32, %c0_i32_0, %c0_i32_1 : i32, i32, i32, i32
  }
  func.func @transform_21(%arg0: i32) -> (i32, i32, i32, i32) {
    %c0_i32 = arith.constant 0 : i32
    %c0_i32_0 = arith.constant 0 : i32
    %c0_i32_1 = arith.constant 0 : i32
    %c0_i32_2 = arith.constant 0 : i32
    return %arg0, %c0_i32, %c0_i32_0, %c0_i32_1 : i32, i32, i32, i32
  }
  func.func @transform_22(%arg0: i32) -> (i32, i32, i32, i32) {
    %c0_i32 = arith.constant 0 : i32
    %c0_i32_0 = arith.constant 0 : i32
    %c0_i32_1 = arith.constant 0 : i32
    %c0_i32_2 = arith.constant 0 : i32
    return %arg0, %c0_i32, %c0_i32_0, %c0_i32_1 : i32, i32, i32, i32
  }
}

</mosaic_0001>

<bundles_post_ra>
// kernel: _lambda_.1
= control target key start
LH: loop header
LB: loop body
LE: loop exit
PB: predicated region body
PF: predicated region fallthrough
CT: control target
= control target key end

     0   :  { %s4596_s0 = inlined_call_operand.vmem [shape: f32[2,16,32], index: 0, kind: input, shape index: {}]   ;;  %s4597_s1 = inlined_call_operand.vmem [shape: f32[2,8], index: 1, kind: input, shape index: {}]   ;;  %s4598_s2 = inlined_call_operand.vmem [shape: f32[2,1,32], index: 2, kind: input, shape index: {}]   ;;  %s4599_s3 = inlined_call_operand.vmem [shape: f32[2,1,32], index: 3, kind: input, shape index: {}]   ;;  %s4600_s4 = inlined_call_operand.vmem [shape: f32[2,2,32,96], index: 4, kind: input, shape index: {}]   ;;  %s4601_s5 = inlined_call_operand.vmem [shape: f32[2,2,1,96], index: 5, kind: input, shape index: {}]   ;;  %s4602_s6 = inlined_call_operand.vmem [shape: f32[2,2,32,32], index: 6, kind: input, shape index: {}]   ;;  %s4603_s7 = inlined_call_operand.vmem [shape: f32[2,2,1,32], index: 7, kind: input, shape index: {}]   ;;  %s4604_s8 = inlined_call_operand.vmem [shape: f32[2,2,1,32], index: 8, kind: input, shape index: {}]   ;;  %s4605_s9 = inlined_call_operand.vmem [shape: f32[2,2,1,32], index: 9, kind: input, shape index: {}]   ;;  %s4606_s10 = inlined_call_operand.vmem [shape: f32[2,2,32,64], index: 10, kind: input, shape index: {}]   ;;  %s4607_s11 = inlined_call_operand.vmem [shape: f32[2,2,1,64], index: 11, kind: input, shape index: {}]   ;;  %s4608_s12 = inlined_call_operand.vmem [shape: f32[2,2,64,32], index: 12, kind: input, shape index: {}]   ;;  %s4609_s13 = inlined_call_operand.vmem [shape: f32[2,2,1,32], index: 13, kind: input, shape index: {}]   ;;  %s4610_s14 = inlined_call_operand.vmem [shape: f32[2,2,1,32], index: 14, kind: input, shape index: {}]   ;;  %s4611_s15 = inlined_call_operand.vmem [shape: f32[2,2,1,32], index: 15, kind: input, shape index: {}]   ;;  %s4612_s16 = inlined_call_operand.vmem [shape: f32[2,32,32], index: 16, kind: input, shape index: {}]   ;;  %s4613_s17 = inlined_call_operand.vmem [shape: f32[2,1,32], index: 17, kind: input, shape index: {}]   ;;  %s4614_s18 = inlined_call_operand.vmem [shape: f32[2,2,32,32], index: 18, kind: input, shape index: {}]   ;;  %s4615_s19 = inlined_call_operand.vmem [shape: f32[2,2,1,32], index: 19, kind: input, shape index: {}]   ;;  %s4616_s20 = inlined_call_operand.vmem [shape: f32[2,2,32,128], index: 20, kind: input, shape index: {}]   ;;  %s4617_s21 = inlined_call_operand.vmem [shape: f32[2,2,1,128], index: 21, kind: input, shape index: {}]   ;;  %s4618_s22 = inlined_call_operand.vmem [shape: f32[2,2,2,128], index: 22, kind: output, shape index: {}]  }
   0x1   :  { %4642 = sst [smem:[#allocation3_spill]] %s4596_s0 }
   0x2   :  { %4643 = sst [smem:[#allocation4_spill]] %s4597_s1 }
   0x3   :  { %4644 = sst [smem:[#allocation5_spill]] %s4598_s2 }
   0x4   :  { %4645 = sst [smem:[#allocation6_spill]] %s4599_s3  ;;  %s4009_s3 = smov 0  }
   0x5   :  { %4646 = sst [smem:[#allocation7_spill]] %s4600_s4 }
   0x6   :  { %4647 = sst [smem:[#allocation8_spill]] %s4601_s5 }
   0x7   :  { %4648 = sst [smem:[#allocation9_spill]] %s4602_s6 }
   0x8   :  { %4649 = sst [smem:[#allocation10_spill]] %s4603_s7 }
   0x9   :  { %4650 = sst [smem:[#allocation11_spill]] %s4604_s8 }
   0xa   :  { %4651 = sst [smem:[#allocation12_spill]] %s4605_s9 }
   0xb   :  { %4652 = sst [smem:[#allocation13_spill]] %s4606_s10 }
   0xc   :  { %4653 = sst [smem:[#allocation14_spill]] %s4614_s18 }
   0xd   :  { %4654 = sst [smem:[#allocation15_spill]] %s4616_s20 }
   0xe   :  { %4655 = sst [smem:[#allocation16_spill]] %s4617_s21 }
   0xf   :  { %4656 = sst [smem:[#allocation17_spill]] %s4618_s22 }
  0x10 LB: > { %4657 = sst [smem:[#allocation2_spill]] %s3879_s3  ;;  %s3563_s28 = sadd.s32 4294967295, %s3879_s3   ;;  %s3879_s3 = sphi %s4009_s3, %s32_s3  }
  0x11   : > { %p3567_p0 = scmp.ge.s32.totalorder %s3879_s3, 1  ;;  %p796_p1 = scmp.lt.s32.totalorder %s3879_s3, 3 }
  0x13   : > { %p797_p2 = pnand %p3567_p0, %p796_p1 }
  0x14   : > { %p942_p3 = scmp.lt.s32.totalorder (!%p797_p2), %s3563_s28, 1  ;;  %s4658_s0 = sld [smem:[#allocation3_spill]] (!%p797_p2) }
  0x15   : > { %800 = sbr.rel (%p797_p2) target bundleno = 6289 (0x1891), region = 108  ;;  %s4659_s24 = sld [smem:[#allocation5_spill]] (!%p797_p2) }
  0x16   : > { %s4660_s2 = sld [smem:[#allocation6_spill]] (!%p797_p2)  ;;  %s4634_s20 = smov (!%p797_p2), 96  }
  0x17   : > { %s4662_s18 = sld [smem:[#allocation7_spill]] (!%p797_p2)  ;;  %s4636_s21 = smov (!%p797_p2), 88  }
  0x18   : > { %s4628_s25 = smov (!%p797_p2), 56   ;;  %s4624_s26 = smov (!%p797_p2), 64  }
  0x19   : > { %s4664_s4 = sld [smem:[#allocation9_spill]] (!%p797_p2)  ;;  %s4626_s5 = smov (!%p797_p2), 72  }
  0x1a   : > { %s4686_s28 = smov (!%p942_p3, %s3563_s28), 1  ;;  %vm1040_vm0 = vcmask 261120   ;;  %v3881_v2 = vmov 32.0   ;;  %vm1145_vm5 = vcmask 64512   ;;  %s4665_s7 = sld [smem:[#allocation10_spill]]  ;;  %vm2002_vm12 = vcmask 523264  }
  0x1b   : > { %s3720_s29 = sshll.u32 %s4686_s28, 4  ;;  %3773 = vrcp.f32 %v3881_v2  ;;  %s949_s6 = scalar_lea.vmem %s4659_s24, %s4686_s28 }
  0x1c   : > { %s4023_s23 = scalar_lea.vmem %s4658_s0, %s3720_s29  ;;  %s952_s27 = scalar_lea.vmem %s4660_s2, %s4686_s28  ;;  %v4062_v27 = vld [vmem:[%s949_s6] ss:$0 sm:$0xff] }
  0x1d   : > { %v1036_v0 = vld [vmem:[%s4023_s23] sm:$0xff]  ;;  %s4040_s29 = sshll.u32 %s4686_s28, 1  ;;  %s4661_s0 = sld [smem:[#allocation8_spill]]  ;;  %v1037_v63 = vld [vmem:[%s4023_s23 + $0x8] sm:$0xff] }
  0x1e   : > { %v1041_v1 = vsel %vm1040_vm0, %v1036_v0, 0.0  ;;  %s4049_s22 = sshll.u32 %s4686_s28, 6  ;;  %v4064_v30 = vld [vmem:[%s952_s27] ss:$0 sm:$0xff]  ;;  %s4663_s6 = sld [smem:[#allocation4_spill]] }
  0x1f   : > { %1042 = vadd.xlane.f32.xlu0 %v1041_v1  ;;  %s4055_s1 = scalar_lea.vmem %s4662_s18, %s4049_s22  ;;  %s4638_s18 = smov 120  }
  0x20   : > { %v1108_v14 = vld [vmem:[%s4055_s1 + $0x18] sm:$0xff]  ;;  %v1107_v15 = vld [vmem:[%s4055_s1 + $0x10] sm:$0xff]  ;;  %v1106_v16 = vld [vmem:[%s4055_s1 + $0x8] sm:$0xff]  ;;  %s4640_s2 = smov 112   ;;  %s4632_s27 = smov 80  }
  0x21   : > { %v3774_v3 = vpop.eup %3773  ;;  %1131 = vmatpush.msra.mxu0 %v1108_v14  ;;  %v1105_v17 = vld [vmem:[%s4055_s1] sm:$0xff]  ;;  %s4620_s24 = smov 104   ;;  %s4622_s23 = smov 40  }
  0x22   : > { %v1048_v4 = vmul.f32 32.0, %v3774_v3  ;;  %vm1052_vm1 = vweird.f32 %v3774_v3  ;;  %s4666_s8 = sld [smem:[#allocation11_spill]]  ;;  %s4674_s30 = smov 48  }
  0x23   : > { %s4046_s3 = scalar_lea.vmem %s4661_s0, %s4040_s29  ;;  %1132 = vmatpush.msra.mxu0 %v1107_v15  ;;  %s4123_s0 = scalar_lea.vmem %s4664_s4, %s4049_s22 }
  0x24   : > { %v1049_v5 = vsub.f32 1.0, %v1048_v4  ;;  %v4073_v33 = vld [vmem:[%s4046_s3] ss:$0 sm:$0xff]  ;;  %s4667_s9 = sld [smem:[#allocation12_spill]] }
  0x25   : > { %1133 = vmatpush.msra.mxu0 %v1106_v16  ;;  %v1102_v39 = vld [vmem:[%s4663_s6] sm:$0x3]  ;;  %v4132_v16 = vld [vmem:[%s4123_s0 + $0x8] sm:$0xff]  ;;  %s4630_s6 = smov 48   ;;  %s4668_s10 = sld [smem:[#allocation13_spill]] }
  0x26   : > { %v1050_v6 = vmul.f32 %v3774_v3, %v1049_v5  ;;  %v1103_v40 = vsub.f32 1.0, %v1102_v39  ;;  %v4128_v15 = vld [vmem:[%s4123_s0] sm:$0xff] }
  0x27   : > { %1134 = vmatpush.msra.mxu0 %v1105_v17 }
  0x28   : > { %v1051_v7 = vadd.f32 %v3774_v3, %v1050_v6  ;;  %v4092_v41 = vmul.f32 -10000.0, %v1103_v40 }
  0x2a   : > { %v4027_v8 = vsel %vm1052_vm1, %v3774_v3, %v1051_v7  ;;  %v4095_v42 = vperm.slane %v4092_v41, 0 }
  0x92   : > { %v1043_v9 = vpop.xlane.xlu0 %1042 }
  0x93   : > { %v1054_v10 = vmul.f32 %v4027_v8, %v1043_v9 }
  0x95   : > { %v1056_v11 = vsub.f32 %v1036_v0, %v1054_v10  ;;  %v1044_v0 = vsel %vm1040_vm0, %v1037_v63, 0.0 }
  0x97   : > { %v1058_v12 = vmul.f32 %v1056_v11, %v1056_v11 }
  0x99   : > { %v1060_v13 = vsel %vm1040_vm0, %v1058_v12, 0.0 }
  0x9a   : > { %1061 = vadd.xlane.f32.xlu0 %v1060_v13 }
 0x10d   : > { %v1062_v18 = vpop.xlane.xlu0 %1061 }
 0x10e   : > { %v1066_v19 = vmul.f32 %v1062_v18, %v4027_v8 }
 0x110   : > { %v1068_v20 = vadd.f32 1e-12, %v1066_v19 }
 0x112   : > { %3775 = vrsqrt.f32 %v1068_v20  ;;  %vm1076_vm3 = vweird.f32 %v1068_v20 }
 0x118   : > { %v3776_v21 = vpop.eup %3775 }
 0x119   : > { %v1071_v22 = vmul.f32 %v3776_v21, %v1068_v20  ;;  %vm1077_vm2 = vweird.f32 %v3776_v21 }
 0x11a   : > { %vm1078_vm4 = vmor %vm1076_vm3, %vm1077_vm2 }
 0x11b   : > { %v1072_v23 = vmul.f32 %v3776_v21, %v1071_v22 }
 0x11d   : > { %v1073_v24 = vmul.f32 0.5, %v1072_v23 }
 0x11f   : > { %v1074_v25 = vsub.f32 1.5, %v1073_v24 }
 0x121   : > { %v1075_v26 = vmul.f32 %v3776_v21, %v1074_v25 }
 0x123   : > { %v1079_v28 = vsel %vm1078_vm4, %v3776_v21, %v1075_v26 }
 0x124   : > { %v1090_v29 = vmul.f32 %v1079_v28, %v1056_v11 }
 0x126   : > { %v1095_v31 = vmul.f32 %v4062_v27, %v1090_v29 }
 0x128   : > { %v4068_v32 = vadd.f32 %v4064_v30, %v1095_v31 }
 0x12a   : > { %3596 = vmatmul.msk.f32.vlgmr.msra.gmra.mxu0 %vm1040_vm0, %v4068_v32 }
 0x1a7   : > { %v1136_v34 = vpop.f32.mrf.mxu0 }
 0x1a8   : > { %v4076_v35 = vadd.f32 %v4073_v33, %v1136_v34 }
 0x1aa   : > { %1214 = vrot.lane.b32.xlu2 %v4076_v35, %s4638_s18  ;;  %1143 = vrot.lane.b32.xlu1 %v4076_v35, %s4634_s20 }
 0x1b2   : > { %1216 = vrot.lane.b32.xlu1 %v4076_v35, %s4636_s21 }
 0x204   : > { %v1215_v38 = vpop.permute.xlu2 %1214 }
 0x21c   : > { %v1144_v36 = vpop.permute.xlu1 %1143 }
 0x21d   : > { %3598 = vmatpush.xpose.msk.msra.mxu1 %vm1145_vm5, %v1144_v36 }
 0x220   : > { %3599 = vmatmul.msk.f32.vlgmr.msra.gmra.mxu1 %vm1145_vm5, %v4076_v35 }
 0x221   : > { %1299 = vmatpush.msrb.mxu1 %v4132_v16 }
 0x224   : > { %v1217_v37 = vpop.permute.xlu1 %1216 }
 0x225   : > { %3601 = vmatpush.xpose.msk.msra.mxu3 %vm1145_vm5, %v1217_v37 }
 0x228   : > { %3602 = vmatmul.msk.f32.vlgmr.msra.gmra.mxu3 %vm1145_vm5, %v1215_v38 }
 0x229   : > { %1322 = vmatpush.msrb.mxu3 %v4128_v15 }
 0x29d   : > { %v1167_v43 = vpop.f32.mrf.mxu1 }
 0x29e   : > { %v1170_v44 = vmul.f32 0.35355338, %v1167_v43 }
 0x2a0   : > { %v1172_v45 = vadd.f32 %v4095_v42, %v1170_v44 }
 0x2a2   : > { %v1173_v46 = vsel %vm1145_vm5, %v1172_v45, -inf }
 0x2a3   : > { %1174 = vmax.xlane.f32.xlu2 %v1173_v46 }
 0x2ab   : > { %v1239_v47 = vpop.f32.mrf.mxu3 }
 0x2ac   : > { %v1242_v48 = vmul.f32 0.35355338, %v1239_v47 }
 0x2ae   : > { %v1243_v49 = vadd.f32 %v1242_v48, %v4095_v42 }
 0x2b0   : > { %v1244_v50 = vsel %vm1145_vm5, %v1243_v49, -inf }
 0x2b1   : > { %1245 = vmax.xlane.f32.xlu0 %v1244_v50 }
 0x2bb   : > { %1255 = vrot.lane.b32.xlu2 %v4076_v35, %s4628_s25 }
 0x2c5   : > { %1184 = vrot.lane.b32.xlu0 %v4076_v35, %s4624_s26 }
 0x316   : > { %v1175_v51 = vpop.xlane.xlu2 %1174 }
 0x317   : > { %v1176_v52 = vsub.f32 %v1172_v45, %v1175_v51 }
 0x319   : > { %v1177_v53 = vmul.f32 1.442695, %v1176_v52  ;;  %v1212_v52 = vld [vmem:[%s4123_s0 + $0x10] sm:$0xff] }
 0x31a   : > { %1412 = vmatpush.msra.mxu3 %v1212_v52 }
 0x31b   : > { %3777 = vpow2.f32 %v1177_v53 }
 0x31e   : > { %v1256_v62 = vpop.permute.xlu2 %1255 }
 0x321   : > { %v3778_v54 = vpop.eup %3777 }
 0x322   : > { %v1179_v55 = vsel %vm1145_vm5, %v3778_v54, 0.0 }
 0x323   : > { %1180 = vadd.xlane.f32.xlu1 %v1179_v55 }
 0x324   : > { %v1246_v56 = vpop.xlane.xlu0 %1245 }
 0x325   : > { %v1247_v57 = vsub.f32 %v1243_v49, %v1246_v56 }
 0x327   : > { %v1248_v58 = vmul.f32 1.442695, %v1247_v57 }
 0x329   : > { %3779 = vpow2.f32 %v1248_v58 }
 0x32f   : > { %v3780_v59 = vpop.eup %3779 }
 0x330   : > { %v1250_v60 = vsel %vm1145_vm5, %v3780_v59, 0.0 }
 0x331   : > { %1251 = vadd.xlane.f32.xlu0 %v1250_v60 }
 0x337   : > { %v1185_v61 = vpop.permute.xlu0 %1184 }
 0x338   : > { %1205 = vmatpush.msra.mxu2 %v1185_v61 }
 0x33a   : > { %1276 = vmatpush.msrb.mxu2 %v1256_v62 }
 0x33c   : > { %1327 = vrot.lane.b32.xlu1 %v4076_v35, %s4640_s2 }
 0x345   : > { %1329 = vrot.lane.b32.xlu0 %v4076_v35, %s4632_s27 }
 0x36f   : > { %1045 = vadd.xlane.f32.xlu0 %v1044_v0 }
 0x396   : > { %v1181_v1 = vpop.xlane.xlu1 %1180 }
 0x397   : > { %3781 = vrcp.f32 %v1181_v1 }
 0x39d   : > { %v3782_v2 = vpop.eup %3781 }
 0x39e   : > { %v1183_v3 = vmul.f32 %v3782_v2, %v3778_v54 }
 0x3a0   : > { %3600 = vmatmul.msk.f32.vlgmr.msra.gmra.mxu2 %vm1145_vm5, %v1183_v3 }
 0x3a4   : > { %v1252_v4 = vpop.xlane.xlu0 %1251 }
 0x3a5   : > { %3783 = vrcp.f32 %v1252_v4  ;;  %v4183_v4 = vperm.slane %v4092_v41, 1 }
 0x3ab   : > { %v3784_v5 = vpop.eup %3783 }
 0x3ac   : > { %v1254_v6 = vmul.f32 %v3784_v5, %v3780_v59 }
 0x3ae   : > { %3603 = vmatmul.msk.f32.vlgmr.msrb.gmra.mxu2 %vm1145_vm5, %v1254_v6  ;;  %v1328_v9 = vpop.permute.xlu1 %1327 }
 0x3b7   : > { %v1330_v7 = vpop.permute.xlu0 %1329 }
 0x3b8   : > { %3606 = vmatpush.xpose.msk.msra.mxu2 %vm1145_vm5, %v1330_v7 }
 0x3bb   : > { %3607 = vmatmul.msk.f32.vlgmr.msra.gmra.mxu2 %vm1145_vm5, %v1328_v9 }
 0x3e2   : > { %v1046_v10 = vpop.xlane.xlu0 %1045 }
 0x3e3   : > { %v1055_v11 = vmul.f32 %v4027_v8, %v1046_v10 }
 0x3e5   : > { %v1057_v12 = vsub.f32 %v1037_v63, %v1055_v11 }
 0x3e7   : > { %v1059_v13 = vmul.f32 %v1057_v12, %v1057_v12 }
 0x3e9   : > { %v1063_v14 = vsel %vm1040_vm0, %v1059_v13, 0.0 }
 0x3ea   : > { %1064 = vadd.xlane.f32.xlu2 %v1063_v14 }
 0x402   : > { %1420 = vrot.lane.b32.xlu2 %v4076_v35, %s4626_s5 }
 0x423   : > { %v1207_v17 = vpop.f32.mrf.mxu2 }
 0x424   : > { %3605 = vmatmul.msk.f32.vlgmr.msrb.gmra.mxu3 %vm1145_vm5, %v1207_v17 }
 0x431   : > { %v1278_v18 = vpop.f32.mrf.mxu2 }
 0x432   : > { %3604 = vmatmul.msk.f32.vlgmr.msrb.gmra.mxu1 %vm1145_vm5, %v1278_v18 }
 0x43e   : > { %v1352_v19 = vpop.f32.mrf.mxu2 }
 0x43f   : > { %v1355_v20 = vmul.f32 0.35355338, %v1352_v19 }
 0x441   : > { %v1356_v21 = vadd.f32 %v1355_v20, %v4095_v42 }
 0x443   : > { %v1357_v22 = vsel %vm1145_vm5, %v1356_v21, -inf }
 0x444   : > { %1358 = vmax.xlane.f32.xlu1 %v1357_v22 }
 0x45d   : > { %v1065_v23 = vpop.xlane.xlu2 %1064  ;;  %1418 = vrot.lane.b32.xlu1 %v4076_v35, %s4620_s24 }
 0x45e   : > { %v1067_v24 = vmul.f32 %v1065_v23, %v4027_v8  ;;  %v4203_v23 = vld [vmem:[%s4123_s0 + $0x18] sm:$0xff] }
 0x460   : > { %v1069_v25 = vadd.f32 1e-12, %v1067_v24 }
 0x462   : > { %3785 = vrsqrt.f32 %v1069_v25  ;;  %vm1086_vm6 = vweird.f32 %v1069_v25 }
 0x465   : > { %v1421_v26 = vpop.permute.xlu2 %1420 }
 0x466   : > { %3610 = vmatpush.xpose.msk.msrb.mxu0 %vm1145_vm5, %v1421_v26 }
 0x468   : > { %v3786_v28 = vpop.eup %3785 }
 0x469   : > { %v1081_v29 = vmul.f32 %v3786_v28, %v1069_v25  ;;  %vm1087_vm7 = vweird.f32 %v3786_v28 }
 0x46a   : > { %vm1088_vm8 = vmor %vm1086_vm6, %vm1087_vm7 }
 0x46b   : > { %v1082_v31 = vmul.f32 %v3786_v28, %v1081_v29 }
 0x46d   : > { %v1083_v34 = vmul.f32 0.5, %v1082_v31 }
 0x46f   : > { %v1084_v36 = vsub.f32 1.5, %v1083_v34 }
 0x471   : > { %v1085_v37 = vmul.f32 %v3786_v28, %v1084_v36 }
 0x473   : > { %v1089_v38 = vsel %vm1088_vm8, %v3786_v28, %v1085_v37 }
 0x474   : > { %v1091_v39 = vmul.f32 %v1089_v38, %v1057_v12 }
 0x476   : > { %v1096_v40 = vmul.f32 %v4062_v27, %v1091_v39 }
 0x478   : > { %v4145_v43 = vadd.f32 %v4064_v30, %v1096_v40 }
 0x47a   : > { %3597 = vmatmul.msk.f32.gmra.mxu0 %vm1040_vm0, %v4145_v43 }
 0x4a7   : > { %v4178_v2 = vpop.f32.mrf.mxu3 }
 0x4af   : > { %v4167_v59 = vpop.f32.mrf.mxu1 }
 0x4b7   : > { %v1359_v44 = vpop.xlane.xlu1 %1358 }
 0x4b8   : > { %v1360_v45 = vsub.f32 %v1356_v21, %v1359_v44 }
 0x4ba   : > { %v1361_v46 = vmul.f32 1.442695, %v1360_v45  ;;  %v1325_v45 = vadd.f32 %v4178_v2, %v4167_v59 }
 0x4bc   : > { %3787 = vpow2.f32 %v1361_v46 }
 0x4c2   : > { %v3788_v47 = vpop.eup %3787 }
 0x4c3   : > { %v1363_v48 = vsel %vm1145_vm5, %v3788_v47, 0.0 }
 0x4c4   : > { %1364 = vadd.xlane.f32.xlu0 %v1363_v48 }
 0x4cf   : > { %v1419_v49 = vpop.permute.xlu1 %1418 }
 0x4d0   : > { %3611 = vmatmul.msk.f32.vlgmr.msrb.gmra.mxu0 %vm1145_vm5, %v1419_v49 }
 0x4d8   : > { %1368 = vrot.lane.b32.xlu0 %v4076_v35, %s4630_s6 }
 0x4f7   : > { %v1139_v27 = vpop.f32.mrf.mxu0 }
 0x4f8   : > { %v4154_v30 = vadd.f32 %v4073_v33, %v1139_v27 }
 0x4fa   : > { %1510 = vrot.lane.b32.xlu0 %v4154_v30, %s4634_s20  ;;  %s4293_s20 = scalar_lea.vmem %s4609_s13, %s4040_s29 }
 0x537   : > { %v1365_v50 = vpop.xlane.xlu0 %1364 }
 0x538   : > { %3789 = vrcp.f32 %v1365_v50 }
 0x53e   : > { %v3790_v51 = vpop.eup %3789 }
 0x53f   : > { %v1367_v53 = vmul.f32 %v3790_v51, %v3788_v47 }
 0x54a   : > { %v1369_v54 = vpop.permute.xlu0 %1368 }
 0x54b   : > { %1389 = vmatpush.msra.mxu1 %v1369_v54 }
 0x54c   : > { %3608 = vmatmul.msk.f32.vlgmr.msra.gmra.mxu1 %vm1145_vm5, %v1367_v53 }
 0x54d   : > { %v1443_v55 = vpop.f32.mrf.mxu0  ;;  %1503 = vmatpush.msrb.mxu1 %v4203_v23 }
 0x54e   : > { %v1446_v56 = vmul.f32 0.35355338, %v1443_v55 }
 0x550   : > { %v1447_v57 = vadd.f32 %v1446_v56, %v4095_v42 }
 0x552   : > { %v1448_v33 = vsel %vm1145_vm5, %v1447_v57, -inf }
 0x553   : > { %1449 = vmax.xlane.f32.xlu0 %v1448_v33 }
 0x567   : > { %1578 = vrot.lane.b32.xlu0 %v4154_v30, %s4636_s21  ;;  %s3724_s21 = sshll.u32 %s4686_s28, 7 }
 0x568   : > { %s4299_s4 = scalar_lea.vmem %s4608_s12, %s3724_s21  ;;  %s4671_s21 = smov 88  }
 0x56c   : > { %v1511_v58 = vpop.permute.xlu0 %1510 }
 0x56d   : > { %3614 = vmatpush.xpose.msk.msrb.mxu3 %vm1145_vm5, %v1511_v58 }
 0x56f   : > { %1691 = vrot.lane.b32.xlu0 %v4154_v30, %s4632_s27  ;;  %s4332_s27 = scalar_lea.vmem %s4610_s14, %s4040_s29 }
 0x5c6   : > { %v1450_v60 = vpop.xlane.xlu0 %1449 }
 0x5c7   : > { %v1451_v61 = vsub.f32 %v1447_v57, %v1450_v60 }
 0x5c9   : > { %v1452_v62 = vmul.f32 1.442695, %v1451_v61  ;;  %v1391_v63 = vpop.f32.mrf.mxu1 }
 0x5ca   : > { %3609 = vmatmul.msk.f32.vlgmr.msra.gmra.mxu3 %vm1145_vm5, %v1391_v63 }
 0x5cb   : > { %3791 = vpow2.f32 %v1452_v62  ;;  %1661 = vmatpush.msra.mxu3 %v4132_v16 }
 0x5d1   : > { %v3792_v0 = vpop.eup %3791 }
 0x5d2   : > { %3615 = vmatmul.msk.f32.vlgmr.msrb.gmra.mxu3 %vm1145_vm5, %v4154_v30  ;;  %v1454_v1 = vsel %vm1145_vm5, %v3792_v0, 0.0 }
 0x5d3   : > { %1455 = vadd.xlane.f32.xlu1 %v1454_v1  ;;  %1774 = vmatpush.msrb.mxu3 %v1212_v52 }
 0x5d9   : > { %v1579_v11 = vpop.permute.xlu0 %1578 }
 0x5e1   : > { %v1692_v18 = vpop.permute.xlu0 %1691 }
 0x5ec   : > { %1576 = vrot.lane.b32.xlu1 %v4154_v30, %s4638_s18  ;;  %s4670_s18 = smov 120  }
 0x5f4   : > { %1782 = vrot.lane.b32.xlu1 %v4154_v30, %s4626_s5  ;;  %s4265_s5 = scalar_lea.vmem %s4668_s10, %s4049_s22  ;;  %s4678_s10 = smov 104  }
 0x646   : > { %v1456_v41 = vpop.xlane.xlu1 %1455 }
 0x647   : > { %3793 = vrcp.f32 %v1456_v41 }
 0x64d   : > { %v4180_v3 = vpop.f32.mrf.mxu3  ;;  %v3794_v14 = vpop.eup %3793 }
 0x64e   : > { %v1458_v16 = vmul.f32 %v3794_v14, %v3792_v0  ;;  %v1417_v46 = vadd.f32 %v4180_v3, %v1325_v45 }
 0x655   : > { %v1533_v5 = vpop.f32.mrf.mxu3 }
 0x656   : > { %v1536_v6 = vmul.f32 0.35355338, %v1533_v5 }
 0x658   : > { %v1538_v7 = vadd.f32 %v4183_v4, %v1536_v6 }
 0x65a   : > { %v1539_v9 = vsel %vm1145_vm5, %v1538_v7, -inf }
 0x65b   : > { %1540 = vmax.xlane.f32.xlu2 %v1539_v9 }
 0x65e   : > { %v1577_v21 = vpop.permute.xlu1 %1576 }
 0x666   : > { %v1783_v28 = vpop.permute.xlu1 %1782 }
 0x673   : > { %1459 = vrot.lane.b32.xlu2 %v4076_v35, %s4622_s23 }
 0x67b   : > { %1689 = vrot.lane.b32.xlu2 %v4154_v30, %s4640_s2  ;;  %s4338_s2 = scalar_lea.vmem %s4611_s15, %s4040_s29 }
 0x683   : > { %1550 = vrot.lane.b32.xlu2 %v4154_v30, %s4624_s26  ;;  %s4254_s26 = scalar_lea.vmem %s4667_s9, %s4040_s29  ;;  %s4677_s9 = smov 64  }
 0x68b   : > { %1780 = vrot.lane.b32.xlu2 %v4154_v30, %s4620_s24  ;;  %s4210_s24 = scalar_lea.vmem %s4665_s7, %s4040_s29  ;;  %s4675_s7 = smov 56  }
 0x68c   : > { %v4228_v47 = vld [vmem:[%s4210_s24] ss:$0 sm:$0xff] }
 0x6ce   : > { %v1541_v10 = vpop.xlane.xlu2 %1540 }
 0x6cf   : > { %v1542_v12 = vsub.f32 %v1538_v7, %v1541_v10 }
 0x6d1   : > { %v1543_v13 = vmul.f32 1.442695, %v1542_v12 }
 0x6d3   : > { %3795 = vpow2.f32 %v1543_v13 }
 0x6d6   : > { %v1460_v17 = vpop.permute.xlu2 %1459 }
 0x6d7   : > { %1480 = vmatpush.msrb.mxu2 %v1460_v17 }
 0x6d8   : > { %3612 = vmatmul.msk.f32.vlgmr.msrb.gmra.mxu2 %vm1145_vm5, %v1458_v16 }
 0x6d9   : > { %v3796_v35 = vpop.eup %3795  ;;  %3617 = vmatpush.xpose.msk.msra.mxu2 %vm1145_vm5, %v1579_v11 }
 0x6da   : > { %v1545_v19 = vsel %vm1145_vm5, %v3796_v35, 0.0 }
 0x6db   : > { %1546 = vadd.xlane.f32.xlu0 %v1545_v19 }
 0x6dd   : > { %3622 = vmatpush.xpose.msk.msrb.mxu2 %vm1145_vm5, %v1692_v18 }
 0x6de   : > { %v1690_v20 = vpop.permute.xlu2 %1689 }
 0x6e0   : > { %3618 = vmatmul.msk.f32.vlgmr.msra.gmra.mxu2 %vm1145_vm5, %v1577_v21 }
 0x6e6   : > { %v1551_v22 = vpop.permute.xlu2 %1550 }
 0x6e7   : > { %1571 = vmatpush.msra.mxu0 %v1551_v22 }
 0x6e8   : > { %3623 = vmatmul.msk.f32.vlgmr.msrb.gmra.mxu2 %vm1145_vm5, %v1690_v20 }
 0x6e9   : > { %1684 = vmatpush.msrb.mxu0 %v4128_v15 }
 0x6ee   : > { %v1781_v27 = vpop.permute.xlu2 %1780 }
 0x74e   : > { %v1547_v24 = vpop.xlane.xlu0 %1546 }
 0x74f   : > { %3797 = vrcp.f32 %v1547_v24 }
 0x755   : > { %v3798_v25 = vpop.eup %3797 }
 0x756   : > { %v1549_v26 = vmul.f32 %v3798_v25, %v3796_v35 }
 0x758   : > { %3616 = vmatmul.msk.f32.vlgmr.msra.gmra.mxu0 %vm1145_vm5, %v1549_v26 }
 0x759   : > { %3626 = vmatpush.xpose.msk.msra.mxu0 %vm1145_vm5, %v1783_v28 }
 0x75b   : > { %v1482_v29 = vpop.f32.mrf.mxu2 }
 0x75c   : > { %3613 = vmatmul.msk.f32.vlgmr.msrb.gmra.mxu1 %vm1145_vm5, %v1482_v29 }
 0x763   : > { %v1601_v15 = vpop.f32.mrf.mxu2 }
 0x764   : > { %v1604_v31 = vmul.f32 0.35355338, %v1601_v15  ;;  %v1938_v15 = vld [vmem:[%s4265_s5 + $0x18] sm:$0xff] }
 0x766   : > { %v1605_v34 = vadd.f32 %v1604_v31, %v4183_v4 }
 0x768   : > { %v1606_v36 = vsel %vm1145_vm5, %v1605_v34, -inf }
 0x769   : > { %1607 = vmax.xlane.f32.xlu1 %v1606_v36  ;;  %v1937_v36 = vld [vmem:[%s4265_s5 + $0x10] sm:$0xff] }
 0x76b   : > { %v1714_v37 = vpop.f32.mrf.mxu2 }
 0x76c   : > { %v1717_v38 = vmul.f32 0.35355338, %v1714_v37  ;;  %v1936_v37 = vld [vmem:[%s4265_s5 + $0x8] sm:$0xff] }
 0x76e   : > { %v1718_v39 = vadd.f32 %v1717_v38, %v4183_v4 }
 0x770   : > { %v1719_v40 = vsel %vm1145_vm5, %v1718_v39, -inf }
 0x771   : > { %1720 = vmax.xlane.f32.xlu2 %v1719_v40 }
 0x782   : > { %1730 = vrot.lane.b32.xlu1 %v4154_v30, %s4630_s6  ;;  %s4673_s6 = smov 80  }
 0x78a   : > { %1821 = vrot.lane.b32.xlu1 %v4154_v30, %s4622_s23  ;;  %s4244_s23 = scalar_lea.vmem %s4666_s8, %s4040_s29  ;;  %s4676_s8 = smov 72  }
 0x78b   : > { %v4273_v40 = vld [vmem:[%s4244_s23] ss:$0 sm:$0xff] }
 0x7d5   : > { %v1573_v44 = vpop.f32.mrf.mxu0 }
 0x7d6   : > { %3621 = vmatmul.msk.f32.vlgmr.msrb.gmra.mxu0 %vm1145_vm5, %v1573_v44 }
 0x7d9   : > { %v1505_v48 = vpop.f32.mrf.mxu1 }
 0x7da   : > { %v1508_v49 = vadd.f32 %v1505_v48, %v1417_v46  ;;  %v4278_v48 = vld [vmem:[%s4254_s26] ss:$0 sm:$0xff] }
 0x7dc   : > { %v1875_v50 = vadd.f32 %v4228_v47, %v1508_v49  ;;  %v1608_v51 = vpop.xlane.xlu1 %1607 }
 0x7dd   : > { %v1609_v52 = vsub.f32 %v1605_v34, %v1608_v51 }
 0x7de   : > { %3627 = vmatmul.msk.f32.vlgmr.msra.gmra.mxu0 %vm1145_vm5, %v1781_v27  ;;  %v1877_v53 = vadd.f32 %v1875_v50, %v4068_v32 }
 0x7df   : > { %v1610_v54 = vmul.f32 1.442695, %v1609_v52  ;;  %v1997_v52 = vld [vmem:[%s4299_s4 + $0x38] sm:$0xff] }
 0x7e0   : > { %v1881_v55 = vsel %vm1040_vm0, %v1877_v53, 0.0  ;;  %2017 = vmatpush.msrb.mxu0 %v1997_v52 }
 0x7e1   : > { %3799 = vpow2.f32 %v1610_v54  ;;  %1882 = vadd.xlane.f32.xlu2 %v1881_v55  ;;  %v1995_v54 = vld [vmem:[%s4299_s4 + $0x28] sm:$0xff] }
 0x7e4   : > { %v1721_v56 = vpop.xlane.xlu2 %1720 }
 0x7e5   : > { %v1722_v57 = vsub.f32 %v1718_v39, %v1721_v56  ;;  %v1935_v39 = vld [vmem:[%s4265_s5] sm:$0xff] }
 0x7e6   : > { %v1994_v56 = vld [vmem:[%s4299_s4 + $0x20] sm:$0xff] }
 0x7e7   : > { %v3800_v33 = vpop.eup %3799  ;;  %v1723_v58 = vmul.f32 1.442695, %v1722_v57  ;;  %v1993_v57 = vld [vmem:[%s4299_s4 + $0x18] sm:$0xff] }
 0x7e8   : > { %v1612_v59 = vsel %vm1145_vm5, %v3800_v33, 0.0 }
 0x7e9   : > { %3801 = vpow2.f32 %v1723_v58  ;;  %1613 = vadd.xlane.f32.xlu0 %v1612_v59  ;;  %v1991_v59 = vld [vmem:[%s4299_s4 + $0x8] sm:$0xff] }
 0x7ef   : > { %v3802_v60 = vpop.eup %3801 }
 0x7f0   : > { %v1725_v61 = vsel %vm1145_vm5, %v3802_v60, 0.0 }
 0x7f1   : > { %1726 = vadd.xlane.f32.xlu0 %v1725_v61  ;;  %v1990_v61 = vld [vmem:[%s4299_s4] sm:$0xff] }
 0x7f4   : > { %v1731_v62 = vpop.permute.xlu1 %1730 }
 0x7fc   : > { %v1822_v32 = vpop.permute.xlu1 %1821 }
 0x7fd   : > { %1842 = vmatpush.msra.mxu2 %v1822_v32 }
 0x805   : > { %1617 = vrot.lane.b32.xlu0 %v4154_v30, %s4628_s25  ;;  %s4284_s25 = scalar_lea.vmem %s4607_s11, %s4040_s29 }
 0x806   : > { %v4311_v32 = vld [vmem:[%s4284_s25] ss:$0 sm:$0xff] }
 0x853   : > { %v4238_v63 = vpop.f32.mrf.mxu0 }
 0x854   : > { %v1883_v0 = vpop.xlane.xlu2 %1882 }
 0x855   : > { %v1887_v2 = vmul.f32 %v1883_v0, %v4027_v8 }
 0x857   : > { %v1889_v6 = vsub.f32 %v1877_v53, %v1887_v2  ;;  %v1996_v53 = vld [vmem:[%s4299_s4 + $0x30] sm:$0xff] }
 0x858   : > { %2018 = vmatpush.msrb.mxu0 %v1996_v53 }
 0x859   : > { %v1891_v30 = vmul.f32 %v1889_v6, %v1889_v6 }
 0x85a   : > { %2019 = vmatpush.msrb.mxu0 %v1995_v54 }
 0x85b   : > { %v1805_v1 = vpop.f32.mrf.mxu0  ;;  %v1893_v41 = vsel %vm1040_vm0, %v1891_v30, 0.0 }
 0x85c   : > { %v1808_v3 = vmul.f32 0.35355338, %v1805_v1  ;;  %v1614_v9 = vpop.xlane.xlu0 %1613  ;;  %2020 = vmatpush.msrb.mxu0 %v1994_v56 }
 0x85d   : > { %3803 = vrcp.f32 %v1614_v9 }
 0x85e   : > { %v1809_v5 = vadd.f32 %v1808_v3, %v4183_v4  ;;  %2021 = vmatpush.msrb.mxu0 %v1993_v57 }
 0x860   : > { %v1810_v7 = vsel %vm1145_vm5, %v1809_v5, -inf }
 0x861   : > { %1811 = vmax.xlane.f32.xlu2 %v1810_v7 }
 0x863   : > { %v3804_v11 = vpop.eup %3803 }
 0x864   : > { %v1727_v10 = vpop.xlane.xlu0 %1726  ;;  %v1616_v12 = vmul.f32 %v3804_v11, %v3800_v33  ;;  %v1992_v33 = vld [vmem:[%s4299_s4 + $0x10] sm:$0xff]  ;;  %v4317_v11 = vld [vmem:[%s4293_s20] ss:$0 sm:$0xff] }
 0x865   : > { %3805 = vrcp.f32 %v1727_v10  ;;  %2022 = vmatpush.msrb.mxu0 %v1992_v33 }
 0x867   : > { %2023 = vmatpush.msrb.mxu0 %v1991_v59 }
 0x869   : > { %1894 = vadd.xlane.f32.xlu2 %v1893_v41  ;;  %2024 = vmatpush.msrb.mxu0 %v1990_v61 }
 0x86b   : > { %v3806_v14 = vpop.eup %3805 }
 0x86c   : > { %v1729_v16 = vmul.f32 %v3806_v14, %v3802_v60 }
 0x877   : > { %v1618_v13 = vpop.permute.xlu0 %1617 }
 0x878   : > { %1638 = vmatpush.msra.mxu1 %v1618_v13 }
 0x879   : > { %3619 = vmatmul.msk.f32.vlgmr.msra.gmra.mxu1 %vm1145_vm5, %v1616_v12 }
 0x87a   : > { %1751 = vmatpush.msrb.mxu1 %v1731_v62 }
 0x87c   : > { %1865 = vmatpush.msra.mxu1 %v4203_v23 }
 0x881   : > { %3624 = vmatmul.msk.f32.vlgmr.msrb.gmra.mxu1 %vm1145_vm5, %v1729_v16 }
 0x8d4   : > { %v1812_v17 = vpop.xlane.xlu2 %1811 }
 0x8d5   : > { %v1813_v35 = vsub.f32 %v1809_v5, %v1812_v17 }
 0x8d7   : > { %v1814_v18 = vmul.f32 1.442695, %v1813_v35 }
 0x8d9   : > { %3807 = vpow2.f32 %v1814_v18 }
 0x8dc   : > { %v1895_v19 = vpop.xlane.xlu2 %1894 }
 0x8dd   : > { %v1899_v20 = vmul.f32 %v1895_v19, %v4027_v8 }
 0x8df   : > { %v3808_v21 = vpop.eup %3807  ;;  %v1901_v22 = vadd.f32 1e-12, %v1899_v20 }
 0x8e0   : > { %v1816_v24 = vsel %vm1145_vm5, %v3808_v21, 0.0 }
 0x8e1   : > { %3809 = vrsqrt.f32 %v1901_v22  ;;  %1817 = vadd.xlane.f32.xlu0 %v1816_v24  ;;  %vm1909_vm10 = vweird.f32 %v1901_v22 }
 0x8e7   : > { %v3810_v25 = vpop.eup %3809 }
 0x8e8   : > { %v1904_v23 = vmul.f32 %v3810_v25, %v1901_v22  ;;  %vm1910_vm9 = vweird.f32 %v3810_v25 }
 0x8e9   : > { %vm1911_vm11 = vmor %vm1909_vm10, %vm1910_vm9 }
 0x8ea   : > { %v1905_v26 = vmul.f32 %v3810_v25, %v1904_v23 }
 0x8ec   : > { %v1906_v28 = vmul.f32 0.5, %v1905_v26 }
 0x8ee   : > { %v1907_v29 = vsub.f32 1.5, %v1906_v28 }
 0x8f0   : > { %v1908_v31 = vmul.f32 %v3810_v25, %v1907_v29 }
 0x8f2   : > { %v1912_v38 = vsel %vm1911_vm11, %v3810_v25, %v1908_v31 }
 0x8f3   : > { %v1923_v44 = vmul.f32 %v1912_v38, %v1889_v6  ;;  %v3634_v38 = vld [vmem:[%s4055_s1 + $0x20] sm:$0xff] }
 0x8f5   : > { %v1928_v46 = vmul.f32 %v4273_v40, %v1923_v44 }
 0x8f6   : > { %v1640_v34 = vpop.f32.mrf.mxu1 }
 0x8f7   : > { %3620 = vmatmul.msk.f32.vlgmr.msra.gmra.mxu3 %vm1145_vm5, %v1640_v34  ;;  %v1933_v49 = vadd.f32 %v4278_v48, %v1928_v46  ;;  %v3636_v34 = vld [vmem:[%s4055_s1 + $0x30] sm:$0xff] }
 0x8f8   : > { %1961 = vmatpush.msra.mxu3 %v1938_v15  ;;  %v3637_v15 = vld [vmem:[%s4055_s1 + $0x38] sm:$0xff] }
 0x8f9   : > { %2118 = vmatpush.msrb.mxu2 %v3637_v15 }
 0x8fa   : > { %1962 = vmatpush.msra.mxu3 %v1937_v36 }
 0x8fb   : > { %2119 = vmatpush.msrb.mxu2 %v3636_v34 }
 0x8fc   : > { %1963 = vmatpush.msra.mxu3 %v1936_v37  ;;  %v3635_v37 = vld [vmem:[%s4055_s1 + $0x28] sm:$0xff]  ;;  %s4669_s1 = smov 112  }
 0x8fd   : > { %2120 = vmatpush.msrb.mxu2 %v3635_v37 }
 0x8fe   : > { %v1753_v45 = vpop.f32.mrf.mxu1  ;;  %1964 = vmatpush.msra.mxu3 %v1935_v39 }
 0x8ff   : > { %3625 = vmatmul.msk.f32.vlgmr.msrb.gmra.mxu3 %vm1145_vm5, %v1753_v45  ;;  %2121 = vmatpush.msrb.mxu2 %v3634_v38 }
 0x907   : > { %3630 = vmatmul.msk.f32.vlgmr.msra.gmra.mxu3 %vm1040_vm0, %v1933_v49 }
 0x954   : > { %v1818_v27 = vpop.xlane.xlu0 %1817 }
 0x955   : > { %3811 = vrcp.f32 %v1818_v27 }
 0x95b   : > { %v3812_v50 = vpop.eup %3811 }
 0x95c   : > { %v1820_v51 = vmul.f32 %v3812_v50, %v3808_v21 }
 0x95e   : > { %3628 = vmatmul.msk.f32.vlgmr.msra.gmra.mxu2 %vm1145_vm5, %v1820_v51 }
 0x97a   : > { %v1663_v55 = vpop.f32.mrf.mxu3 }
 0x97b   : > { %v1687_v58 = vadd.f32 %v4238_v63, %v1663_v55 }
 0x982   : > { %v1776_v60 = vpop.f32.mrf.mxu3 }
 0x983   : > { %v1779_v62 = vadd.f32 %v1776_v60, %v1687_v58 }
 0x98a   : > { %v1966_v0 = vpop.f32.mrf.mxu3 }
 0x98b   : > { %v1967_v1 = vadd.f32 %v4311_v32, %v1966_v0  ;;  %v4349_v0 = vld [vmem:[%s4332_s27] ss:$0 sm:$0xff] }
 0x98d   : > { %v1972_v2 = vmul.f32 %v1967_v1, %v1967_v1 }
 0x98f   : > { %v1974_v3 = vmul.f32 %v1972_v2, %v1967_v1 }
 0x991   : > { %v1976_v5 = vmul.f32 0.044715, %v1974_v3  ;;  %v4353_v3 = vld [vmem:[%s4338_s2] ss:$0 sm:$0xff] }
 0x993   : > { %v1978_v6 = vadd.f32 %v1976_v5, %v1967_v1 }
 0x995   : > { %v1980_v7 = vmul.f32 0.7978846, %v1978_v6 }
 0x997   : > { %3813 = vtanh.f32 %v1980_v7 }
 0x99d   : > { %v3814_v30 = vpop.eup %3813 }
 0x99e   : > { %v1984_v63 = vadd.f32 1.0, %v3814_v30 }
 0x9a0   : > { %v1986_v9 = vmul.f32 0.5, %v1984_v63  ;;  %v4363_v63 = vld [vmem:[%s4046_s3 + $0x1] ss:$0 sm:$0xff]  ;;  %s4672_s3 = smov 96  }
 0x9a2   : > { %v1988_v41 = vmul.f32 %v1986_v9, %v1967_v1 }
 0x9a4   : > { %3632 = vmatmul.msk.f32.vlgmr.msrb.gmra.mxu0 %vm2002_vm12, %v1988_v41 }
 0x9e1   : > { %v1844_v10 = vpop.f32.mrf.mxu2 }
 0x9e2   : > { %3629 = vmatmul.msk.f32.vlgmr.msra.gmra.mxu1 %vm1145_vm5, %v1844_v10 }
 0xa21   : > { %v2026_v12 = vpop.f32.mrf.mxu0 }
 0xa22   : > { %v2027_v13 = vadd.f32 %v4317_v11, %v2026_v12 }
 0xa24   : > { %v2032_v14 = vadd.f32 %v2027_v13, %v1933_v49 }
 0xa26   : > { %v2036_v16 = vsel %vm1040_vm0, %v2032_v14, 0.0 }
 0xa27   : > { %2037 = vadd.xlane.f32.xlu1 %v2036_v16 }
 0xa5f   : > { %v1867_v17 = vpop.f32.mrf.mxu1 }
 0xa60   : > { %v1870_v35 = vadd.f32 %v1867_v17, %v1779_v62 }
 0xa62   : > { %v1876_v18 = vadd.f32 %v4228_v47, %v1870_v35 }
 0xa64   : > { %v1878_v19 = vadd.f32 %v1876_v18, %v4145_v43 }
 0xa66   : > { %v1884_v20 = vsel %vm1040_vm0, %v1878_v19, 0.0 }
 0xa67   : > { %1885 = vadd.xlane.f32.xlu2 %v1884_v20 }
 0xa9a   : > { %v2038_v21 = vpop.xlane.xlu1 %2037 }
 0xa9b   : > { %v2042_v25 = vmul.f32 %v2038_v21, %v4027_v8 }
 0xa9d   : > { %v2044_v47 = vsub.f32 %v2032_v14, %v2042_v25 }
 0xa9f   : > { %v2046_v43 = vmul.f32 %v2044_v47, %v2044_v47 }
 0xaa1   : > { %v2048_v29 = vsel %vm1040_vm0, %v2046_v43, 0.0 }
 0xada   : > { %v1886_v22 = vpop.xlane.xlu2 %1885 }
 0xadb   : > { %v1888_v24 = vmul.f32 %v1886_v22, %v4027_v8 }
 0xadd   : > { %v1890_v23 = vsub.f32 %v1878_v19, %v1888_v24 }
 0xadf   : > { %v1892_v26 = vmul.f32 %v1890_v23, %v1890_v23 }
 0xae1   : > { %v1896_v28 = vsel %vm1040_vm0, %v1892_v26, 0.0 }
 0xae2   : > { %1897 = vadd.xlane.f32.xlu2 %v1896_v28 }
 0xaea   : > { %2049 = vadd.xlane.f32.xlu2 %v2048_v29 }
 0xb55   : > { %v1898_v31 = vpop.xlane.xlu2 %1897 }
 0xb56   : > { %v1900_v36 = vmul.f32 %v1898_v31, %v4027_v8 }
 0xb58   : > { %v1902_v39 = vadd.f32 1e-12, %v1900_v36 }
 0xb5a   : > { %3815 = vrsqrt.f32 %v1902_v39  ;;  %vm1919_vm14 = vweird.f32 %v1902_v39 }
 0xb5d   : > { %v2050_v44 = vpop.xlane.xlu2 %2049 }
 0xb5e   : > { %v2054_v45 = vmul.f32 %v2050_v44, %v4027_v8 }
 0xb60   : > { %v3816_v46 = vpop.eup %3815  ;;  %v2056_v49 = vadd.f32 1e-12, %v2054_v45 }
 0xb61   : > { %v1914_v27 = vmul.f32 %v3816_v46, %v1902_v39  ;;  %vm1920_vm13 = vweird.f32 %v3816_v46 }
 0xb62   : > { %3817 = vrsqrt.f32 %v2056_v49  ;;  %vm1921_vm15 = vmor %vm1919_vm14, %vm1920_vm13  ;;  %vm2064_vm2 = vweird.f32 %v2056_v49 }
 0xb63   : > { %v1915_v50 = vmul.f32 %v3816_v46, %v1914_v27 }
 0xb65   : > { %v1916_v51 = vmul.f32 0.5, %v1915_v50 }
 0xb67   : > { %v1917_v52 = vsub.f32 1.5, %v1916_v51 }
 0xb68   : > { %v3818_v53 = vpop.eup %3817 }
 0xb69   : > { %v1918_v54 = vmul.f32 %v3816_v46, %v1917_v52  ;;  %v2059_v55 = vmul.f32 %v3818_v53, %v2056_v49  ;;  %vm2065_vm1 = vweird.f32 %v3818_v53 }
 0xb6a   : > { %vm2066_vm3 = vmor %vm2064_vm2, %vm2065_vm1 }
 0xb6b   : > { %v1922_v56 = vsel %vm1921_vm15, %v3816_v46, %v1918_v54  ;;  %v2060_v57 = vmul.f32 %v3818_v53, %v2059_v55 }
 0xb6c   : > { %v1924_v33 = vmul.f32 %v1922_v56, %v1890_v23 }
 0xb6d   : > { %v2061_v58 = vmul.f32 0.5, %v2060_v57 }
 0xb6e   : > { %v1929_v59 = vmul.f32 %v4273_v40, %v1924_v33 }
 0xb6f   : > { %v2062_v60 = vsub.f32 1.5, %v2061_v58 }
 0xb70   : > { %v1934_v61 = vadd.f32 %v4278_v48, %v1929_v59 }
 0xb71   : > { %v2063_v62 = vmul.f32 %v3818_v53, %v2062_v60 }
 0xb72   : > { %3631 = vmatmul.msk.f32.gmra.mxu3 %vm1040_vm0, %v1934_v61 }
 0xb73   : > { %v2067_v1 = vsel %vm2066_vm3, %v3818_v53, %v2063_v62 }
 0xb74   : > { %v2078_v2 = vmul.f32 %v2067_v1, %v2044_v47 }
 0xb76   : > { %v2083_v5 = vmul.f32 %v4349_v0, %v2078_v2 }
 0xb78   : > { %v4357_v40 = vadd.f32 %v4353_v3, %v2083_v5 }
 0xb7a   : > { %3639 = vmatmul.msk.f32.vlgmr.msrb.gmra.mxu2 %vm1040_vm0, %v4357_v40 }
 0xbf5   : > { %v1969_v48 = vpop.f32.mrf.mxu3 }
 0xbf6   : > { %v1970_v6 = vadd.f32 %v4311_v32, %v1969_v48 }
 0xbf8   : > { %v1973_v7 = vmul.f32 %v1970_v6, %v1970_v6 }
 0xbfa   : > { %v1975_v30 = vmul.f32 %v1973_v7, %v1970_v6 }
 0xbfc   : > { %v1977_v9 = vmul.f32 0.044715, %v1975_v30 }
 0xbfd   : > { %v2123_v41 = vpop.f32.mrf.mxu2 }
 0xbfe   : > { %v1979_v10 = vadd.f32 %v1977_v9, %v1970_v6  ;;  %v4366_v12 = vadd.f32 %v4363_v63, %v2123_v41 }
 0xc00   : > { %2313 = vrot.lane.b32.xlu1 %v4366_v12, %s4669_s1  ;;  %2200 = vrot.lane.b32.xlu0 %v4366_v12, %s4670_s18  ;;  %v1981_v13 = vmul.f32 0.7978846, %v1979_v10 }
 0xc01   : > { %2202 = vrot.lane.b32.xlu2 %v4366_v12, %s4671_s21 }
 0xc02   : > { %3819 = vtanh.f32 %v1981_v13 }
 0xc08   : > { %v3820_v32 = vpop.eup %3819  ;;  %2130 = vrot.lane.b32.xlu0 %v4366_v12, %s4672_s3 }
 0xc09   : > { %2315 = vrot.lane.b32.xlu2 %v4366_v12, %s4673_s6  ;;  %v1985_v14 = vadd.f32 1.0, %v3820_v32 }
 0xc0b   : > { %v1987_v16 = vmul.f32 0.5, %v1985_v14 }
 0xc0d   : > { %v1989_v17 = vmul.f32 %v1987_v16, %v1970_v6  ;;  %v3644_v16 = vld [vmem:[%s4123_s0 + $0x20] sm:$0xff] }
 0xc0f   : > { %3633 = vmatmul.msk.f32.gmra.mxu0 %vm2002_vm12, %v1989_v17 }
 0xc5b   : > { %v2203_v35 = vpop.permute.xlu2 %2202 }
 0xc5c   : > { %3648 = vmatpush.xpose.msk.msrb.mxu3 %vm1145_vm5, %v2203_v35 }
 0xc60   : > { %2308 = vmatpush.msra.mxu3 %v3644_v16 }
 0xc63   : > { %v2316_v18 = vpop.permute.xlu2 %2315 }
 0xc64   : > { %3653 = vmatpush.xpose.msk.msra.mxu0 %vm1145_vm5, %v2316_v18 }
 0xc72   : > { %v2314_v19 = vpop.permute.xlu1 %2313  ;;  %v2201_v20 = vpop.permute.xlu0 %2200 }
 0xc73   : > { %3649 = vmatmul.msk.f32.vlgmr.msrb.gmra.mxu3 %vm1145_vm5, %v2201_v20  ;;  %3654 = vmatmul.msk.f32.vlgmr.msra.gmra.mxu0 %vm1145_vm5, %v2314_v19 }
 0xc7a   : > { %v2131_v21 = vpop.permute.xlu0 %2130 }
 0xc7b   : > { %3641 = vmatpush.xpose.msk.msrb.mxu1 %vm1145_vm5, %v2131_v21 }
 0xc7e   : > { %3642 = vmatmul.msk.f32.vlgmr.msrb.gmra.mxu1 %vm1145_vm5, %v4366_v12 }
 0xc8c   : > { %v2029_v22 = vpop.f32.mrf.mxu0 }
 0xc8d   : > { %v2030_v24 = vadd.f32 %v4317_v11, %v2029_v22 }
 0xc8f   : > { %v2033_v25 = vadd.f32 %v2030_v24, %v1934_v61 }
 0xc91   : > { %v2039_v23 = vsel %vm1040_vm0, %v2033_v25, 0.0 }
 0xc92   : > { %2040 = vadd.xlane.f32.xlu2 %v2039_v23 }
 0xcf0   : > { %v2338_v26 = vpop.f32.mrf.mxu0 }
 0xcf1   : > { %v2341_v47 = vmul.f32 0.35355338, %v2338_v26 }
 0xcf3   : > { %v2342_v28 = vadd.f32 %v2341_v47, %v4095_v42 }
 0xcf5   : > { %v2343_v43 = vsel %vm1145_vm5, %v2342_v28, -inf }
 0xcf6   : > { %v2225_v29 = vpop.f32.mrf.mxu3  ;;  %2344 = vmax.xlane.f32.xlu2 %v2343_v43  ;;  %v3645_v43 = vld [vmem:[%s4123_s0 + $0x28] sm:$0xff] }
 0xcf7   : > { %v2228_v15 = vmul.f32 0.35355338, %v2225_v29  ;;  %v3646_v29 = vld [vmem:[%s4123_s0 + $0x30] sm:$0xff] }
 0xcf9   : > { %v2229_v31 = vadd.f32 %v2228_v15, %v4095_v42 }
 0xcfb   : > { %v2230_v34 = vsel %vm1145_vm5, %v2229_v31, -inf  ;;  %v2153_v38 = vpop.f32.mrf.mxu1 }
 0xcfc   : > { %2231 = vmax.xlane.f32.xlu0 %v2230_v34  ;;  %v2156_v44 = vmul.f32 0.35355338, %v2153_v38 }
 0xcfe   : > { %v2157_v46 = vadd.f32 %v2156_v44, %v4095_v42 }
 0xd00   : > { %v2158_v49 = vsel %vm1145_vm5, %v2157_v46, -inf }
 0xd05   : > { %v2041_v36 = vpop.xlane.xlu2 %2040 }
 0xd06   : > { %v2043_v11 = vmul.f32 %v2041_v36, %v4027_v8 }
 0xd08   : > { %v2045_v37 = vsub.f32 %v2033_v25, %v2043_v11 }
 0xd0a   : > { %v2047_v39 = vmul.f32 %v2045_v37, %v2045_v37 }
 0xd0c   : > { %v2051_v45 = vsel %vm1040_vm0, %v2047_v39, 0.0 }
 0xd0d   : > { %2052 = vadd.xlane.f32.xlu1 %v2051_v45 }
 0xd15   : > { %2159 = vmax.xlane.f32.xlu1 %v2158_v49 }
 0xd69   : > { %v2345_v27 = vpop.xlane.xlu2 %2344 }
 0xd6a   : > { %v2346_v50 = vsub.f32 %v2342_v28, %v2345_v27 }
 0xd6c   : > { %v2347_v51 = vmul.f32 1.442695, %v2346_v50 }
 0xd6e   : > { %3821 = vpow2.f32 %v2347_v51 }
 0xd6f   : > { %v2232_v52 = vpop.xlane.xlu0 %2231 }
 0xd70   : > { %v2233_v53 = vsub.f32 %v2229_v31, %v2232_v52 }
 0xd72   : > { %v2234_v54 = vmul.f32 1.442695, %v2233_v53 }
 0xd74   : > { %v3822_v55 = vpop.eup %3821  ;;  %3823 = vpow2.f32 %v2234_v54 }
 0xd75   : > { %v2349_v56 = vsel %vm1145_vm5, %v3822_v55, 0.0 }
 0xd76   : > { %2350 = vadd.xlane.f32.xlu0 %v2349_v56 }
 0xd7a   : > { %v3824_v57 = vpop.eup %3823 }
 0xd7b   : > { %v2236_v33 = vsel %vm1145_vm5, %v3824_v57, 0.0 }
 0xd7c   : > { %2237 = vadd.xlane.f32.xlu2 %v2236_v33 }
 0xd80   : > { %v2053_v58 = vpop.xlane.xlu1 %2052 }
 0xd81   : > { %v2055_v59 = vmul.f32 %v2053_v58, %v4027_v8 }
 0xd83   : > { %v2057_v60 = vadd.f32 1e-12, %v2055_v59 }
 0xd85   : > { %3825 = vrsqrt.f32 %v2057_v60  ;;  %vm2074_vm6 = vweird.f32 %v2057_v60 }
 0xd88   : > { %v2160_v61 = vpop.xlane.xlu1 %2159 }
 0xd89   : > { %v2161_v62 = vsub.f32 %v2157_v46, %v2160_v61 }
 0xd8a   : > { %2354 = vrot.lane.b32.xlu0 %v4366_v12, %s4674_s30 }
 0xd8b   : > { %v3826_v1 = vpop.eup %3825  ;;  %v2162_v2 = vmul.f32 1.442695, %v2161_v62 }
 0xd8c   : > { %v2069_v5 = vmul.f32 %v3826_v1, %v2057_v60  ;;  %vm2075_vm4 = vweird.f32 %v3826_v1 }
 0xd8d   : > { %3827 = vpow2.f32 %v2162_v2  ;;  %vm2076_vm7 = vmor %vm2074_vm6, %vm2075_vm4  ;;  %vm3091_vm6 = vcmask 130048  }
 0xd8e   : > { %v2070_v48 = vmul.f32 %v3826_v1, %v2069_v5 }
 0xd90   : > { %v2071_v6 = vmul.f32 0.5, %v2070_v48 }
 0xd92   : > { %v2072_v7 = vsub.f32 1.5, %v2071_v6 }
 0xd93   : > { %v3828_v30 = vpop.eup %3827 }
 0xd94   : > { %v2073_v9 = vmul.f32 %v3826_v1, %v2072_v7  ;;  %2241 = vrot.lane.b32.xlu2 %v4366_v12, %s4675_s7  ;;  %v2164_v41 = vsel %vm1145_vm5, %v3828_v30, 0.0 }
 0xd95   : > { %2165 = vadd.xlane.f32.xlu1 %v2164_v41 }
 0xd96   : > { %v2077_v10 = vsel %vm2076_vm7, %v3826_v1, %v2073_v9 }
 0xd97   : > { %v2079_v13 = vmul.f32 %v2077_v10, %v2045_v37 }
 0xd99   : > { %v2084_v32 = vmul.f32 %v4349_v0, %v2079_v13 }
 0xd9b   : > { %v4406_v14 = vadd.f32 %v4353_v3, %v2084_v32 }
 0xd9c   : > { %2406 = vrot.lane.b32.xlu2 %v4366_v12, %s4676_s8 }
 0xd9d   : > { %3640 = vmatmul.msk.f32.gmra.mxu2 %vm1040_vm0, %v4406_v14 }
 0xdae   : > { %2169 = vrot.lane.b32.xlu1 %v4366_v12, %s4677_s9 }
 0xde9   : > { %v2351_v35 = vpop.xlane.xlu0 %2350 }
 0xdef   : > { %v2238_v17 = vpop.xlane.xlu2 %2237 }
 0xdf0   : > { %3829 = vrcp.f32 %v2238_v17 }
 0xdf1   : > { %3831 = vrcp.f32 %v2351_v35 }
 0xdf6   : > { %v3830_v18 = vpop.eup %3829 }
 0xdf7   : > { %v2240_v0 = vmul.f32 %v3830_v18, %v3824_v57  ;;  %v2242_v19 = vpop.permute.xlu2 %2241  ;;  %v3832_v3 = vpop.eup %3831 }
 0xdf8   : > { %2262 = vmatpush.msra.mxu2 %v2242_v19  ;;  %v2353_v21 = vmul.f32 %v3832_v3, %v3822_v55 }
 0xdf9   : > { %3650 = vmatmul.msk.f32.vlgmr.msra.gmra.mxu2 %vm1145_vm5, %v2240_v0 }
 0xdfc   : > { %v2355_v20 = vpop.permute.xlu0 %2354 }
 0xdfd   : > { %2375 = vmatpush.msrb.mxu2 %v2355_v20 }
 0xdff   : > { %v2407_v22 = vpop.permute.xlu2 %2406 }
 0xe00   : > { %3657 = vmatpush.xpose.msk.msrb.mxu3 %vm1145_vm5, %v2407_v22 }
 0xe01   : > { %3655 = vmatmul.msk.f32.vlgmr.msrb.gmra.mxu2 %vm1145_vm5, %v2353_v21 }
 0xe08   : > { %v2166_v24 = vpop.xlane.xlu1 %2165 }
 0xe09   : > { %3833 = vrcp.f32 %v2166_v24 }
 0xe0f   : > { %v3834_v25 = vpop.eup %3833 }
 0xe10   : > { %v2168_v23 = vmul.f32 %v3834_v25, %v3828_v30 }
 0xe20   : > { %v2126_v26 = vpop.f32.mrf.mxu2  ;;  %v2170_v47 = vpop.permute.xlu1 %2169 }
 0xe21   : > { %v4419_v28 = vadd.f32 %v4363_v63, %v2126_v26  ;;  %2190 = vmatpush.msra.mxu1 %v2170_v47 }
 0xe22   : > { %3643 = vmatmul.msk.f32.vlgmr.msra.gmra.mxu1 %vm1145_vm5, %v2168_v23 }
 0xe23   : > { %2535 = vrot.lane.b32.xlu1 %v4419_v28, %s4677_s9  ;;  %2496 = vrot.lane.b32.xlu0 %v4419_v28, %s4672_s3  ;;  %s4679_s9 = smov 40   ;;  %s4681_s3 = sld [smem:[#allocation16_spill]] }
 0xe24   : > { %2285 = vmatpush.msrb.mxu1 %v3645_v43 }
 0xe26   : > { %2398 = vmatpush.msra.mxu1 %v3646_v29 }
 0xe2b   : > { %2404 = vrot.lane.b32.xlu0 %v4366_v12, %s4678_s10 }
 0xe7c   : > { %v2264_v15 = vpop.f32.mrf.mxu2 }
 0xe7d   : > { %3651 = vmatmul.msk.f32.vlgmr.msrb.gmra.mxu1 %vm1145_vm5, %v2264_v15 }
 0xe84   : > { %v2377_v63 = vpop.f32.mrf.mxu2 }
 0xe85   : > { %3656 = vmatmul.msk.f32.vlgmr.msra.gmra.mxu1 %vm1145_vm5, %v2377_v63 }
 0xe95   : > { %v2497_v31 = vpop.permute.xlu0 %2496  ;;  %v2536_v36 = vpop.permute.xlu1 %2535 }
 0xe96   : > { %3661 = vmatpush.xpose.msk.msrb.mxu1 %vm1145_vm5, %v2497_v31 }
 0xe99   : > { %3662 = vmatmul.msk.f32.vlgmr.msrb.gmra.mxu1 %vm1145_vm5, %v4419_v28 }
 0xe9a   : > { %2646 = vmatpush.msra.mxu1 %v3645_v43 }
 0xe9c   : > { %2759 = vmatpush.msrb.mxu1 %v3646_v29 }
 0xe9d   : > { %v2405_v11 = vpop.permute.xlu0 %2404 }
 0xe9f   : > { %v2192_v34 = vpop.f32.mrf.mxu1 }
 0xea0   : > { %3652 = vmatmul.msk.f32.vlgmr.msra.gmra.mxu3 %vm1145_vm5, %v2192_v34 }
 0xea1   : > { %2556 = vmatpush.msra.mxu3 %v2536_v36 }
 0xea8   : > { %3658 = vmatmul.msk.f32.vlgmr.msrb.gmra.mxu3 %vm1145_vm5, %v2405_v11 }
 0xea9   : > { %2669 = vmatpush.msrb.mxu3 %v3644_v16  ;;  %v4467_v16 = vld [vmem:[%s4123_s0 + $0x38] sm:$0xff]  ;;  %s1012_s0 = scalar_lea.vmem %s4613_s17, %s4686_s28 }
 0xeaa   : > { %2489 = vmatpush.msra.mxu2 %v4467_v16 }
 0xefa   : > { %v2287_v37 = vpop.f32.mrf.mxu1 }
 0xf02   : > { %v2400_v38 = vpop.f32.mrf.mxu1 }
 0xf16   : > { %v2519_v39 = vpop.f32.mrf.mxu1 }
 0xf17   : > { %v2522_v44 = vmul.f32 0.35355338, %v2519_v39 }
 0xf19   : > { %v2523_v45 = vadd.f32 %v2522_v44, %v4183_v4 }
 0xf1b   : > { %v2524_v46 = vsel %vm1145_vm5, %v2523_v45, -inf }
 0xf1c   : > { %2525 = vmax.xlane.f32.xlu2 %v2524_v46 }
 0xf23   : > { %v2310_v49 = vpop.f32.mrf.mxu3 }
 0xf24   : > { %v2311_v27 = vadd.f32 %v2310_v49, %v2287_v37 }
 0xf26   : > { %v4439_v50 = vadd.f32 %v2400_v38, %v2311_v27 }
 0xf2b   : > { %v2429_v51 = vpop.f32.mrf.mxu3 }
 0xf2c   : > { %v2432_v52 = vmul.f32 0.35355338, %v2429_v51 }
 0xf2e   : > { %v2433_v53 = vadd.f32 %v2432_v52, %v4095_v42 }
 0xf30   : > { %v2434_v54 = vsel %vm1145_vm5, %v2433_v53, -inf }
 0xf31   : > { %2435 = vmax.xlane.f32.xlu1 %v2434_v54 }
 0xf4a   : > { %2561 = vrot.lane.b32.xlu1 %v4419_v28, %s4670_s18 }
 0xf8f   : > { %v2526_v55 = vpop.xlane.xlu2 %2525 }
 0xf90   : > { %v2527_v56 = vsub.f32 %v2523_v45, %v2526_v55  ;;  %v4489_v45 = vld [vmem:[%s4210_s24 + $0x1] ss:$0 sm:$0xff] }
 0xf92   : > { %v2528_v57 = vmul.f32 1.442695, %v2527_v56 }
 0xf94   : > { %3835 = vpow2.f32 %v2528_v57 }
 0xf9a   : > { %v3836_v33 = vpop.eup %3835 }
 0xf9b   : > { %v2530_v58 = vsel %vm1145_vm5, %v3836_v33, 0.0 }
 0xf9c   : > { %2531 = vadd.xlane.f32.xlu0 %v2530_v58 }
 0xfa4   : > { %v2436_v59 = vpop.xlane.xlu1 %2435 }
 0xfa5   : > { %v2437_v60 = vsub.f32 %v2433_v53, %v2436_v59 }
 0xfa7   : > { %v2438_v61 = vmul.f32 1.442695, %v2437_v60 }
 0xfa9   : > { %3837 = vpow2.f32 %v2438_v61 }
 0xfaf   : > { %v3838_v62 = vpop.eup %3837 }
 0xfb0   : > { %2445 = vrot.lane.b32.xlu0 %v4366_v12, %s4679_s9  ;;  %v2440_v42 = vsel %vm1145_vm5, %v3838_v62, 0.0 }
 0xfb1   : > { %2441 = vadd.xlane.f32.xlu2 %v2440_v42 }
 0xfb8   : > { %2767 = vrot.lane.b32.xlu0 %v4419_v28, %s4676_s8 }
 0xfbc   : > { %v2562_v13 = vpop.permute.xlu1 %2561 }
 0xfc0   : > { %2676 = vrot.lane.b32.xlu0 %v4419_v28, %s4673_s6  ;;  %s4577_s6 = scalar_lea.vmem %s4681_s3, %s4040_s29 }
 0xfc9   : > { %2563 = vrot.lane.b32.xlu2 %v4419_v28, %s4671_s21 }
 0xfd1   : > { %2765 = vrot.lane.b32.xlu2 %v4419_v28, %s4678_s10 }
 0xfd9   : > { %2674 = vrot.lane.b32.xlu2 %v4419_v28, %s4669_s1 }
0x100f   : > { %v2532_v1 = vpop.xlane.xlu0 %2531 }
0x1010   : > { %3839 = vrcp.f32 %v2532_v1 }
0x1016   : > { %v3840_v12 = vpop.eup %3839 }
0x1017   : > { %v2534_v2 = vmul.f32 %v3840_v12, %v3836_v33 }
0x1019   : > { %3663 = vmatmul.msk.f32.vlgmr.msra.gmra.mxu3 %vm1145_vm5, %v2534_v2 }
0x1022   : > { %v2446_v5 = vpop.permute.xlu0 %2445 }
0x1023   : > { %2466 = vmatpush.msrb.mxu0 %v2446_v5 }
0x1024   : > { %v2442_v48 = vpop.xlane.xlu2 %2441 }
0x1025   : > { %3841 = vrcp.f32 %v2442_v48 }
0x102a   : > { %v2768_v6 = vpop.permute.xlu0 %2767 }
0x102b   : > { %v3842_v7 = vpop.eup %3841  ;;  %3673 = vmatpush.xpose.msk.msra.mxu3 %vm1145_vm5, %v2768_v6 }
0x102c   : > { %v2444_v30 = vmul.f32 %v3842_v7, %v3838_v62  ;;  %v2564_v9 = vpop.permute.xlu2 %2563 }
0x102d   : > { %3664 = vmatpush.xpose.msk.msra.mxu0 %vm1145_vm5, %v2564_v9  ;;  %v3682_v9 = vld [vmem:[%s4265_s5 + $0x30] sm:$0xff] }
0x102e   : > { %3659 = vmatmul.msk.f32.vlgmr.msrb.gmra.mxu0 %vm1145_vm5, %v2444_v30  ;;  %v3683_v30 = vld [vmem:[%s4265_s5 + $0x38] sm:$0xff] }
0x1032   : > { %v2677_v41 = vpop.permute.xlu0 %2676 }
0x1033   : > { %3669 = vmatpush.xpose.msk.msrb.mxu0 %vm1145_vm5, %v2677_v41  ;;  %v3681_v41 = vld [vmem:[%s4265_s5 + $0x28] sm:$0xff] }
0x1034   : > { %v2766_v10 = vpop.permute.xlu2 %2765 }
0x1036   : > { %3665 = vmatmul.msk.f32.vlgmr.msra.gmra.mxu0 %vm1145_vm5, %v2562_v13 }
0x103c   : > { %v2675_v32 = vpop.permute.xlu2 %2674 }
0x103e   : > { %3670 = vmatmul.msk.f32.vlgmr.msrb.gmra.mxu0 %vm1145_vm5, %v2675_v32 }
0x109c   : > { %v2558_v17 = vpop.f32.mrf.mxu3 }
0x109d   : > { %3668 = vmatmul.msk.f32.vlgmr.msrb.gmra.mxu3 %vm1145_vm5, %v2558_v17 }
0x10a5   : > { %3674 = vmatmul.msk.f32.vlgmr.msra.gmra.mxu3 %vm1145_vm5, %v2766_v10  ;;  %v3680_v10 = vld [vmem:[%s4265_s5 + $0x20] sm:$0xff] }
0x10ab   : > { %v2468_v35 = vpop.f32.mrf.mxu0 }
0x10ac   : > { %3660 = vmatmul.msk.f32.vlgmr.msra.gmra.mxu2 %vm1145_vm5, %v2468_v35 }
0x10b3   : > { %v2586_v18 = vpop.f32.mrf.mxu0 }
0x10b4   : > { %v2589_v0 = vmul.f32 0.35355338, %v2586_v18 }
0x10b6   : > { %v2590_v19 = vadd.f32 %v2589_v0, %v4183_v4 }
0x10b8   : > { %v2591_v3 = vsel %vm1145_vm5, %v2590_v19, -inf }
0x10b9   : > { %2592 = vmax.xlane.f32.xlu0 %v2591_v3 }
0x10bb   : > { %v2699_v20 = vpop.f32.mrf.mxu0 }
0x10bc   : > { %v2702_v21 = vmul.f32 0.35355338, %v2699_v20  ;;  %v4511_v20 = vld [vmem:[%s4244_s23 + $0x1] ss:$0 sm:$0xff] }
0x10be   : > { %v2703_v22 = vadd.f32 %v2702_v21, %v4183_v4 }
0x10c0   : > { %v2704_v24 = vsel %vm1145_vm5, %v2703_v22, -inf }
0x10c1   : > { %2705 = vmax.xlane.f32.xlu1 %v2704_v24  ;;  %v4514_v24 = vld [vmem:[%s4254_s26 + $0x1] ss:$0 sm:$0xff] }
0x1120   : > { %v4477_v25 = vpop.f32.mrf.mxu3 }
0x1128   : > { %v2790_v23 = vpop.f32.mrf.mxu3 }
0x1129   : > { %v2793_v26 = vmul.f32 0.35355338, %v2790_v23 }
0x112b   : > { %v2794_v47 = vadd.f32 %v2793_v26, %v4183_v4 }
0x112c   : > { %v2593_v43 = vpop.xlane.xlu0 %2592 }
0x112d   : > { %v2594_v29 = vsub.f32 %v2590_v19, %v2593_v43  ;;  %v2795_v15 = vsel %vm1145_vm5, %v2794_v47, -inf }
0x112e   : > { %2796 = vmax.xlane.f32.xlu2 %v2795_v15 }
0x112f   : > { %v2595_v63 = vmul.f32 1.442695, %v2594_v29  ;;  %v2491_v4 = vpop.f32.mrf.mxu2 }
0x1130   : > { %v2494_v44 = vadd.f32 %v2491_v4, %v4439_v50  ;;  %v3687_v4 = vld [vmem:[%s4299_s4 + $0x40] sm:$0xff] }
0x1131   : > { %3843 = vpow2.f32 %v2595_v63 }
0x1132   : > { %v2861_v46 = vadd.f32 %v4489_v45, %v2494_v44 }
0x1134   : > { %v2706_v31 = vpop.xlane.xlu1 %2705  ;;  %v2863_v49 = vadd.f32 %v2861_v46, %v4357_v40 }
0x1135   : > { %v2707_v34 = vsub.f32 %v2703_v22, %v2706_v31  ;;  %v3694_v31 = vld [vmem:[%s4299_s4 + $0x78] sm:$0xff] }
0x1136   : > { %v2869_v27 = vsel %vm1040_vm0, %v2863_v49, 0.0  ;;  %3008 = vmatpush.msrb.mxu3 %v3694_v31 }
0x1137   : > { %v3844_v36 = vpop.eup %3843  ;;  %v2708_v11 = vmul.f32 1.442695, %v2707_v34  ;;  %v3693_v34 = vld [vmem:[%s4299_s4 + $0x70] sm:$0xff] }
0x1138   : > { %v2597_v37 = vsel %vm1145_vm5, %v3844_v36, 0.0  ;;  %3009 = vmatpush.msrb.mxu3 %v3693_v34 }
0x1139   : > { %3845 = vpow2.f32 %v2708_v11  ;;  %2598 = vadd.xlane.f32.xlu0 %v2597_v37  ;;  %v3691_v11 = vld [vmem:[%s4299_s4 + $0x60] sm:$0xff]  ;;  %v3690_v37 = vld [vmem:[%s4299_s4 + $0x58] sm:$0xff] }
0x113f   : > { %v3846_v38 = vpop.eup %3845 }
0x1140   : > { %v2710_v39 = vsel %vm1145_vm5, %v3846_v38, 0.0 }
0x1141   : > { %2711 = vadd.xlane.f32.xlu1 %v2710_v39  ;;  %v3688_v39 = vld [vmem:[%s4299_s4 + $0x48] sm:$0xff] }
0x1146   : > { %2602 = vrot.lane.b32.xlu2 %v4419_v28, %s4675_s7  ;;  %s3725_s7 = sshll.u32 %s4686_s28, 5 }
0x115a   : > { %2715 = vrot.lane.b32.xlu1 %v4419_v28, %s4674_s30 }
0x116f   : > { %2870 = vadd.xlane.f32.xlu2 %v2869_v27 }
0x11a1   : > { %v2797_v51 = vpop.xlane.xlu2 %2796 }
0x11a2   : > { %v2798_v52 = vsub.f32 %v2794_v47, %v2797_v51 }
0x11a4   : > { %v2799_v53 = vmul.f32 1.442695, %v2798_v52 }
0x11a6   : > { %3847 = vpow2.f32 %v2799_v53 }
0x11a9   : > { %v2603_v54 = vpop.permute.xlu2 %2602 }
0x11aa   : > { %2623 = vmatpush.msrb.mxu2 %v2603_v54 }
0x11ac   : > { %v3848_v55 = vpop.eup %3847  ;;  %v2599_v56 = vpop.xlane.xlu0 %2598 }
0x11ad   : > { %3849 = vrcp.f32 %v2599_v56  ;;  %v2801_v50 = vsel %vm1145_vm5, %v3848_v55, 0.0 }
0x11ae   : > { %2802 = vadd.xlane.f32.xlu0 %v2801_v50 }
0x11b3   : > { %v3850_v57 = vpop.eup %3849 }
0x11b4   : > { %v2601_v33 = vmul.f32 %v3850_v57, %v3844_v36  ;;  %v2712_v40 = vpop.xlane.xlu1 %2711  ;;  %v3692_v36 = vld [vmem:[%s4299_s4 + $0x68] sm:$0xff] }
0x11b5   : > { %3851 = vrcp.f32 %v2712_v40  ;;  %3010 = vmatpush.msrb.mxu3 %v3692_v36 }
0x11b6   : > { %3666 = vmatmul.msk.f32.vlgmr.msrb.gmra.mxu2 %vm1145_vm5, %v2601_v33 }
0x11b7   : > { %3011 = vmatpush.msrb.mxu3 %v3691_v11 }
0x11b9   : > { %3012 = vmatpush.msrb.mxu3 %v3690_v37 }
0x11bb   : > { %v3852_v58 = vpop.eup %3851 }
0x11bc   : > { %v2714_v59 = vmul.f32 %v3852_v58, %v3846_v38  ;;  %v3689_v38 = vld [vmem:[%s4299_s4 + $0x50] sm:$0xff] }
0x11bd   : > { %3013 = vmatpush.msrb.mxu3 %v3689_v38 }
0x11bf   : > { %3014 = vmatpush.msrb.mxu3 %v3688_v39 }
0x11c1   : > { %3015 = vmatpush.msrb.mxu3 %v3687_v4 }
0x11c2   : > { %2806 = vrot.lane.b32.xlu0 %v4419_v28, %s4679_s9 }
0x11cc   : > { %v2716_v60 = vpop.permute.xlu1 %2715 }
0x11cd   : > { %2736 = vmatpush.msra.mxu2 %v2716_v60 }
0x11ce   : > { %3671 = vmatmul.msk.f32.vlgmr.msra.gmra.mxu2 %vm1145_vm5, %v2714_v59 }
0x11cf   : > { %2850 = vmatpush.msrb.mxu2 %v4467_v16 }
0x11e2   : > { %v2871_v61 = vpop.xlane.xlu2 %2870 }
0x11e3   : > { %v2875_v62 = vmul.f32 %v2871_v61, %v4027_v8 }
0x11e5   : > { %v2877_v42 = vsub.f32 %v2863_v49, %v2875_v62  ;;  %v3765_v62 = vld [vmem:[%s4293_s20 + $0x1] ss:$0 sm:$0xff]  ;;  %s1009_s20 = scalar_lea.vmem %s4612_s16, %s3725_s7  ;;  %s4682_s7 = sld [smem:[#allocation15_spill]] }
0x11e7   : > { %v2879_v1 = vmul.f32 %v2877_v42, %v2877_v42 }
0x11e9   : > { %v2881_v12 = vsel %vm1040_vm0, %v2879_v1, 0.0 }
0x11ea   : > { %2882 = vadd.xlane.f32.xlu1 %v2881_v12 }
0x11eb   : > { %s1026_s8 = scalar_lea.vmem %s4682_s7, %s4049_s22 }
0x1221   : > { %v2803_v28 = vpop.xlane.xlu0 %2802 }
0x1222   : > { %3853 = vrcp.f32 %v2803_v28 }
0x1228   : > { %v3854_v2 = vpop.eup %3853 }
0x1229   : > { %v2805_v5 = vmul.f32 %v3854_v2, %v3848_v55 }
0x1234   : > { %v2807_v48 = vpop.permute.xlu0 %2806 }
0x1235   : > { %2827 = vmatpush.msra.mxu0 %v2807_v48 }
0x1236   : > { %3675 = vmatmul.msk.f32.vlgmr.msra.gmra.mxu0 %vm1145_vm5, %v2805_v5 }
0x1239   : > { %v2625_v6 = vpop.f32.mrf.mxu2 }
0x123a   : > { %3667 = vmatmul.msk.f32.vlgmr.msra.gmra.mxu1 %vm1145_vm5, %v2625_v6 }
0x123b   : > { %2951 = vmatpush.msra.mxu1 %v3683_v30 }
0x123d   : > { %2952 = vmatpush.msra.mxu1 %v3682_v9 }
0x123f   : > { %2953 = vmatpush.msra.mxu1 %v3681_v41 }
0x1241   : > { %2954 = vmatpush.msra.mxu1 %v3680_v10 }
0x1251   : > { %v2738_v7 = vpop.f32.mrf.mxu2 }
0x1252   : > { %3672 = vmatmul.msk.f32.vlgmr.msrb.gmra.mxu1 %vm1145_vm5, %v2738_v7 }
0x125d   : > { %v2883_v13 = vpop.xlane.xlu1 %2882 }
0x125e   : > { %v2887_v32 = vmul.f32 %v2883_v13, %v4027_v8 }
0x1260   : > { %v2889_v16 = vadd.f32 1e-12, %v2887_v32 }
0x1262   : > { %3855 = vrsqrt.f32 %v2889_v16  ;;  %vm2897_vm9 = vweird.f32 %v2889_v16 }
0x1268   : > { %v3856_v17 = vpop.eup %3855 }
0x1269   : > { %v2892_v35 = vmul.f32 %v3856_v17, %v2889_v16  ;;  %vm2898_vm8 = vweird.f32 %v3856_v17 }
0x126a   : > { %vm2899_vm10 = vmor %vm2897_vm9, %vm2898_vm8 }
0x126b   : > { %v2893_v18 = vmul.f32 %v3856_v17, %v2892_v35 }
0x126d   : > { %v2894_v0 = vmul.f32 0.5, %v2893_v18 }
0x126f   : > { %v2895_v19 = vsub.f32 1.5, %v2894_v0 }
0x1271   : > { %v2896_v3 = vmul.f32 %v3856_v17, %v2895_v19 }
0x1273   : > { %v2900_v21 = vsel %vm2899_vm10, %v3856_v17, %v2896_v3 }
0x1274   : > { %v2911_v22 = vmul.f32 %v2900_v21, %v2877_v42 }
0x1276   : > { %v2916_v23 = vmul.f32 %v4511_v20, %v2911_v22 }
0x1278   : > { %v2921_v26 = vadd.f32 %v4514_v24, %v2916_v23 }
0x127a   : > { %3685 = vmatmul.msk.f32.vlgmr.msra.gmra.mxu1 %vm1040_vm0, %v2921_v26 }
0x12b3   : > { %v2829_v47 = vpop.f32.mrf.mxu0 }
0x12b4   : > { %3676 = vmatmul.msk.f32.vlgmr.msrb.gmra.mxu2 %vm1145_vm5, %v2829_v47 }
0x12b7   : > { %v2648_v43 = vpop.f32.mrf.mxu1 }
0x12b8   : > { %v2672_v29 = vadd.f32 %v4477_v25, %v2648_v43  ;;  %v3764_v25 = vld [vmem:[%s4284_s25 + $0x1] ss:$0 sm:$0xff] }
0x12cf   : > { %v2761_v15 = vpop.f32.mrf.mxu1 }
0x12d0   : > { %v2764_v63 = vadd.f32 %v2761_v15, %v2672_v29 }
0x12f7   : > { %v2956_v44 = vpop.f32.mrf.mxu1 }
0x12f8   : > { %v2957_v46 = vadd.f32 %v3764_v25, %v2956_v44 }
0x12fa   : > { %v2962_v49 = vmul.f32 %v2957_v46, %v2957_v46 }
0x12fc   : > { %v2964_v27 = vmul.f32 %v2962_v49, %v2957_v46 }
0x12fe   : > { %v2966_v51 = vmul.f32 0.044715, %v2964_v27 }
0x1300   : > { %v2968_v52 = vadd.f32 %v2966_v51, %v2957_v46 }
0x1302   : > { %v2970_v53 = vmul.f32 0.7978846, %v2968_v52 }
0x1304   : > { %3857 = vtanh.f32 %v2970_v53 }
0x130a   : > { %v3858_v54 = vpop.eup %3857 }
0x130b   : > { %v2974_v55 = vadd.f32 1.0, %v3858_v54  ;;  %v3118_v54 = vld [vmem:[%s1009_s20 + $0x18] sm:$0xff] }
0x130c   : > { %3138 = vmatpush.msra.mxu2 %v3118_v54  ;;  %v3772_v54 = vld [vmem:[%s4577_s6] ss:$0 sm:$0xff] }
0x130d   : > { %v2976_v56 = vmul.f32 0.5, %v2974_v55  ;;  %v3117_v55 = vld [vmem:[%s1009_s20 + $0x10] sm:$0xff] }
0x130e   : > { %3139 = vmatpush.msra.mxu2 %v3117_v55 }
0x130f   : > { %v2978_v50 = vmul.f32 %v2976_v56, %v2957_v46 }
0x1311   : > { %3696 = vmatmul.msk.f32.vlgmr.msrb.gmra.mxu3 %vm2002_vm12, %v2978_v50 }
0x1337   : > { %v2852_v57 = vpop.f32.mrf.mxu2 }
0x1338   : > { %v2855_v33 = vadd.f32 %v2852_v57, %v2764_v63  ;;  %v3116_v57 = vld [vmem:[%s1009_s20 + $0x8] sm:$0xff] }
0x1339   : > { %3140 = vmatpush.msra.mxu2 %v3116_v57 }
0x133a   : > { %v2862_v40 = vadd.f32 %v4489_v45, %v2855_v33 }
0x133c   : > { %v2864_v58 = vadd.f32 %v2862_v40, %v4406_v14  ;;  %v3115_v40 = vld [vmem:[%s1009_s20] sm:$0xff]  ;;  %s4683_s20 = sld [smem:[#allocation17_spill]] }
0x133d   : > { %3141 = vmatpush.msra.mxu2 %v3115_v40 }
0x133e   : > { %v2872_v59 = vsel %vm1040_vm0, %v2864_v58, 0.0 }
0x133f   : > { %2873 = vadd.xlane.f32.xlu0 %v2872_v59 }
0x1394   : > { %v3017_v1 = vpop.f32.mrf.mxu3 }
0x1395   : > { %v3018_v28 = vadd.f32 %v3765_v62, %v3017_v1  ;;  %v3083_v1 = vlaneseq }
0x1397   : > { %v3023_v5 = vadd.f32 %v3018_v28, %v2921_v26 }
0x1399   : > { %v3029_v48 = vsel %vm1040_vm0, %v3023_v5, 0.0 }
0x13b2   : > { %v2874_v60 = vpop.xlane.xlu0 %2873 }
0x13b3   : > { %v2876_v61 = vmul.f32 %v2874_v60, %v4027_v8 }
0x13b5   : > { %v2878_v42 = vsub.f32 %v2864_v58, %v2876_v61 }
0x13b7   : > { %v2880_v12 = vmul.f32 %v2878_v42, %v2878_v42 }
0x13b9   : > { %v2884_v2 = vsel %vm1040_vm0, %v2880_v12, 0.0 }
0x13ba   : > { %2885 = vadd.xlane.f32.xlu2 %v2884_v2  ;;  %v3084_v2 = vshrl.u32 %v3083_v1, 7 }
0x13c2   : > { %3030 = vadd.xlane.f32.xlu2 %v3029_v48  ;;  %v3766_v48 = vld [vmem:[%s4332_s27 + $0x1] ss:$0 sm:$0xff]  ;;  %s4680_s27 = sld [smem:[#allocation14_spill]] }
0x13c8   : > { %s1017_s1 = scalar_lea.vmem %s4680_s27, %s4049_s22  ;;  %s3728_s22 = sshll.u32 %s4686_s28, 2 }
0x13c9   : > { %s1035_s25 = scalar_lea.vmem %s4683_s20, %s3728_s22 }
0x142d   : > { %v2886_v45 = vpop.xlane.xlu2 %2885 }
0x142e   : > { %v2888_v14 = vmul.f32 %v2886_v45, %v4027_v8 }
0x1430   : > { %v2890_v6 = vadd.f32 1e-12, %v2888_v14 }
0x1432   : > { %3859 = vrsqrt.f32 %v2890_v6  ;;  %vm2907_vm11 = vweird.f32 %v2890_v6 }
0x1435   : > { %v3031_v15 = vpop.xlane.xlu2 %3030 }
0x1438   : > { %v3860_v7 = vpop.eup %3859 }
0x1439   : > { %v2902_v30 = vmul.f32 %v3860_v7, %v2890_v6  ;;  %vm2908_vm5 = vweird.f32 %v3860_v7  ;;  %v3086_v6 = vand.u32 127, %v3083_v1 }
0x143a   : > { %vm2909_vm13 = vmor %vm2907_vm11, %vm2908_vm5 }
0x143b   : > { %v2903_v9 = vmul.f32 %v3860_v7, %v2902_v30 }
0x143d   : > { %v2904_v41 = vmul.f32 0.5, %v2903_v9 }
0x143f   : > { %v2905_v10 = vsub.f32 1.5, %v2904_v41  ;;  %v3767_v41 = vld [vmem:[%s4338_s2 + $0x1] ss:$0 sm:$0xff]  ;;  %s4565_s2 = scalar_lea.vmem %s4615_s19, %s4040_s29 }
0x1441   : > { %v2906_v13 = vmul.f32 %v3860_v7, %v2905_v10 }
0x1443   : > { %v2910_v32 = vsel %vm2909_vm13, %v3860_v7, %v2906_v13  ;;  %v3087_v7 = vmul.u32 8, %v3084_v2 }
0x1444   : > { %v2912_v16 = vmul.f32 %v2910_v32, %v2878_v42 }
0x1445   : > { %vm3088_vm4 = vcmp.eq.s32.totalorder %v3086_v6, %v3087_v7 }
0x1446   : > { %v2917_v17 = vmul.f32 %v4511_v20, %v2912_v16  ;;  %v3893_v16 = vmov 0.0  }
0x1448   : > { %v2922_v35 = vadd.f32 %v4514_v24, %v2917_v17  ;;  %v3035_v24 = vmul.f32 %v3031_v15, %v4027_v8  ;;  %v3700_v17 = vsel %vm3088_vm4, 1.0, %v3893_v16 }
0x144a   : > { %3686 = vmatmul.msk.f32.gmra.mxu1 %vm1040_vm0, %v2922_v35  ;;  %v3037_v34 = vsub.f32 %v3023_v5, %v3035_v24  ;;  %v3714_v24 = vld [vmem:[%s1026_s8 + $0x38] sm:$0xff] }
0x144c   : > { %v3039_v11 = vmul.f32 %v3037_v34, %v3037_v34 }
0x144e   : > { %v3041_v37 = vsel %vm1040_vm0, %v3039_v11, 0.0  ;;  %v3179_v11 = vld [vmem:[%s1026_s8] sm:$0xff] }
0x14c7   : > { %v2959_v18 = vpop.f32.mrf.mxu1 }
0x14c8   : > { %v2960_v0 = vadd.f32 %v3764_v25, %v2959_v18  ;;  %v3708_v18 = vld [vmem:[%s1017_s1 + $0x38] sm:$0xff] }
0x14c9   : > { %3233 = vmatpush.msrb.mxu1 %v3708_v18 }
0x14ca   : > { %v2963_v19 = vmul.f32 %v2960_v0, %v2960_v0 }
0x14cc   : > { %v2965_v3 = vmul.f32 %v2963_v19, %v2960_v0  ;;  %v3149_v19 = vld [vmem:[%s1017_s1 + $0x10] sm:$0xff] }
0x14ce   : > { %v2967_v21 = vmul.f32 0.044715, %v2965_v3  ;;  %v3707_v3 = vld [vmem:[%s1017_s1 + $0x30] sm:$0xff] }
0x14cf   : > { %3234 = vmatpush.msrb.mxu1 %v3707_v3 }
0x14d0   : > { %v2969_v22 = vadd.f32 %v2967_v21, %v2960_v0  ;;  %v3148_v21 = vld [vmem:[%s1017_s1 + $0x8] sm:$0xff] }
0x14d2   : > { %v2971_v23 = vmul.f32 0.7978846, %v2969_v22  ;;  %v3706_v22 = vld [vmem:[%s1017_s1 + $0x28] sm:$0xff] }
0x14d3   : > { %3235 = vmatpush.msrb.mxu1 %v3706_v22 }
0x14d4   : > { %3861 = vtanh.f32 %v2971_v23  ;;  %v3147_v23 = vld [vmem:[%s1017_s1] sm:$0xff] }
0x14da   : > { %v3862_v26 = vpop.eup %3861 }
0x14db   : > { %v2975_v47 = vadd.f32 1.0, %v3862_v26  ;;  %v3705_v26 = vld [vmem:[%s1017_s1 + $0x20] sm:$0xff] }
0x14dc   : > { %3236 = vmatpush.msrb.mxu1 %v3705_v26 }
0x14dd   : > { %v2977_v43 = vmul.f32 0.5, %v2975_v47  ;;  %v3768_v47 = vld [vmem:[%s1012_s0] ss:$0 sm:$0xff] }
0x14df   : > { %v2979_v29 = vmul.f32 %v2977_v43, %v2960_v0  ;;  %v3150_v0 = vld [vmem:[%s1017_s1 + $0x18] sm:$0xff] }
0x14e1   : > { %3697 = vmatmul.msk.f32.gmra.mxu3 %vm2002_vm12, %v2979_v29 }
0x1564   : > { %v3020_v20 = vpop.f32.mrf.mxu3 }
0x1565   : > { %v3021_v63 = vadd.f32 %v3765_v62, %v3020_v20  ;;  %v3182_v20 = vld [vmem:[%s1026_s8 + $0x18] sm:$0xff] }
0x1566   : > { %3202 = vmatpush.msrb.mxu2 %v3182_v20 }
0x1567   : > { %v3024_v31 = vadd.f32 %v3021_v63, %v2922_v35  ;;  %v3181_v63 = vld [vmem:[%s1026_s8 + $0x10] sm:$0xff] }
0x1568   : > { %3203 = vmatpush.msrb.mxu2 %v3181_v63 }
0x1569   : > { %v3032_v36 = vsel %vm1040_vm0, %v3024_v31, 0.0 }
0x156a   : > { %3033 = vadd.xlane.f32.xlu0 %v3032_v36  ;;  %v3712_v36 = vld [vmem:[%s1026_s8 + $0x28] sm:$0xff] }
0x1572   : > { %3042 = vadd.xlane.f32.xlu0 %v3041_v37  ;;  %v3711_v37 = vld [vmem:[%s1026_s8 + $0x20] sm:$0xff] }
0x15dd   : > { %v3034_v38 = vpop.xlane.xlu0 %3033 }
0x15de   : > { %v3036_v39 = vmul.f32 %v3034_v38, %v4027_v8  ;;  %v3769_v38 = vld [vmem:[%s4565_s2] ss:$0 sm:$0xff] }
0x15e0   : > { %v3038_v4 = vsub.f32 %v3024_v31, %v3036_v39  ;;  %v3713_v31 = vld [vmem:[%s1026_s8 + $0x30] sm:$0xff]  ;;  %v3770_v39 = vld [vmem:[%s4565_s2 + $0x1] ss:$0 sm:$0xff] }
0x15e2   : > { %v3040_v25 = vmul.f32 %v3038_v4, %v3038_v4 }
0x15e4   : > { %v3044_v44 = vsel %vm1040_vm0, %v3040_v25, 0.0 }
0x15e5   : > { %3045 = vadd.xlane.f32.xlu1 %v3044_v44  ;;  %v3043_v46 = vpop.xlane.xlu0 %3042 }
0x15e6   : > { %v3047_v49 = vmul.f32 %v3043_v46, %v4027_v8 }
0x15e8   : > { %v3049_v27 = vadd.f32 1e-12, %v3047_v49 }
0x15ea   : > { %3863 = vrsqrt.f32 %v3049_v27  ;;  %vm3057_vm14 = vweird.f32 %v3049_v27 }
0x15f0   : > { %v3864_v51 = vpop.eup %3863 }
0x15f1   : > { %v3052_v52 = vmul.f32 %v3864_v51, %v3049_v27  ;;  %vm3058_vm12 = vweird.f32 %v3864_v51 }
0x15f2   : > { %vm3059_vm15 = vmor %vm3057_vm14, %vm3058_vm12 }
0x15f3   : > { %v3053_v50 = vmul.f32 %v3864_v51, %v3052_v52 }
0x15f5   : > { %v3054_v58 = vmul.f32 0.5, %v3053_v50 }
0x15f7   : > { %v3055_v59 = vsub.f32 1.5, %v3054_v58 }
0x15f9   : > { %v3056_v62 = vmul.f32 %v3864_v51, %v3055_v59 }
0x15fb   : > { %v3060_v12 = vsel %vm3059_vm15, %v3864_v51, %v3056_v62  ;;  %v3771_v51 = vld [vmem:[%s4577_s6 + $0x1] ss:$0 sm:$0xff] }
0x15fc   : > { %v3071_v45 = vmul.f32 %v3060_v12, %v3037_v34  ;;  %v3180_v34 = vld [vmem:[%s1026_s8 + $0x8] sm:$0xff] }
0x15fd   : > { %3204 = vmatpush.msrb.mxu2 %v3180_v34 }
0x15fe   : > { %v3076_v10 = vmul.f32 %v3766_v48, %v3071_v45 }
0x15ff   : > { %3205 = vmatpush.msrb.mxu2 %v3179_v11 }
0x1600   : > { %v3081_v32 = vadd.f32 %v3767_v41, %v3076_v10 }
0x1658   : > { %v3046_v53 = vpop.xlane.xlu1 %3045 }
0x1659   : > { %v3048_v56 = vmul.f32 %v3046_v53, %v4027_v8 }
0x165b   : > { %v3050_v33 = vadd.f32 1e-12, %v3048_v56 }
0x165d   : > { %3865 = vrsqrt.f32 %v3050_v33  ;;  %vm3067_vm2 = vweird.f32 %v3050_v33 }
0x1663   : > { %v3866_v60 = vpop.eup %3865 }
0x1664   : > { %v3062_v61 = vmul.f32 %v3866_v60, %v3050_v33  ;;  %vm3068_vm1 = vweird.f32 %v3866_v60 }
0x1665   : > { %vm3069_vm3 = vmor %vm3067_vm2, %vm3068_vm1 }
0x1666   : > { %v3063_v42 = vmul.f32 %v3866_v60, %v3062_v61 }
0x1668   : > { %v3064_v8 = vmul.f32 0.5, %v3063_v42 }
0x166a   : > { %v3065_v28 = vsub.f32 1.5, %v3064_v8 }
0x166c   : > { %v3066_v5 = vmul.f32 %v3866_v60, %v3065_v28 }
0x166e   : > { %v3070_v14 = vsel %vm3069_vm3, %v3866_v60, %v3066_v5 }
0x166f   : > { %v3072_v30 = vmul.f32 %v3070_v14, %v3038_v4 }
0x1671   : > { %v3077_v9 = vmul.f32 %v3766_v48, %v3072_v30 }
0x1673   : > { %v3082_v13 = vadd.f32 %v3767_v41, %v3077_v9 }
0x1675   : > { %3109 = vmatpush.msrb.mxu0 %v3082_v13 }
0x1677   : > { %3110 = vmatpush.msrb.mxu0 %v3081_v32 }
0x1678   : > { %3701 = vmatmul.msk.f32.vlgmr.msrb.gmra.mxu0 %vm3091_vm6, %v3700_v17 }
0x1679   : > { %3170 = vmatpush.msra.mxu0 %v3150_v0 }
0x167b   : > { %3171 = vmatpush.msra.mxu0 %v3149_v19 }
0x167d   : > { %3172 = vmatpush.msra.mxu0 %v3148_v21 }
0x167f   : > { %3173 = vmatpush.msra.mxu0 %v3147_v23 }
0x1681   : > { %3267 = vmatpush.msrb.mxu0 %v3714_v24 }
0x1683   : > { %3268 = vmatpush.msrb.mxu0 %v3713_v31 }
0x1685   : > { %3269 = vmatpush.msrb.mxu0 %v3712_v36 }
0x1687   : > { %3270 = vmatpush.msrb.mxu0 %v3711_v37 }
0x16f5   : > { %v3112_v35 = vpop.f32.mrf.mxu0 }
0x16f6   : > { %3702 = vmatmul.msk.f32.vlgmr.msra.gmra.mxu2 %vm1040_vm0, %v3112_v35 }
0x1779   : > { %v3143_v43 = vpop.f32.mrf.mxu2 }
0x177a   : > { %v3144_v29 = vadd.f32 %v3768_v47, %v3143_v43 }
0x177c   : > { %3867 = vtanh.f32 %v3144_v29 }
0x1782   : > { %v3868_v15 = vpop.eup %3867 }
0x1783   : > { %3703 = vmatmul.msk.f32.vlgmr.msra.gmra.mxu0 %vm1040_vm0, %v3868_v15  ;;  %3710 = vmatmul.msk.f32.vlgmr.msrb.gmra.mxu1 %vm1040_vm0, %v3868_v15 }
0x1800   : > { %v3175_v4 = vpop.f32.mrf.mxu0  ;;  %v3238_v25 = vpop.f32.mrf.mxu1 }
0x1801   : > { %v3176_v44 = vadd.f32 %v3769_v38, %v3175_v4  ;;  %v3239_v46 = vadd.f32 %v3770_v39, %v3238_v25 }
0x1803   : > { %3869 = vtanh.f32 %v3176_v44 }
0x1804   : > { %3871 = vtanh.f32 %v3239_v46 }
0x1809   : > { %v3870_v49 = vpop.eup %3869 }
0x180a   : > { %v3872_v27 = vpop.eup %3871  ;;  %3704 = vmatmul.msk.f32.vlgmr.msrb.gmra.mxu2 %vm1040_vm0, %v3870_v49 }
0x180b   : > { %3716 = vmatmul.msk.f32.vlgmr.msrb.gmra.mxu0 %vm1040_vm0, %v3872_v27 }
0x1888   : > { %v3272_v52 = vpop.f32.mrf.mxu0 }
0x1889   : > { %v3273_v53 = vadd.f32 %v3771_v51, %v3272_v52 }
0x188b   : > { %3717 = vst [vmem:[%s1035_s25 + $0x2] sm:$0x3] %v3273_v53 }
0x188d   : > { %v3207_v55 = vpop.f32.mrf.mxu2 }
0x188e   : > { %v3208_v56 = vadd.f32 %v3772_v54, %v3207_v55 }
0x1890   : > { %3210 = vst [vmem:[%s1035_s25] sm:$0x3] %v3208_v56 }
0x1891 PF: > { %s4684_s26 = sld [smem:[#allocation2_spill]] }
0x1897   : > { %s32_s3 = sadd.s32 1, %s4684_s26  }
0x1898   : > { %p29_p4 = scmp.ge.s32.totalorder %s32_s3, 4  }
0x189a   :  { %31 = sbr.rel (!%p29_p4) target bundleno = 16 (0x10), region = 215 }

</bundles_post_ra>
